<compile_context>
chip_gen: v6e
topology: v6e:2x2x1
jax: 0.10.0
libtpu: 0.0.40
codegen_flags: <defaults>
</compile_context>

<pallas_src>
import functools
import math

import jax
import jax.numpy as jnp
from jax.experimental import pallas as pl
from jax.experimental.pallas import tpu as pltpu


def _layer_norm(x, gamma, beta, eps=1e-5):
    mu = jnp.mean(x, axis=-1, keepdims=True)
    var = jnp.mean(jnp.square(x - mu), axis=-1, keepdims=True)
    return (x - mu) * jax.lax.rsqrt(var + eps) * gamma + beta


# ---------------------------------------------------------------------------
# Kernel 1: proj_memory (+ LN + ReLU) and proj_edge/norm_edge, slab-vectorized
# over blocks of target rows i.  Outputs memory (S, B, D) in bf16 and the
# updated edge tensor in f32.
# ---------------------------------------------------------------------------
def _memory_edge_kernel(edge_ref, srcp_ref, tarp_ref,
                        we_ref, g_mem_ref, bt_mem_ref,
                        wpe_ref, bpe_ref, g_pe_ref, bt_pe_ref,
                        g_ne_ref, bt_ne_ref,
                        mem_ref, edge_out_ref):
    ti, n, e = edge_ref.shape
    d = srcp_ref.shape[-1]

    edge_blk = edge_ref[...]                                     # (ti, N, E) f32
    edge_flat = edge_blk.reshape(ti * n, e)

    # memory = relu(LN(edge @ W_e + node_src @ W_src + node_tar @ W_tar + b))
    m = jnp.dot(edge_flat.astype(jnp.bfloat16), we_ref[...],
                preferred_element_type=jnp.float32)              # (ti*N, D)
    m3 = m.reshape(ti, n, d) + srcp_ref[...] + tarp_ref[...]     # + (N, D) + (ti, 1, D)
    m3 = jnp.maximum(_layer_norm(m3, g_mem_ref[...], bt_mem_ref[...]), 0.0)
    mem_ref[...] = m3.astype(jnp.bfloat16)                       # (ti, N, D) slab of (S, B, D)

    # edge' = LN(edge + relu(LN(memory @ W_pe + b_pe)))
    pe = jnp.dot(m3.reshape(ti * n, d).astype(jnp.bfloat16), wpe_ref[...],
                 preferred_element_type=jnp.float32) + bpe_ref[...]
    pe = jnp.maximum(_layer_norm(pe, g_pe_ref[...], bt_pe_ref[...]), 0.0)
    edge_out_ref[...] = _layer_norm(edge_blk + pe.reshape(ti, n, e),
                                    g_ne_ref[...], bt_ne_ref[...])


# ---------------------------------------------------------------------------
# Kernel 2: multi-head cross attention (one query per batch, key_padding_mask)
# + residual/norm2 + FFN + residual/norm3, tiled over batch columns.
# memory arrives in (S, TB, D) layout; K/V are built with two large MXU
# matmuls, the per-head softmax works on (S, TB, 1) stats (flash-style).
# ---------------------------------------------------------------------------
def _attn_ffn_kernel(node_ref, mem_ref, mask_ref,
                     wq_ref, wk_ref, wv_ref, bq_ref, bk_ref, bv_ref,
                     wo_ref, bo_ref, g2_ref, bt2_ref,
                     w1_ref, b1_ref, w2_ref, b2_ref, g3_ref, bt3_ref,
                     out_ref, *, n_head):
    s_len, tb, d = mem_ref.shape
    dh = d // n_head
    scale = 1.0 / math.sqrt(dh)

    node = node_ref[...]                                         # (TB, D) f32
    mem_flat = mem_ref[...].reshape(s_len * tb, d)               # (S*TB, D) bf16

    # K / V once as big MXU matmuls (f32 accumulation).
    k3 = (jnp.dot(mem_flat, wk_ref[...], preferred_element_type=jnp.float32)
          + bk_ref[...]).reshape(s_len, tb, d)                   # (S, TB, D)
    v3 = (jnp.dot(mem_flat, wv_ref[...], preferred_element_type=jnp.float32)
          + bv_ref[...]).reshape(s_len, tb, d)

    q = (jnp.dot(node.astype(jnp.bfloat16), wq_ref[...],
                 preferred_element_type=jnp.float32) + bq_ref[...]) * scale   # (TB, D)

    mask3 = mask_ref[...]                                        # (S, TB, 1), 1.0 == masked key

    ctx_heads = []
    for h in range(n_head):                                      # static unroll over heads
        sl = slice(h * dh, (h + 1) * dh)
        s3 = jnp.sum(k3[:, :, sl] * q[:, sl], axis=-1, keepdims=True)   # (S, TB, 1)
        s3 = jnp.where(mask3 > 0.5, -1e30, s3)
        smax = jnp.max(s3, axis=0, keepdims=True)
        ex = jnp.exp(s3 - smax)
        inv = pl.reciprocal(jnp.sum(ex, axis=0, keepdims=True), approx=True)
        attn = ex * inv                                          # (S, TB, 1)
        ctx_heads.append(jnp.sum(attn * v3[:, :, sl], axis=0))   # (TB, dh)
    ctx = jnp.concatenate(ctx_heads, axis=-1)                    # (TB, D)

    attn_out = jnp.dot(ctx.astype(jnp.bfloat16), wo_ref[...],
                       preferred_element_type=jnp.float32) + bo_ref[...]
    x2 = _layer_norm(node + attn_out, g2_ref[...], bt2_ref[...])           # norm2
    hid = jnp.maximum(
        jnp.dot(x2.astype(jnp.bfloat16), w1_ref[...],
                preferred_element_type=jnp.float32) + b1_ref[...], 0.0)
    ff = jnp.dot(hid.astype(jnp.bfloat16), w2_ref[...],
                 preferred_element_type=jnp.float32) + b2_ref[...]
    out_ref[...] = _layer_norm(x2 + ff, g3_ref[...], bt3_ref[...])         # norm3


# ---------------------------------------------------------------------------
# Wrapper
# ---------------------------------------------------------------------------
def _full(shape):
    nd = len(shape)
    return pl.BlockSpec(shape, lambda *_: (0,) * nd)


def _pick_tile(n, row_bytes, budget_bytes, prefer=8):
    """Largest divisor of n whose double-buffered block fits the VMEM budget."""
    cap = max(1, min(n, budget_bytes // max(1, 2 * row_bytes)))
    divisors = [t for t in range(1, n + 1) if n % t == 0 and t <= cap]
    preferred = [t for t in divisors if t == n or t % prefer == 0]
    return max(preferred) if preferred else max(divisors)


def _vmem_limit(est_bytes):
    return int(min(48 * 1024 * 1024, max(32 * 1024 * 1024, 2 * est_bytes)))


def rela_fusion_forward(node, edge, edge_mask, params, *, n_head,
                        block_i=None, block_b=None):
    n, d = node.shape
    e = edge.shape[-1]
    f = params["W1"].shape[-1]
    assert n % 8 == 0, "N must be a multiple of 8 (sublane-aligned slab reshapes)"
    assert d % n_head == 0

    bf16 = jnp.bfloat16
    w_e = params["W_e"].astype(bf16)
    w_pe = params["W_pe"].astype(bf16)
    wq = params["Wq"].astype(bf16)
    wk = params["Wk"].astype(bf16)
    wv = params["Wv"].astype(bf16)
    wo = params["Wo"].astype(bf16)
    w1 = params["W1"].astype(bf16)
    w2 = params["W2"].astype(bf16)

    # Hoisted: identical for every grid step of kernel 1 (tiny (N,D)x(D,D) matmuls).
    srcp = jnp.dot(node, params["W_src"])                                   # (N, D)
    tarp = (jnp.dot(node, params["W_tar"]) + params["b_mem"])[:, None, :]   # (N, 1, D)

    # ---------------- kernel 1: memory + edge update --------------------
    row1 = n * (8 * e + 10 * d)                      # bytes per target row (blocks + f32 temps)
    ti = block_i if block_i is not None else _pick_tile(n, row1, 12 << 20, prefer=1)
    assert n % ti == 0
    est1 = 2 * ti * row1 + n * d * 4 + 4 * e * d

    mem, edge_out = pl.pallas_call(
        _memory_edge_kernel,
        grid=(n // ti,),
        in_specs=[
            pl.BlockSpec((ti, n, e), lambda i: (i, 0, 0)),   # edge rows of this target block
            _full((n, d)),                                   # node @ W_src (all sources)
            pl.BlockSpec((ti, 1, d), lambda i: (i, 0, 0)),   # node @ W_tar + b (block targets)
            _full((e, d)), _full((1, d)), _full((1, d)),
            _full((d, e)), _full((1, e)), _full((1, e)), _full((1, e)),
            _full((1, e)), _full((1, e)),
        ],
        out_specs=[
            pl.BlockSpec((ti, n, d), lambda i: (i, 0, 0)),   # memory (S, B, D), bf16
            pl.BlockSpec((ti, n, e), lambda i: (i, 0, 0)),   # updated edge, f32
        ],
        out_shape=[
            jax.ShapeDtypeStruct((n, n, d), jnp.bfloat16),
            jax.ShapeDtypeStruct((n, n, e), jnp.float32),
        ],
        compiler_params=pltpu.CompilerParams(
            dimension_semantics=("parallel",),
            vmem_limit_bytes=_vmem_limit(est1)),
    )(edge, srcp, tarp,
      w_e, params["g_mem"], params["bt_mem"],
      w_pe, params["b_pe"], params["g_pe"], params["bt_pe"],
      params["g_ne"], params["bt_ne"])

    # ---------------- kernel 2: attention + FFN --------------------------
    # key padding mask in (S, B, 1) layout so each batch block is (S, TB, 1).
    mask_sb1 = edge_mask.astype(jnp.float32).T[:, :, None]

    row2 = n * (14 * d + 8) + 16 * d                 # bytes per batch column (mem + K/V/temps)
    tb = block_b if block_b is not None else _pick_tile(n, row2, 12 << 20, prefer=16)
    assert n % tb == 0
    est2 = 2 * tb * row2 + 2 * (4 * d * d + 2 * d * f)

    x_out = pl.pallas_call(
        functools.partial(_attn_ffn_kernel, n_head=n_head),
        grid=(n // tb,),
        in_specs=[
            pl.BlockSpec((tb, d), lambda b: (b, 0)),         # query/residual rows
            pl.BlockSpec((n, tb, d), lambda b: (0, b, 0)),   # memory columns (S, TB, D)
            pl.BlockSpec((n, tb, 1), lambda b: (0, b, 0)),   # key padding mask (S, TB, 1)
            _full((d, d)), _full((d, d)), _full((d, d)),     # Wq Wk Wv
            _full((1, d)), _full((1, d)), _full((1, d)),     # bq bk bv
            _full((d, d)), _full((1, d)), _full((1, d)), _full((1, d)),   # Wo bo g2 bt2
            _full((d, f)), _full((1, f)), _full((f, d)), _full((1, d)),   # W1 b1 W2 b2
            _full((1, d)), _full((1, d)),                    # g3 bt3
        ],
        out_specs=pl.BlockSpec((tb, d), lambda b: (b, 0)),
        out_shape=jax.ShapeDtypeStruct((n, d), jnp.float32),
        compiler_params=pltpu.CompilerParams(
            dimension_semantics=("parallel",),
            vmem_limit_bytes=_vmem_limit(est2)),
    )(node, mem, mask_sb1,
      wq, wk, wv, params["bq"], params["bk"], params["bv"],
      wo, params["bo"], params["g2"], params["bt2"],
      w1, params["b1"], w2, params["b2"], params["g3"], params["bt3"])

    # TODO(synk): alias edge -> edge_out via input_output_aliases when the caller
    # does not need the original edge tensor (this script re-uses it for the reference).
    return x_out, edge_out


# ---------------------------------------------------------------------------
# Pure-JAX reference (mirrors the PyTorch forward in eval mode) for validation.
# ---------------------------------------------------------------------------
def rela_fusion_reference(node, edge, edge_mask, params, *, n_head):
    n, d = node.shape
    dh = d // n_head
    src = jnp.broadcast_to(node[None, :, :], (n, n, d))      # src_x[i, j] = node[j]
    tar = jnp.broadcast_to(node[:, None, :], (n, n, d))      # tar_x[i, j] = node[i]
    m = edge @ params["W_e"] + src @ params["W_src"] + tar @ params["W_tar"] + params["b_mem"]
    m = jax.nn.relu(_layer_norm(m, params["g_mem"], params["bt_mem"]))
    pe = jax.nn.relu(_layer_norm(m @ params["W_pe"] + params["b_pe"],
                                 params["g_pe"], params["bt_pe"]))
    edge_out = _layer_norm(edge + pe, params["g_ne"], params["bt_ne"])

    q = node @ params["Wq"] + params["bq"]                   # (B, D)
    k = m @ params["Wk"] + params["bk"]                      # (S, B, D)
    v = m @ params["Wv"] + params["bv"]
    qh = q.reshape(n, n_head, dh) / math.sqrt(dh)
    kh = k.reshape(n, n, n_head, dh)
    vh = v.reshape(n, n, n_head, dh)
    scores = jnp.einsum("bhd,sbhd->bhs", qh, kh)
    scores = jnp.where(edge_mask[:, None, :], -jnp.inf, scores)
    attn = jax.nn.softmax(scores, axis=-1)
    o = jnp.einsum("bhs,sbhd->bhd", attn, vh).reshape(n, d)
    attn_proj = o @ params["Wo"] + params["bo"]
    x2 = _layer_norm(node + attn_proj, params["g2"], params["bt2"])
    ff = jax.nn.relu(x2 @ params["W1"] + params["b1"]) @ params["W2"] + params["b2"]
    x3 = _layer_norm(x2 + ff, params["g3"], params["bt3"])
    return x3, edge_out


if __name__ == "__main__":
    N, D_MODEL, D_EDGE, D_FFN, N_HEAD = 16, 32, 16, 64, 4

    key = jax.random.PRNGKey(0)
    ks = jax.random.split(key, 40)

    def w(k, shape, s=0.1):
        return s * jax.random.normal(k, shape, jnp.float32)

    params = {
        "W_e": w(ks[0], (D_EDGE, D_MODEL)),
        "W_src": w(ks[1], (D_MODEL, D_MODEL)),
        "W_tar": w(ks[2], (D_MODEL, D_MODEL)),
        "b_mem": w(ks[3], (1, D_MODEL), 0.02),
        "g_mem": 1.0 + w(ks[4], (1, D_MODEL), 0.05),
        "bt_mem": w(ks[5], (1, D_MODEL), 0.05),
        "W_pe": w(ks[6], (D_MODEL, D_EDGE)),
        "b_pe": w(ks[7], (1, D_EDGE), 0.02),
        "g_pe": 1.0 + w(ks[8], (1, D_EDGE), 0.05),
        "bt_pe": w(ks[9], (1, D_EDGE), 0.05),
        "g_ne": 1.0 + w(ks[10], (1, D_EDGE), 0.05),
        "bt_ne": w(ks[11], (1, D_EDGE), 0.05),
        "Wq": w(ks[12], (D_MODEL, D_MODEL)),
        "Wk": w(ks[13], (D_MODEL, D_MODEL)),
        "Wv": w(ks[14], (D_MODEL, D_MODEL)),
        "bq": w(ks[15], (1, D_MODEL), 0.02),
        "bk": w(ks[16], (1, D_MODEL), 0.02),
        "bv": w(ks[17], (1, D_MODEL), 0.02),
        "Wo": w(ks[18], (D_MODEL, D_MODEL)),
        "bo": w(ks[19], (1, D_MODEL), 0.02),
        "g2": 1.0 + w(ks[20], (1, D_MODEL), 0.05),
        "bt2": w(ks[21], (1, D_MODEL), 0.05),
        "W1": w(ks[22], (D_MODEL, D_FFN)),
        "b1": w(ks[23], (1, D_FFN), 0.02),
        "W2": w(ks[24], (D_FFN, D_MODEL)),
        "b2": w(ks[25], (1, D_MODEL), 0.02),
        "g3": 1.0 + w(ks[26], (1, D_MODEL), 0.05),
        "bt3": w(ks[27], (1, D_MODEL), 0.05),
    }

    node = jax.random.normal(ks[28], (N, D_MODEL), jnp.float32)
    edge = jax.random.normal(ks[29], (N, N, D_EDGE), jnp.float32)
    edge_mask = jax.random.uniform(ks[30], (N, N)) < 0.2
    # keep >= 1 valid key per query batch (torch would produce NaN rows otherwise)
    edge_mask = edge_mask.at[:, 0].set(False)

    x_out, edge_out = rela_fusion_forward(node, edge, edge_mask, params, n_head=N_HEAD)
    jax.block_until_ready((x_out, edge_out))

    with jax.default_matmul_precision("highest"):
        x_ref, edge_ref_out = rela_fusion_reference(node, edge, edge_mask, params, n_head=N_HEAD)
        x_ref, edge_ref_out = jax.block_until_ready((x_ref, edge_ref_out))

    assert bool(jnp.all(jnp.isfinite(x_out))) and bool(jnp.all(jnp.isfinite(edge_out)))
    assert jnp.allclose(x_out, x_ref, atol=5e-2, rtol=5e-2), \
        float(jnp.max(jnp.abs(x_out - x_ref)))
    assert jnp.allclose(edge_out, edge_ref_out, atol=5e-2, rtol=5e-2), \
        float(jnp.max(jnp.abs(edge_out - edge_ref_out)))
    print("KERNEL_OK")
</pallas_src>

<mosaic_0001>
module attributes {stable_mosaic.version = 11 : i64} {
  func.func @_memory_edge_kernel(%arg0: i32, %arg1: memref<16x16x16xf32, #tpu.memory_space<vmem>>, %arg2: memref<16x32xf32, #tpu.memory_space<vmem>>, %arg3: memref<16x1x32xf32, #tpu.memory_space<vmem>>, %arg4: memref<16x32xbf16, #tpu.memory_space<vmem>>, %arg5: memref<1x32xf32, #tpu.memory_space<vmem>>, %arg6: memref<1x32xf32, #tpu.memory_space<vmem>>, %arg7: memref<32x16xbf16, #tpu.memory_space<vmem>>, %arg8: memref<1x16xf32, #tpu.memory_space<vmem>>, %arg9: memref<1x16xf32, #tpu.memory_space<vmem>>, %arg10: memref<1x16xf32, #tpu.memory_space<vmem>>, %arg11: memref<1x16xf32, #tpu.memory_space<vmem>>, %arg12: memref<1x16xf32, #tpu.memory_space<vmem>>, %arg13: memref<16x16x32xbf16, #tpu.memory_space<vmem>>, %arg14: memref<16x16x16xf32, #tpu.memory_space<vmem>>) attributes {dimension_semantics = [#tpu.dimension_semantics<parallel>], iteration_bounds = array<i64: 1>, scalar_prefetch = 0 : i64, scratch_operands = 0 : i64, tpu.core_type = #tpu.core_type<tc>, window_params = [{transform_indices = @transform_0, window_bounds = array<i64: 16, 16, 16>}, {pipeline_mode = #tpu.pipeline_mode<synchronous>, transform_indices = @transform_1, window_bounds = array<i64: 16, 32>}, {transform_indices = @transform_2, window_bounds = array<i64: 16, 1, 32>}, {pipeline_mode = #tpu.pipeline_mode<synchronous>, transform_indices = @transform_3, window_bounds = array<i64: 16, 32>}, {pipeline_mode = #tpu.pipeline_mode<synchronous>, transform_indices = @transform_4, window_bounds = array<i64: 1, 32>}, {pipeline_mode = #tpu.pipeline_mode<synchronous>, transform_indices = @transform_5, window_bounds = array<i64: 1, 32>}, {pipeline_mode = #tpu.pipeline_mode<synchronous>, transform_indices = @transform_6, window_bounds = array<i64: 32, 16>}, {pipeline_mode = #tpu.pipeline_mode<synchronous>, transform_indices = @transform_7, window_bounds = array<i64: 1, 16>}, {pipeline_mode = #tpu.pipeline_mode<synchronous>, transform_indices = @transform_8, window_bounds = array<i64: 1, 16>}, {pipeline_mode = #tpu.pipeline_mode<synchronous>, transform_indices = @transform_9, window_bounds = array<i64: 1, 16>}, {pipeline_mode = #tpu.pipeline_mode<synchronous>, transform_indices = @transform_10, window_bounds = array<i64: 1, 16>}, {pipeline_mode = #tpu.pipeline_mode<synchronous>, transform_indices = @transform_11, window_bounds = array<i64: 1, 16>}, {transform_indices = @transform_12, window_bounds = array<i64: 16, 16, 32>}, {transform_indices = @transform_13, window_bounds = array<i64: 16, 16, 16>}]} {
    %c0 = arith.constant 0 : index
    %c0_0 = arith.constant 0 : index
    %c0_1 = arith.constant 0 : index
    %0 = vector.load %arg1[%c0, %c0_0, %c0_1] : memref<16x16x16xf32, #tpu.memory_space<vmem>>, vector<16x16x16xf32>
    %1 = vector.shape_cast %0 : vector<16x16x16xf32> to vector<256x16xf32>
    %2 = arith.truncf %1 : vector<256x16xf32> to vector<256x16xbf16>
    %c0_2 = arith.constant 0 : index
    %c0_3 = arith.constant 0 : index
    %3 = vector.load %arg4[%c0_2, %c0_3] : memref<16x32xbf16, #tpu.memory_space<vmem>>, vector<16x32xbf16>
    %cst = arith.constant dense<0.000000e+00> : vector<256x32xf32>
    %4 = tpu.matmul %2, %3, %cst {dimension_numbers = #tpu.dot_dimension_numbers<[1], [0], [0], [1], [0, 0, 1, 1], [], []>} : vector<256x16xbf16>, vector<16x32xbf16>, vector<256x32xf32> -> vector<256x32xf32>
    %5 = vector.shape_cast %4 : vector<256x32xf32> to vector<16x16x32xf32>
    %c0_4 = arith.constant 0 : index
    %c0_5 = arith.constant 0 : index
    %6 = vector.load %arg2[%c0_4, %c0_5] : memref<16x32xf32, #tpu.memory_space<vmem>>, vector<16x32xf32>
    %7 = vector.shape_cast %6 : vector<16x32xf32> to vector<1x16x32xf32>
    %8 = vector.broadcast %7 : vector<1x16x32xf32> to vector<16x16x32xf32>
    %9 = arith.addf %5, %8 : vector<16x16x32xf32>
    %c0_6 = arith.constant 0 : index
    %c0_7 = arith.constant 0 : index
    %c0_8 = arith.constant 0 : index
    %10 = vector.load %arg3[%c0_6, %c0_7, %c0_8] : memref<16x1x32xf32, #tpu.memory_space<vmem>>, vector<16x1x32xf32>
    %11 = vector.broadcast %10 : vector<16x1x32xf32> to vector<16x16x32xf32>
    %12 = arith.addf %9, %11 : vector<16x16x32xf32>
    %c0_9 = arith.constant 0 : index
    %c0_10 = arith.constant 0 : index
    %13 = vector.load %arg5[%c0_9, %c0_10] : memref<1x32xf32, #tpu.memory_space<vmem>>, vector<1x32xf32>
    %c0_11 = arith.constant 0 : index
    %c0_12 = arith.constant 0 : index
    %14 = vector.load %arg6[%c0_11, %c0_12] : memref<1x32xf32, #tpu.memory_space<vmem>>, vector<1x32xf32>
    %cst_13 = arith.constant dense<0.000000e+00> : vector<16x16xf32>
    %15 = vector.multi_reduction <add>, %12, %cst_13 [2] : vector<16x16x32xf32> to vector<16x16xf32>
    %16 = vector.shape_cast %15 : vector<16x16xf32> to vector<16x16x1xf32>
    %cst_14 = arith.constant 3.200000e+01 : f32
    %17 = vector.broadcast %cst_14 : f32 to vector<16x16x1xf32>
    %18 = arith.divf %16, %17 : vector<16x16x1xf32>
    %19 = vector.broadcast %18 : vector<16x16x1xf32> to vector<16x16x32xf32>
    %20 = arith.subf %12, %19 : vector<16x16x32xf32>
    %21 = arith.mulf %20, %20 : vector<16x16x32xf32>
    %cst_15 = arith.constant dense<0.000000e+00> : vector<16x16xf32>
    %22 = vector.multi_reduction <add>, %21, %cst_15 [2] : vector<16x16x32xf32> to vector<16x16xf32>
    %23 = vector.shape_cast %22 : vector<16x16xf32> to vector<16x16x1xf32>
    %cst_16 = arith.constant 3.200000e+01 : f32
    %24 = vector.broadcast %cst_16 : f32 to vector<16x16x1xf32>
    %25 = arith.divf %23, %24 : vector<16x16x1xf32>
    %26 = vector.broadcast %18 : vector<16x16x1xf32> to vector<16x16x32xf32>
    %27 = arith.subf %12, %26 : vector<16x16x32xf32>
    %cst_17 = arith.constant 9.99999974E-6 : f32
    %28 = vector.broadcast %cst_17 : f32 to vector<16x16x1xf32>
    %29 = arith.addf %25, %28 : vector<16x16x1xf32>
    %30 = math.rsqrt %29 : vector<16x16x1xf32>
    %31 = vector.broadcast %30 : vector<16x16x1xf32> to vector<16x16x32xf32>
    %32 = arith.mulf %27, %31 : vector<16x16x32xf32>
    %33 = vector.shape_cast %13 : vector<1x32xf32> to vector<1x1x32xf32>
    %34 = vector.broadcast %33 : vector<1x1x32xf32> to vector<16x16x32xf32>
    %35 = arith.mulf %32, %34 : vector<16x16x32xf32>
    %36 = vector.shape_cast %14 : vector<1x32xf32> to vector<1x1x32xf32>
    %37 = vector.broadcast %36 : vector<1x1x32xf32> to vector<16x16x32xf32>
    %38 = arith.addf %35, %37 : vector<16x16x32xf32>
    %cst_18 = arith.constant 0.000000e+00 : f32
    %39 = vector.broadcast %cst_18 : f32 to vector<16x16x32xf32>
    %40 = arith.maximumf %38, %39 : vector<16x16x32xf32>
    %41 = arith.truncf %40 : vector<16x16x32xf32> to vector<16x16x32xbf16>
    %c0_19 = arith.constant 0 : index
    %c0_20 = arith.constant 0 : index
    %c0_21 = arith.constant 0 : index
    %42 = vector.load %arg13[%c0_19, %c0_20, %c0_21] : memref<16x16x32xbf16, #tpu.memory_space<vmem>>, vector<16x16x32xbf16>
    tpu.vector_store %arg13[%c0_19, %c0_20, %c0_21], %41 {strides = array<i32>} : memref<16x16x32xbf16, #tpu.memory_space<vmem>>, vector<16x16x32xbf16>,
    %43 = vector.shape_cast %40 : vector<16x16x32xf32> to vector<256x32xf32>
    %44 = arith.truncf %43 : vector<256x32xf32> to vector<256x32xbf16>
    %c0_22 = arith.constant 0 : index
    %c0_23 = arith.constant 0 : index
    %45 = vector.load %arg7[%c0_22, %c0_23] : memref<32x16xbf16, #tpu.memory_space<vmem>>, vector<32x16xbf16>
    %cst_24 = arith.constant dense<0.000000e+00> : vector<256x16xf32>
    %46 = tpu.matmul %44, %45, %cst_24 {dimension_numbers = #tpu.dot_dimension_numbers<[1], [0], [0], [1], [0, 0, 1, 1], [], []>} : vector<256x32xbf16>, vector<32x16xbf16>, vector<256x16xf32> -> vector<256x16xf32>
    %c0_25 = arith.constant 0 : index
    %c0_26 = arith.constant 0 : index
    %47 = vector.load %arg8[%c0_25, %c0_26] : memref<1x16xf32, #tpu.memory_space<vmem>>, vector<1x16xf32>
    %48 = vector.broadcast %47 : vector<1x16xf32> to vector<256x16xf32>
    %49 = arith.addf %46, %48 : vector<256x16xf32>
    %c0_27 = arith.constant 0 : index
    %c0_28 = arith.constant 0 : index
    %50 = vector.load %arg9[%c0_27, %c0_28] : memref<1x16xf32, #tpu.memory_space<vmem>>, vector<1x16xf32>
    %c0_29 = arith.constant 0 : index
    %c0_30 = arith.constant 0 : index
    %51 = vector.load %arg10[%c0_29, %c0_30] : memref<1x16xf32, #tpu.memory_space<vmem>>, vector<1x16xf32>
    %cst_31 = arith.constant dense<0.000000e+00> : vector<256xf32>
    %52 = vector.multi_reduction <add>, %49, %cst_31 [1] : vector<256x16xf32> to vector<256xf32>
    %53 = vector.shape_cast %52 : vector<256xf32> to vector<256x1xf32>
    %cst_32 = arith.constant 1.600000e+01 : f32
    %54 = vector.broadcast %cst_32 : f32 to vector<256x1xf32>
    %55 = arith.divf %53, %54 : vector<256x1xf32>
    %56 = vector.broadcast %55 : vector<256x1xf32> to vector<256x16xf32>
    %57 = arith.subf %49, %56 : vector<256x16xf32>
    %58 = arith.mulf %57, %57 : vector<256x16xf32>
    %cst_33 = arith.constant dense<0.000000e+00> : vector<256xf32>
    %59 = vector.multi_reduction <add>, %58, %cst_33 [1] : vector<256x16xf32> to vector<256xf32>
    %60 = vector.shape_cast %59 : vector<256xf32> to vector<256x1xf32>
    %cst_34 = arith.constant 1.600000e+01 : f32
    %61 = vector.broadcast %cst_34 : f32 to vector<256x1xf32>
    %62 = arith.divf %60, %61 : vector<256x1xf32>
    %63 = vector.broadcast %55 : vector<256x1xf32> to vector<256x16xf32>
    %64 = arith.subf %49, %63 : vector<256x16xf32>
    %cst_35 = arith.constant 9.99999974E-6 : f32
    %65 = vector.broadcast %cst_35 : f32 to vector<256x1xf32>
    %66 = arith.addf %62, %65 : vector<256x1xf32>
    %67 = math.rsqrt %66 : vector<256x1xf32>
    %68 = vector.broadcast %67 : vector<256x1xf32> to vector<256x16xf32>
    %69 = arith.mulf %64, %68 : vector<256x16xf32>
    %70 = vector.broadcast %50 : vector<1x16xf32> to vector<256x16xf32>
    %71 = arith.mulf %69, %70 : vector<256x16xf32>
    %72 = vector.broadcast %51 : vector<1x16xf32> to vector<256x16xf32>
    %73 = arith.addf %71, %72 : vector<256x16xf32>
    %cst_36 = arith.constant 0.000000e+00 : f32
    %74 = vector.broadcast %cst_36 : f32 to vector<256x16xf32>
    %75 = arith.maximumf %73, %74 : vector<256x16xf32>
    %76 = vector.shape_cast %75 : vector<256x16xf32> to vector<16x16x16xf32>
    %77 = arith.addf %0, %76 : vector<16x16x16xf32>
    %c0_37 = arith.constant 0 : index
    %c0_38 = arith.constant 0 : index
    %78 = vector.load %arg11[%c0_37, %c0_38] : memref<1x16xf32, #tpu.memory_space<vmem>>, vector<1x16xf32>
    %c0_39 = arith.constant 0 : index
    %c0_40 = arith.constant 0 : index
    %79 = vector.load %arg12[%c0_39, %c0_40] : memref<1x16xf32, #tpu.memory_space<vmem>>, vector<1x16xf32>
    %cst_41 = arith.constant dense<0.000000e+00> : vector<16x16xf32>
    %80 = vector.multi_reduction <add>, %77, %cst_41 [2] : vector<16x16x16xf32> to vector<16x16xf32>
    %81 = vector.shape_cast %80 : vector<16x16xf32> to vector<16x16x1xf32>
    %cst_42 = arith.constant 1.600000e+01 : f32
    %82 = vector.broadcast %cst_42 : f32 to vector<16x16x1xf32>
    %83 = arith.divf %81, %82 : vector<16x16x1xf32>
    %84 = vector.broadcast %83 : vector<16x16x1xf32> to vector<16x16x16xf32>
    %85 = arith.subf %77, %84 : vector<16x16x16xf32>
    %86 = arith.mulf %85, %85 : vector<16x16x16xf32>
    %cst_43 = arith.constant dense<0.000000e+00> : vector<16x16xf32>
    %87 = vector.multi_reduction <add>, %86, %cst_43 [2] : vector<16x16x16xf32> to vector<16x16xf32>
    %88 = vector.shape_cast %87 : vector<16x16xf32> to vector<16x16x1xf32>
    %cst_44 = arith.constant 1.600000e+01 : f32
    %89 = vector.broadcast %cst_44 : f32 to vector<16x16x1xf32>
    %90 = arith.divf %88, %89 : vector<16x16x1xf32>
    %91 = vector.broadcast %83 : vector<16x16x1xf32> to vector<16x16x16xf32>
    %92 = arith.subf %77, %91 : vector<16x16x16xf32>
    %cst_45 = arith.constant 9.99999974E-6 : f32
    %93 = vector.broadcast %cst_45 : f32 to vector<16x16x1xf32>
    %94 = arith.addf %90, %93 : vector<16x16x1xf32>
    %95 = math.rsqrt %94 : vector<16x16x1xf32>
    %96 = vector.broadcast %95 : vector<16x16x1xf32> to vector<16x16x16xf32>
    %97 = arith.mulf %92, %96 : vector<16x16x16xf32>
    %98 = vector.shape_cast %78 : vector<1x16xf32> to vector<1x1x16xf32>
    %99 = vector.broadcast %98 : vector<1x1x16xf32> to vector<16x16x16xf32>
    %100 = arith.mulf %97, %99 : vector<16x16x16xf32>
    %101 = vector.shape_cast %79 : vector<1x16xf32> to vector<1x1x16xf32>
    %102 = vector.broadcast %101 : vector<1x1x16xf32> to vector<16x16x16xf32>
    %103 = arith.addf %100, %102 : vector<16x16x16xf32>
    %c0_46 = arith.constant 0 : index
    %c0_47 = arith.constant 0 : index
    %c0_48 = arith.constant 0 : index
    %104 = vector.load %arg14[%c0_46, %c0_47, %c0_48] : memref<16x16x16xf32, #tpu.memory_space<vmem>>, vector<16x16x16xf32>
    tpu.vector_store %arg14[%c0_46, %c0_47, %c0_48], %103 {strides = array<i32>} : memref<16x16x16xf32, #tpu.memory_space<vmem>>, vector<16x16x16xf32>,
    return
  }
  func.func @transform_0(%arg0: i32) -> (i32, i32, i32) {
    %c0_i32 = arith.constant 0 : i32
    %c0_i32_0 = arith.constant 0 : i32
    %c0_i32_1 = arith.constant 0 : i32
    return %arg0, %c0_i32, %c0_i32_0 : i32, i32, i32
  }
  func.func @transform_1(%arg0: i32) -> (i32, i32) {
    %c0_i32 = arith.constant 0 : i32
    %c0_i32_0 = arith.constant 0 : i32
    %c0_i32_1 = arith.constant 0 : i32
    return %c0_i32, %c0_i32_0 : i32, i32
  }
  func.func @transform_2(%arg0: i32) -> (i32, i32, i32) {
    %c0_i32 = arith.constant 0 : i32
    %c0_i32_0 = arith.constant 0 : i32
    %c0_i32_1 = arith.constant 0 : i32
    return %arg0, %c0_i32, %c0_i32_0 : i32, i32, i32
  }
  func.func @transform_3(%arg0: i32) -> (i32, i32) {
    %c0_i32 = arith.constant 0 : i32
    %c0_i32_0 = arith.constant 0 : i32
    %c0_i32_1 = arith.constant 0 : i32
    return %c0_i32, %c0_i32_0 : i32, i32
  }
  func.func @transform_4(%arg0: i32) -> (i32, i32) {
    %c0_i32 = arith.constant 0 : i32
    %c0_i32_0 = arith.constant 0 : i32
    %c0_i32_1 = arith.constant 0 : i32
    return %c0_i32, %c0_i32_0 : i32, i32
  }
  func.func @transform_5(%arg0: i32) -> (i32, i32) {
    %c0_i32 = arith.constant 0 : i32
    %c0_i32_0 = arith.constant 0 : i32
    %c0_i32_1 = arith.constant 0 : i32
    return %c0_i32, %c0_i32_0 : i32, i32
  }
  func.func @transform_6(%arg0: i32) -> (i32, i32) {
    %c0_i32 = arith.constant 0 : i32
    %c0_i32_0 = arith.constant 0 : i32
    %c0_i32_1 = arith.constant 0 : i32
    return %c0_i32, %c0_i32_0 : i32, i32
  }
  func.func @transform_7(%arg0: i32) -> (i32, i32) {
    %c0_i32 = arith.constant 0 : i32
    %c0_i32_0 = arith.constant 0 : i32
    %c0_i32_1 = arith.constant 0 : i32
    return %c0_i32, %c0_i32_0 : i32, i32
  }
  func.func @transform_8(%arg0: i32) -> (i32, i32) {
    %c0_i32 = arith.constant 0 : i32
    %c0_i32_0 = arith.constant 0 : i32
    %c0_i32_1 = arith.constant 0 : i32
    return %c0_i32, %c0_i32_0 : i32, i32
  }
  func.func @transform_9(%arg0: i32) -> (i32, i32) {
    %c0_i32 = arith.constant 0 : i32
    %c0_i32_0 = arith.constant 0 : i32
    %c0_i32_1 = arith.constant 0 : i32
    return %c0_i32, %c0_i32_0 : i32, i32
  }
  func.func @transform_10(%arg0: i32) -> (i32, i32) {
    %c0_i32 = arith.constant 0 : i32
    %c0_i32_0 = arith.constant 0 : i32
    %c0_i32_1 = arith.constant 0 : i32
    return %c0_i32, %c0_i32_0 : i32, i32
  }
  func.func @transform_11(%arg0: i32) -> (i32, i32) {
    %c0_i32 = arith.constant 0 : i32
    %c0_i32_0 = arith.constant 0 : i32
    %c0_i32_1 = arith.constant 0 : i32
    return %c0_i32, %c0_i32_0 : i32, i32
  }
  func.func @transform_12(%arg0: i32) -> (i32, i32, i32) {
    %c0_i32 = arith.constant 0 : i32
    %c0_i32_0 = arith.constant 0 : i32
    %c0_i32_1 = arith.constant 0 : i32
    return %arg0, %c0_i32, %c0_i32_0 : i32, i32, i32
  }
  func.func @transform_13(%arg0: i32) -> (i32, i32, i32) {
    %c0_i32 = arith.constant 0 : i32
    %c0_i32_0 = arith.constant 0 : i32
    %c0_i32_1 = arith.constant 0 : i32
    return %arg0, %c0_i32, %c0_i32_0 : i32, i32, i32
  }
}

</mosaic_0001>

<bundles_post_ra>
// kernel: tpu_custom_call.1
= control target key start
LH: loop header
LB: loop body
LE: loop exit
PB: predicated region body
PF: predicated region fallthrough
CT: control target
= control target key end

     0   :  { %19 = vsyncpa [#allocation3], 0  ;;  %s4670_s0 = inlined_call_operand.hbm [shape: f32[16,16,16], index: 0, kind: input, shape index: {}]   ;;  %s4671_s1 = inlined_call_operand.vmem [shape: f32[16,32], index: 1, kind: input, shape index: {}]   ;;  %s4672_s2 = inlined_call_operand.hbm [shape: f32[16,1,32], index: 2, kind: input, shape index: {}]   ;;  %s4673_s3 = inlined_call_operand.vmem [shape: bf16[16,32], index: 3, kind: input, shape index: {}]   ;;  %s4674_s4 = inlined_call_operand.vmem [shape: f32[1,32], index: 4, kind: input, shape index: {}]   ;;  %s4675_s5 = inlined_call_operand.vmem [shape: f32[1,32], index: 5, kind: input, shape index: {}]   ;;  %s4676_s6 = inlined_call_operand.vmem [shape: bf16[32,16], index: 6, kind: input, shape index: {}]   ;;  %s4677_s7 = inlined_call_operand.vmem [shape: f32[1,16], index: 7, kind: input, shape index: {}]   ;;  %s4678_s8 = inlined_call_operand.vmem [shape: f32[1,16], index: 8, kind: input, shape index: {}]   ;;  %s4679_s9 = inlined_call_operand.vmem [shape: f32[1,16], index: 9, kind: input, shape index: {}]   ;;  %s4680_s10 = inlined_call_operand.vmem [shape: f32[1,16], index: 10, kind: input, shape index: {}]   ;;  %s4681_s11 = inlined_call_operand.vmem [shape: f32[1,16], index: 11, kind: input, shape index: {}]   ;;  %s4682_s12 = inlined_call_operand.hbm [shape: bf16[16,16,32], index: 12, kind: output, shape index: {0}]   ;;  %s4683_s13 = inlined_call_operand.hbm [shape: f32[16,16,16], index: 13, kind: output, shape index: {1}]  }
   0x1   :  { %20 = vsyncpa [#allocation6], 0 }
   0x2   :  { %21 = vsyncpa [#allocation4], 0 }
   0x3   :  { %22 = vsyncpa [#allocation9], 0  ;;  %s3110_s25 = smov [#allocation2]  }
   0x4   :  { %s28_s26 = sshll.u32 %s3110_s25, 4  ;;  %s29_s26 = int_to_ptr.vmem [resolvable:$true] %s28_s26 }
   0x5   :  { %s3030_s27 = scalar_lea.vmem %s29_s26, 4096  ;;  %p3035_p1 = scmp.lt.s32.totalorder %s29_s26, %s29_s26 }
   0x6   :  { %p3031_p0 = scmp.ne.s32.totalorder %s29_s26, %s3030_s27  ;;  %p3036_p2 = scmp.lt.s32.totalorder %s3030_s27, %s3030_s27 }
   0x8   :  { %p3037_p3 = por %p3036_p2, %p3035_p1 }
   0xa   :  { %p3038_p4 = pnand %p3037_p3, %p3031_p0 }
   0xc   :  { %3041 = shalt.err (!%p3038_p4)
}
   0xd   :  { %s3111_s28 = smov 128   ;;  %s3112_s29 = smov 8  }
   0xe   :  { %34 = dma.hbm_to_vmem [thread:$0]  %s4670_s0, 4096, %s29_s26, [#allocation3], %s3111_s28, %s3111_s28, %s3112_s29  }
   0xf   :  { %s3113_s15 = smov [#allocation5]  }
  0x10   :  { %s42_s16 = sshll.u32 %s3113_s15, 4  ;;  %s43_s16 = int_to_ptr.vmem [resolvable:$true] %s42_s16 }
  0x11   :  { %s3050_s17 = scalar_lea.vmem %s43_s16, 256  ;;  %p3055_p6 = scmp.lt.s32.totalorder %s43_s16, %s43_s16 }
  0x12   :  { %p3051_p5 = scmp.ne.s32.totalorder %s43_s16, %s3050_s17  ;;  %p3056_p7 = scmp.lt.s32.totalorder %s3050_s17, %s3050_s17 }
  0x14   :  { %p3057_p8 = por %p3056_p7, %p3055_p6 }
  0x16   :  { %p3058_p9 = pnand %p3057_p8, %p3051_p5 }
  0x18   :  { %3061 = shalt.err (!%p3058_p9)
}
  0x19   :  { %s3114_s18 = smov 16   ;;  %s3115_s19 = smov 1  }
  0x1a   :  { %48 = dma.hbm_to_vmem [thread:$0]  %s4672_s2, 256, %s43_s16, [#allocation6], %s3114_s18, %s3114_s18, %s3115_s19  }
  0x1b   :  { %3102 = dma.done.wait [#allocation3], 4096  }
  0x1c   :  { %3103 = vsyncadd [#allocation3], 4294963200 }
  0x1d   :  { %3104 = dma.done.wait [#allocation6], 256  }
  0x1e   :  { %3105 = vsyncadd [#allocation6], 4294967040  ;;  %v2795_v0 = vld [vmem:[%s4673_s3] sm:$0xff]   ;;  %v75_v2 = vld [vmem:[#allocation2 + $0x8] sm:$0xff]  ;;  %vm130_vm0 = vcmask 130048   ;;  %vm520_vm1 = vcmask 261120  }
  0x1f   :  { %v74_v1 = vld [vmem:[#allocation2] sm:$0xff]  ;;  %v76_v3 = vld [vmem:[#allocation2 + $0x10] sm:$0xff]  ;;  %2715 = vmatprep.subr.bf16.mxu0 %v2795_v0  ;;  %v77_v5 = vld [vmem:[#allocation2 + $0x18] sm:$0xff]  ;;  %vm1174_vm2 = vcmask 257024  }
  0x20   :  { %v106_v4 = vpack.c.bf16 %v75_v2, %v74_v1  ;;  %v78_v6 = vld [vmem:[#allocation2 + $0x20] sm:$0xff]  ;;  %v79_v7 = vld [vmem:[#allocation2 + $0x28] sm:$0xff]  ;;  %2716 = vmatpush3.bf16.msra.mxu0 %v2795_v0  ;;  %v107_v8 = vpack.c.bf16 %v77_v5, %v76_v3  ;;  %v80_v10 = vld [vmem:[#allocation2 + $0x30] sm:$0xff] }
  0x21   :  { %v108_v9 = vpack.c.bf16 %v79_v7, %v78_v6  ;;  %v81_v11 = vld [vmem:[#allocation2 + $0x38] sm:$0xff]  ;;  %v82_v12 = vld [vmem:[#allocation2 + $0x40] sm:$0xff]  ;;  %v83_v13 = vld [vmem:[#allocation2 + $0x48] sm:$0xff] }
  0x22   :  { %2717 = vmatprep.mubr.msk.bf16.mxu0 %vm130_vm0, %v106_v4  ;;  %v109_v14 = vpack.c.bf16 %v81_v11, %v80_v10  ;;  %v110_v15 = vpack.c.bf16 %v83_v13, %v82_v12  ;;  %v84_v16 = vld [vmem:[#allocation2 + $0x50] sm:$0xff]  ;;  %v85_v17 = vld [vmem:[#allocation2 + $0x58] sm:$0xff]  ;;  %v86_v18 = vld [vmem:[#allocation2 + $0x60] sm:$0xff] }
  0x23   :  { %2718 = vmatmul.mubr.msk.bf16.vlgmr.msra.gmra.mxu0 %vm130_vm0, %v107_v8  ;;  %v87_v19 = vld [vmem:[#allocation2 + $0x68] sm:$0xff]  ;;  %v111_v20 = vpack.c.bf16 %v85_v17, %v84_v16  ;;  %v88_v22 = vld [vmem:[#allocation2 + $0x70] sm:$0xff]  ;;  %v89_v23 = vld [vmem:[#allocation2 + $0x78] sm:$0xff] }
  0x24   :  { %2721 = vmatprep.mubr.msk.bf16.mxu0 %vm130_vm0, %v108_v9  ;;  %v112_v21 = vpack.c.bf16 %v87_v19, %v86_v18  ;;  %v90_v24 = vld [vmem:[#allocation2 + $0x80] sm:$0xff]  ;;  %v91_v25 = vld [vmem:[#allocation2 + $0x88] sm:$0xff]  ;;  %v113_v26 = vpack.c.bf16 %v89_v23, %v88_v22  ;;  %v92_v28 = vld [vmem:[#allocation2 + $0x90] sm:$0xff] }
  0x25   :  { %v114_v27 = vpack.c.bf16 %v91_v25, %v90_v24  ;;  %v93_v29 = vld [vmem:[#allocation2 + $0x98] sm:$0xff]  ;;  %v94_v30 = vld [vmem:[#allocation2 + $0xa0] sm:$0xff]  ;;  %v95_v31 = vld [vmem:[#allocation2 + $0xa8] sm:$0xff] }
  0x26   :  { %v115_v32 = vpack.c.bf16 %v93_v29, %v92_v28  ;;  %v116_v33 = vpack.c.bf16 %v95_v31, %v94_v30  ;;  %v96_v34 = vld [vmem:[#allocation2 + $0xb0] sm:$0xff]  ;;  %v97_v35 = vld [vmem:[#allocation2 + $0xb8] sm:$0xff]  ;;  %v98_v36 = vld [vmem:[#allocation2 + $0xc0] sm:$0xff] }
  0x27   :  { %v99_v37 = vld [vmem:[#allocation2 + $0xc8] sm:$0xff]  ;;  %v117_v38 = vpack.c.bf16 %v97_v35, %v96_v34  ;;  %v100_v40 = vld [vmem:[#allocation2 + $0xd0] sm:$0xff]  ;;  %v101_v41 = vld [vmem:[#allocation2 + $0xd8] sm:$0xff] }
  0x28   :  { %v118_v39 = vpack.c.bf16 %v99_v37, %v98_v36  ;;  %v102_v42 = vld [vmem:[#allocation2 + $0xe0] sm:$0xff]  ;;  %v103_v43 = vld [vmem:[#allocation2 + $0xe8] sm:$0xff]  ;;  %v119_v44 = vpack.c.bf16 %v101_v41, %v100_v40  ;;  %v104_v46 = vld [vmem:[#allocation2 + $0xf0] sm:$0xff] }
  0x29   :  { %v120_v45 = vpack.c.bf16 %v103_v43, %v102_v42  ;;  %v105_v47 = vld [vmem:[#allocation2 + $0xf8] sm:$0xff]  ;;  %v3221_v49 = vld [vmem:[%s4671_s1] sm:$0xff]  ;;  %v3227_v54 = vld [vmem:[%s4671_s1 + $0x8] sm:$0xff] }
  0x2a   :  { %v121_v48 = vpack.c.bf16 %v105_v47, %v104_v46  ;;  %v2576_v51 = vld [vmem:[#allocation5 + $0x1] ss:$0 sm:$0xff]  ;;  %v2575_v55 = vld [vmem:[#allocation5] ss:$0 sm:$0xff]  ;;  %v2577_v6 = vld [vmem:[#allocation5 + $0x2] ss:$0 sm:$0xff] }
  0x2b   :  { %2722 = vmatmul.mubr.msk.bf16.gmra.mxu0 %vm130_vm0, %v109_v14  ;;  %v2578_v11 = vld [vmem:[#allocation5 + $0x3] ss:$0 sm:$0xff]  ;;  %v2579_v22 = vld [vmem:[#allocation5 + $0x4] ss:$0 sm:$0xff]  ;;  %v2581_v40 = vld [vmem:[#allocation5 + $0x6] ss:$0 sm:$0xff] }
  0x2c   :  { %2725 = vmatprep.mubr.msk.bf16.mxu0 %vm130_vm0, %v110_v15  ;;  %v2582_v46 = vld [vmem:[#allocation5 + $0x7] ss:$0 sm:$0xff] }
  0x33   :  { %2726 = vmatmul.mubr.msk.bf16.gmra.mxu0 %vm130_vm0, %v111_v20 }
  0x34   :  { %2729 = vmatprep.mubr.msk.bf16.mxu0 %vm130_vm0, %v112_v21 }
  0x3b   :  { %2730 = vmatmul.mubr.msk.bf16.gmra.mxu0 %vm130_vm0, %v113_v26 }
  0x3c   :  { %2733 = vmatprep.mubr.msk.bf16.mxu0 %vm130_vm0, %v114_v27  ;;  %v2580_v27 = vld [vmem:[#allocation5 + $0x5] ss:$0 sm:$0xff] }
  0x43   :  { %2734 = vmatmul.mubr.msk.bf16.gmra.mxu0 %vm130_vm0, %v115_v32 }
  0x44   :  { %2737 = vmatprep.mubr.msk.bf16.mxu0 %vm130_vm0, %v116_v33 }
  0x4b   :  { %2738 = vmatmul.mubr.msk.bf16.gmra.mxu0 %vm130_vm0, %v117_v38 }
  0x4c   :  { %2741 = vmatprep.mubr.msk.bf16.mxu0 %vm130_vm0, %v118_v39 }
  0x53   :  { %2742 = vmatmul.mubr.msk.bf16.gmra.mxu0 %vm130_vm0, %v119_v44 }
  0x54   :  { %2745 = vmatprep.mubr.msk.bf16.mxu0 %vm130_vm0, %v120_v45 }
  0x5b   :  { %2746 = vmatmul.mubr.msk.bf16.gmra.mxu0 %vm130_vm0, %v121_v48 }
  0xe3   :  { %v2719_v50 = vpop.f32.mrf.mxu0 }
  0xe4   :  { %v344_v52 = vadd.f32 %v2719_v50, %v3221_v49 }
  0xe5   :  { %v213_v53 = vpop.f32.mrf.mxu0 }
  0xe6   :  { %v342_v56 = vadd.f32 %v3221_v49, %v213_v53  ;;  %v3230_v57 = vadd.f32 %v2576_v51, %v344_v52 }
  0xe7   :  { %v2720_v58 = vpop.f32.mrf.mxu0 }
  0xe8   :  { %v345_v59 = vadd.f32 %v2720_v58, %v3227_v54  ;;  %v527_v60 = vsel %vm520_vm1, %v3230_v57, 0.0  ;;  %v3235_v61 = vadd.f32 %v2575_v55, %v342_v56 }
  0xe9   :  { %528 = vadd.xlane.f32.xlu1 %v527_v60  ;;  %v216_v62 = vpop.f32.mrf.mxu0 }
  0xea   :  { %v343_v63 = vadd.f32 %v3227_v54, %v216_v62  ;;  %v521_v0 = vsel %vm520_vm1, %v3235_v61, 0.0  ;;  %v3240_v1 = vadd.f32 %v2576_v51, %v345_v59  ;;  %v2583_v62 = vld [vmem:[#allocation5 + $0x8] ss:$0 sm:$0xff] }
  0xeb   :  { %522 = vadd.xlane.f32.xlu0 %v521_v0  ;;  %v2723_v2 = vpop.f32.mrf.mxu0 }
  0xec   :  { %v530_v3 = vsel %vm520_vm1, %v3240_v1, 0.0  ;;  %v3244_v4 = vadd.f32 %v2575_v55, %v343_v63  ;;  %v348_v7 = vadd.f32 %v2723_v2, %v3221_v49 }
  0xed   :  { %531 = vadd.xlane.f32.xlu1 %v530_v3  ;;  %v229_v5 = vpop.f32.mrf.mxu0 }
  0xee   :  { %v346_v8 = vadd.f32 %v3221_v49, %v229_v5  ;;  %v524_v9 = vsel %vm520_vm1, %v3244_v4, 0.0  ;;  %v3256_v17 = vadd.f32 %v2578_v11, %v348_v7 }
  0xef   :  { %525 = vadd.xlane.f32.xlu0 %v524_v9  ;;  %v2724_v10 = vpop.f32.mrf.mxu0 }
  0xf0   :  { %v3250_v12 = vadd.f32 %v2577_v6, %v346_v8  ;;  %v349_v14 = vadd.f32 %v2724_v10, %v3227_v54  ;;  %v539_v24 = vsel %vm520_vm1, %v3256_v17, 0.0 }
  0xf1   :  { %v232_v13 = vpop.f32.mrf.mxu0 }
  0xf2   :  { %v347_v15 = vadd.f32 %v3227_v54, %v232_v13  ;;  %v533_v16 = vsel %vm520_vm1, %v3250_v12, 0.0  ;;  %v3266_v26 = vadd.f32 %v2578_v11, %v349_v14 }
  0xf3   :  { %534 = vadd.xlane.f32.xlu0 %v533_v16  ;;  %v2727_v18 = vpop.f32.mrf.mxu0 }
  0xf4   :  { %v3258_v19 = vadd.f32 %v2577_v6, %v347_v15  ;;  %v352_v20 = vadd.f32 %v2727_v18, %v3221_v49  ;;  %v542_v34 = vsel %vm520_vm1, %v3266_v26, 0.0  ;;  %v2584_v6 = vld [vmem:[#allocation5 + $0x9] ss:$0 sm:$0xff] }
  0xf5   :  { %v245_v21 = vpop.f32.mrf.mxu0 }
  0xf6   :  { %v350_v23 = vadd.f32 %v3221_v49, %v245_v21  ;;  %v536_v25 = vsel %vm520_vm1, %v3258_v19, 0.0  ;;  %v3270_v31 = vadd.f32 %v2580_v27, %v352_v20  ;;  %v2585_v21 = vld [vmem:[#allocation5 + $0xa] ss:$0 sm:$0xff] }
  0xf7   :  { %540 = vadd.xlane.f32.xlu0 %v539_v24  ;;  %537 = vadd.xlane.f32.xlu1 %v536_v25  ;;  %v2728_v28 = vpop.f32.mrf.mxu0 }
  0xf8   :  { %v3268_v29 = vadd.f32 %v2579_v22, %v350_v23  ;;  %v353_v32 = vadd.f32 %v2728_v28, %v3227_v54  ;;  %v551_v39 = vsel %vm520_vm1, %v3270_v31, 0.0 }
  0xf9   :  { %v248_v30 = vpop.f32.mrf.mxu0 }
  0xfa   :  { %v351_v33 = vadd.f32 %v3227_v54, %v248_v30  ;;  %v545_v35 = vsel %vm520_vm1, %v3268_v29, 0.0  ;;  %v3286_v44 = vadd.f32 %v2580_v27, %v353_v32  ;;  %v2586_v27 = vld [vmem:[#allocation5 + $0xb] ss:$0 sm:$0xff] }
  0xfb   :  { %543 = vadd.xlane.f32.xlu1 %v542_v34  ;;  %546 = vadd.xlane.f32.xlu0 %v545_v35  ;;  %v2731_v36 = vpop.f32.mrf.mxu0 }
  0xfc   :  { %v3278_v37 = vadd.f32 %v2579_v22, %v351_v33  ;;  %v356_v41 = vadd.f32 %v2731_v36, %v3221_v49  ;;  %v554_v52 = vsel %vm520_vm1, %v3286_v44, 0.0 }
  0xfd   :  { %v261_v38 = vpop.f32.mrf.mxu0 }
  0xfe   :  { %v354_v42 = vadd.f32 %v3221_v49, %v261_v38  ;;  %v548_v43 = vsel %vm520_vm1, %v3278_v37, 0.0  ;;  %v3296_v55 = vadd.f32 %v2582_v46, %v356_v41 }
  0xff   :  { %552 = vadd.xlane.f32.xlu0 %v551_v39  ;;  %549 = vadd.xlane.f32.xlu1 %v548_v43  ;;  %v2732_v45 = vpop.f32.mrf.mxu0  ;;  %v2587_v43 = vld [vmem:[#allocation5 + $0xc] ss:$0 sm:$0xff] }
 0x100   :  { %v3288_v47 = vadd.f32 %v2581_v40, %v354_v42  ;;  %v357_v48 = vadd.f32 %v2732_v45, %v3227_v54  ;;  %v563_v2 = vsel %vm520_vm1, %v3296_v55, 0.0 }
 0x101   :  { %v264_v50 = vpop.f32.mrf.mxu0 }
 0x102   :  { %v355_v51 = vadd.f32 %v3227_v54, %v264_v50  ;;  %v557_v53 = vsel %vm520_vm1, %v3288_v47, 0.0  ;;  %v3300_v60 = vadd.f32 %v2582_v46, %v357_v48 }
 0x103   :  { %555 = vadd.xlane.f32.xlu1 %v554_v52  ;;  %558 = vadd.xlane.f32.xlu0 %v557_v53  ;;  %v2735_v56 = vpop.f32.mrf.mxu0  ;;  %v2588_v52 = vld [vmem:[#allocation5 + $0xd] ss:$0 sm:$0xff] }
 0x104   :  { %v3298_v58 = vadd.f32 %v2581_v40, %v355_v51  ;;  %v360_v63 = vadd.f32 %v2735_v56, %v3221_v49  ;;  %v566_v9 = vsel %vm520_vm1, %v3300_v60, 0.0 }
 0x105   :  { %v277_v59 = vpop.f32.mrf.mxu0 }
 0x106   :  { %v358_v0 = vadd.f32 %v3221_v49, %v277_v59  ;;  %v560_v3 = vsel %vm520_vm1, %v3298_v58, 0.0  ;;  %v3316_v14 = vadd.f32 %v2584_v6, %v360_v63 }
 0x107   :  { %564 = vadd.xlane.f32.xlu0 %v563_v2  ;;  %561 = vadd.xlane.f32.xlu1 %v560_v3  ;;  %v2736_v5 = vpop.f32.mrf.mxu0 }
 0x108   :  { %v3308_v7 = vadd.f32 %v2583_v62, %v358_v0  ;;  %v361_v10 = vadd.f32 %v2736_v5, %v3227_v54  ;;  %v575_v23 = vsel %vm520_vm1, %v3316_v14, 0.0 }
 0x109   :  { %v280_v8 = vpop.f32.mrf.mxu0 }
 0x10a   :  { %v359_v11 = vadd.f32 %v3227_v54, %v280_v8  ;;  %v569_v13 = vsel %vm520_vm1, %v3308_v7, 0.0  ;;  %v3326_v25 = vadd.f32 %v2584_v6, %v361_v10 }
 0x10b   :  { %567 = vadd.xlane.f32.xlu1 %v566_v9  ;;  %570 = vadd.xlane.f32.xlu0 %v569_v13  ;;  %v2739_v15 = vpop.f32.mrf.mxu0  ;;  %v2589_v9 = vld [vmem:[#allocation5 + $0xe] ss:$0 sm:$0xff] }
 0x10c   :  { %v3318_v16 = vadd.f32 %v2583_v62, %v359_v11  ;;  %v364_v18 = vadd.f32 %v2739_v15, %v3221_v49  ;;  %v578_v36 = vsel %vm520_vm1, %v3326_v25, 0.0 }
 0x10d   :  { %v293_v20 = vpop.f32.mrf.mxu0 }
 0x10e   :  { %v362_v22 = vadd.f32 %v3221_v49, %v293_v20  ;;  %v572_v24 = vsel %vm520_vm1, %v3318_v16, 0.0  ;;  %v3330_v33 = vadd.f32 %v2586_v27, %v364_v18  ;;  %v2590_v20 = vld [vmem:[#allocation5 + $0xf] ss:$0 sm:$0xff] }
 0x10f   :  { %576 = vadd.xlane.f32.xlu0 %v575_v23  ;;  %573 = vadd.xlane.f32.xlu1 %v572_v24  ;;  %v2740_v28 = vpop.f32.mrf.mxu0 }
 0x110   :  { %v3328_v30 = vadd.f32 %v2585_v21, %v362_v22  ;;  %v365_v34 = vadd.f32 %v2740_v28, %v3227_v54  ;;  %v587_v42 = vsel %vm520_vm1, %v3330_v33, 0.0 }
 0x111   :  { %v296_v32 = vpop.f32.mrf.mxu0 }
 0x112   :  { %v363_v35 = vadd.f32 %v3227_v54, %v296_v32  ;;  %v581_v38 = vsel %vm520_vm1, %v3328_v30, 0.0  ;;  %v3346_v50 = vadd.f32 %v2586_v27, %v365_v34 }
 0x113   :  { %579 = vadd.xlane.f32.xlu1 %v578_v36  ;;  %582 = vadd.xlane.f32.xlu0 %v581_v38  ;;  %v2743_v39 = vpop.f32.mrf.mxu0 }
 0x114   :  { %v3338_v40 = vadd.f32 %v2585_v21, %v363_v35  ;;  %v368_v45 = vadd.f32 %v2743_v39, %v3221_v49  ;;  %v590_v63 = vsel %vm520_vm1, %v3346_v50, 0.0 }
 0x115   :  { %v309_v41 = vpop.f32.mrf.mxu0 }
 0x116   :  { %v366_v46 = vadd.f32 %v3221_v49, %v309_v41  ;;  %v584_v48 = vsel %vm520_vm1, %v3338_v40, 0.0  ;;  %v3356_v2 = vadd.f32 %v2588_v52, %v368_v45 }
 0x117   :  { %588 = vadd.xlane.f32.xlu0 %v587_v42  ;;  %585 = vadd.xlane.f32.xlu1 %v584_v48  ;;  %v2744_v51 = vpop.f32.mrf.mxu0 }
 0x118   :  { %v3348_v53 = vadd.f32 %v2587_v43, %v366_v46  ;;  %v369_v56 = vadd.f32 %v2744_v51, %v3227_v54  ;;  %v599_v13 = vsel %vm520_vm1, %v3356_v2, 0.0 }
 0x119   :  { %v312_v59 = vpop.f32.mrf.mxu0 }
 0x11a   :  { %v367_v62 = vadd.f32 %v3227_v54, %v312_v59  ;;  %v593_v0 = vsel %vm520_vm1, %v3348_v53, 0.0  ;;  %v3360_v8 = vadd.f32 %v2588_v52, %v369_v56 }
 0x11b   :  { %591 = vadd.xlane.f32.xlu1 %v590_v63  ;;  %594 = vadd.xlane.f32.xlu0 %v593_v0  ;;  %v2747_v3 = vpop.f32.mrf.mxu0 }
 0x11c   :  { %v3358_v5 = vadd.f32 %v2587_v43, %v367_v62  ;;  %v372_v10 = vadd.f32 %v2747_v3, %v3221_v49  ;;  %v602_v23 = vsel %vm520_vm1, %v3360_v8, 0.0 }
 0x11d   :  { %v325_v6 = vpop.f32.mrf.mxu0 }
 0x11e   :  { %v370_v11 = vadd.f32 %v3221_v49, %v325_v6  ;;  %v596_v15 = vsel %vm520_vm1, %v3358_v5, 0.0  ;;  %v3376_v28 = vadd.f32 %v2590_v20, %v372_v10 }
 0x11f   :  { %600 = vadd.xlane.f32.xlu0 %v599_v13  ;;  %597 = vadd.xlane.f32.xlu1 %v596_v15  ;;  %v2748_v18 = vpop.f32.mrf.mxu0 }
 0x120   :  { %v3368_v21 = vadd.f32 %v2589_v9, %v370_v11  ;;  %v373_v24 = vadd.f32 %v2748_v18, %v3227_v54  ;;  %v611_v34 = vsel %vm520_vm1, %v3376_v28, 0.0 }
 0x121   :  { %v328_v22 = vpop.f32.mrf.mxu0 }
 0x122   :  { %v371_v49 = vadd.f32 %v3227_v54, %v328_v22  ;;  %v605_v27 = vsel %vm520_vm1, %v3368_v21, 0.0  ;;  %v3384_v36 = vadd.f32 %v2590_v20, %v373_v24 }
 0x123   :  { %603 = vadd.xlane.f32.xlu1 %v602_v23  ;;  %606 = vadd.xlane.f32.xlu0 %v605_v27 }
 0x124   :  { %v3378_v32 = vadd.f32 %v2589_v9, %v371_v49  ;;  %v614_v54 = vsel %vm520_vm1, %v3384_v36, 0.0 }
 0x126   :  { %v608_v35 = vsel %vm520_vm1, %v3378_v32, 0.0 }
 0x127   :  { %612 = vadd.xlane.f32.xlu0 %v611_v34  ;;  %609 = vadd.xlane.f32.xlu1 %v608_v35 }
 0x12b   :  { %615 = vadd.xlane.f32.xlu1 %v614_v54 }
 0x172   :  { %v529_v38 = vpop.xlane.xlu1 %528 }
 0x173   :  { %v620_v39 = vmul.f32 0.03125, %v529_v38 }
 0x174   :  { %v523_v41 = vpop.xlane.xlu0 %522 }
 0x175   :  { %v618_v42 = vmul.f32 0.03125, %v523_v41  ;;  %v3389_v45 = vsub.f32 %v3230_v57, %v620_v39 }
 0x176   :  { %v532_v43 = vpop.xlane.xlu1 %531 }
 0x177   :  { %v3392_v46 = vsub.f32 %v3235_v61, %v618_v42  ;;  %v621_v48 = vmul.f32 0.03125, %v532_v43  ;;  %v684_v57 = vmul.f32 %v3389_v45, %v3389_v45 }
 0x178   :  { %v526_v51 = vpop.xlane.xlu0 %525 }
 0x179   :  { %v619_v52 = vmul.f32 0.03125, %v526_v51  ;;  %v682_v56 = vmul.f32 %v3392_v46, %v3392_v46  ;;  %v3397_v59 = vsub.f32 %v3240_v1, %v621_v48  ;;  %v720_v1 = vsel %vm520_vm1, %v684_v57, 0.0 }
 0x17b   :  { %v3400_v62 = vsub.f32 %v3244_v4, %v619_v52  ;;  %v714_v63 = vsel %vm520_vm1, %v682_v56, 0.0  ;;  %v685_v4 = vmul.f32 %v3397_v59, %v3397_v59 }
 0x17c   :  { %v535_v0 = vpop.xlane.xlu0 %534  ;;  %715 = vadd.xlane.f32.xlu0 %v714_v63 }
 0x17d   :  { %v622_v61 = vmul.f32 0.03125, %v535_v0  ;;  %v683_v3 = vmul.f32 %v3400_v62, %v3400_v62  ;;  %v723_v23 = vsel %vm520_vm1, %v685_v4, 0.0 }
 0x17f   :  { %v3408_v6 = vsub.f32 %v3250_v12, %v622_v61  ;;  %v717_v9 = vsel %vm520_vm1, %v683_v3, 0.0 }
 0x180   :  { %v541_v10 = vpop.xlane.xlu0 %540  ;;  %v538_v11 = vpop.xlane.xlu1 %537  ;;  %721 = vadd.xlane.f32.xlu0 %v720_v1  ;;  %718 = vadd.xlane.f32.xlu1 %v717_v9 }
 0x181   :  { %v624_v13 = vmul.f32 0.03125, %v541_v10  ;;  %v623_v15 = vmul.f32 0.03125, %v538_v11  ;;  %v686_v18 = vmul.f32 %v3408_v6, %v3408_v6 }
 0x183   :  { %v3417_v20 = vsub.f32 %v3256_v17, %v624_v13  ;;  %v3420_v12 = vsub.f32 %v3258_v19, %v623_v15  ;;  %v726_v22 = vsel %vm520_vm1, %v686_v18, 0.0 }
 0x184   :  { %v544_v24 = vpop.xlane.xlu1 %543  ;;  %v547_v49 = vpop.xlane.xlu0 %546  ;;  %727 = vadd.xlane.f32.xlu0 %v726_v22  ;;  %724 = vadd.xlane.f32.xlu1 %v723_v23 }
 0x185   :  { %v625_v27 = vmul.f32 0.03125, %v544_v24  ;;  %v626_v34 = vmul.f32 0.03125, %v547_v49  ;;  %v688_v35 = vmul.f32 %v3417_v20, %v3417_v20  ;;  %v687_v17 = vmul.f32 %v3420_v12, %v3420_v12 }
 0x187   :  { %v3429_v54 = vsub.f32 %v3266_v26, %v625_v27  ;;  %v3432_v19 = vsub.f32 %v3268_v29, %v626_v34  ;;  %v732_v38 = vsel %vm520_vm1, %v688_v35, 0.0  ;;  %v729_v39 = vsel %vm520_vm1, %v687_v17, 0.0 }
 0x188   :  { %v553_v41 = vpop.xlane.xlu0 %552  ;;  %v550_v42 = vpop.xlane.xlu1 %549  ;;  %733 = vadd.xlane.f32.xlu0 %v732_v38  ;;  %730 = vadd.xlane.f32.xlu1 %v729_v39 }
 0x189   :  { %v628_v43 = vmul.f32 0.03125, %v553_v41  ;;  %v627_v48 = vmul.f32 0.03125, %v550_v42  ;;  %v690_v51 = vmul.f32 %v3432_v19, %v3432_v19  ;;  %v689_v26 = vmul.f32 %v3429_v54, %v3429_v54 }
 0x18b   :  { %v3441_v52 = vsub.f32 %v3270_v31, %v628_v43  ;;  %v3444_v29 = vsub.f32 %v3278_v37, %v627_v48  ;;  %v738_v56 = vsel %vm520_vm1, %v690_v51, 0.0  ;;  %v735_v63 = vsel %vm520_vm1, %v689_v26, 0.0 }
 0x18c   :  { %v556_v57 = vpop.xlane.xlu1 %555  ;;  %v559_v0 = vpop.xlane.xlu0 %558  ;;  %739 = vadd.xlane.f32.xlu0 %v738_v56  ;;  %736 = vadd.xlane.f32.xlu1 %v735_v63 }
 0x18d   :  { %v629_v61 = vmul.f32 0.03125, %v556_v57  ;;  %v630_v3 = vmul.f32 0.03125, %v559_v0  ;;  %v692_v1 = vmul.f32 %v3441_v52, %v3441_v52  ;;  %v691_v31 = vmul.f32 %v3444_v29, %v3444_v29 }
 0x18f   :  { %v3453_v9 = vsub.f32 %v3286_v44, %v629_v61  ;;  %v3456_v37 = vsub.f32 %v3288_v47, %v630_v3  ;;  %v744_v4 = vsel %vm520_vm1, %v692_v1, 0.0  ;;  %v741_v10 = vsel %vm520_vm1, %v691_v31, 0.0 }
 0x190   :  { %v565_v11 = vpop.xlane.xlu0 %564  ;;  %v562_v13 = vpop.xlane.xlu1 %561  ;;  %745 = vadd.xlane.f32.xlu0 %v744_v4  ;;  %742 = vadd.xlane.f32.xlu1 %v741_v10 }
 0x191   :  { %v632_v15 = vmul.f32 0.03125, %v565_v11  ;;  %v631_v18 = vmul.f32 0.03125, %v562_v13  ;;  %v694_v22 = vmul.f32 %v3456_v37, %v3456_v37  ;;  %v693_v44 = vmul.f32 %v3453_v9, %v3453_v9 }
 0x193   :  { %v3465_v23 = vsub.f32 %v3296_v55, %v632_v15  ;;  %v3468_v47 = vsub.f32 %v3298_v58, %v631_v18  ;;  %v750_v24 = vsel %vm520_vm1, %v694_v22, 0.0  ;;  %v747_v49 = vsel %vm520_vm1, %v693_v44, 0.0 }
 0x194   :  { %v568_v27 = vpop.xlane.xlu1 %567  ;;  %v571_v34 = vpop.xlane.xlu0 %570  ;;  %751 = vadd.xlane.f32.xlu0 %v750_v24  ;;  %748 = vadd.xlane.f32.xlu1 %v747_v49 }
 0x195   :  { %v633_v35 = vmul.f32 0.03125, %v568_v27  ;;  %v634_v17 = vmul.f32 0.03125, %v571_v34  ;;  %v696_v38 = vmul.f32 %v3465_v23, %v3465_v23  ;;  %v695_v55 = vmul.f32 %v3468_v47, %v3468_v47 }
 0x197   :  { %v3477_v39 = vsub.f32 %v3300_v60, %v633_v35  ;;  %v3480_v58 = vsub.f32 %v3308_v7, %v634_v17  ;;  %v756_v41 = vsel %vm520_vm1, %v696_v38, 0.0  ;;  %v753_v42 = vsel %vm520_vm1, %v695_v55, 0.0 }
 0x198   :  { %v577_v43 = vpop.xlane.xlu0 %576  ;;  %v574_v48 = vpop.xlane.xlu1 %573  ;;  %757 = vadd.xlane.f32.xlu0 %v756_v41  ;;  %754 = vadd.xlane.f32.xlu1 %v753_v42 }
 0x199   :  { %v636_v51 = vmul.f32 0.03125, %v577_v43  ;;  %v635_v26 = vmul.f32 0.03125, %v574_v48  ;;  %v698_v56 = vmul.f32 %v3480_v58, %v3480_v58  ;;  %v697_v60 = vmul.f32 %v3477_v39, %v3477_v39 }
 0x19b   :  { %v3489_v63 = vsub.f32 %v3316_v14, %v636_v51  ;;  %v3492_v7 = vsub.f32 %v3318_v16, %v635_v26  ;;  %v762_v57 = vsel %vm520_vm1, %v698_v56, 0.0  ;;  %v759_v0 = vsel %vm520_vm1, %v697_v60, 0.0 }
 0x19c   :  { %v580_v61 = vpop.xlane.xlu1 %579  ;;  %v583_v3 = vpop.xlane.xlu0 %582  ;;  %763 = vadd.xlane.f32.xlu0 %v762_v57  ;;  %760 = vadd.xlane.f32.xlu1 %v759_v0 }
 0x19d   :  { %v637_v1 = vmul.f32 0.03125, %v580_v61  ;;  %v638_v31 = vmul.f32 0.03125, %v583_v3  ;;  %v700_v4 = vmul.f32 %v3489_v63, %v3489_v63  ;;  %v699_v14 = vmul.f32 %v3492_v7, %v3492_v7 }
 0x19f   :  { %v3501_v10 = vsub.f32 %v3326_v25, %v637_v1  ;;  %v3504_v16 = vsub.f32 %v3328_v30, %v638_v31  ;;  %v768_v11 = vsel %vm520_vm1, %v700_v4, 0.0  ;;  %v765_v13 = vsel %vm520_vm1, %v699_v14, 0.0  ;;  %v2796_v30 = vld [vmem:[%s4676_s6 + $0x8] sm:$0xff]  }
 0x1a0   :  { %v589_v15 = vpop.xlane.xlu0 %588  ;;  %v586_v18 = vpop.xlane.xlu1 %585  ;;  %769 = vadd.xlane.f32.xlu0 %v768_v11  ;;  %766 = vadd.xlane.f32.xlu1 %v765_v13 }
 0x1a1   :  { %v640_v22 = vmul.f32 0.03125, %v589_v15  ;;  %v639_v44 = vmul.f32 0.03125, %v586_v18  ;;  %v702_v24 = vmul.f32 %v3504_v16, %v3504_v16  ;;  %v701_v25 = vmul.f32 %v3501_v10, %v3501_v10  ;;  %2749 = vmatprep.subr.bf16.mxu1 %v2796_v30 }
 0x1a2   :  { %2750 = vmatpush3.bf16.msra.mxu1 %v2796_v30 }
 0x1a3   :  { %v3516_v49 = vsub.f32 %v3330_v33, %v640_v22  ;;  %v3519_v27 = vsub.f32 %v3338_v40, %v639_v44  ;;  %v774_v34 = vsel %vm520_vm1, %v702_v24, 0.0  ;;  %v771_v35 = vsel %vm520_vm1, %v701_v25, 0.0  ;;  %v2797_v40 = vld [vmem:[%s4676_s6] sm:$0xff]  }
 0x1a4   :  { %v592_v17 = vpop.xlane.xlu1 %591  ;;  %v595_v38 = vpop.xlane.xlu0 %594  ;;  %775 = vadd.xlane.f32.xlu0 %v774_v34  ;;  %772 = vadd.xlane.f32.xlu1 %v771_v35 }
 0x1a5   :  { %v641_v55 = vmul.f32 0.03125, %v592_v17  ;;  %v642_v41 = vmul.f32 0.03125, %v595_v38  ;;  %v704_v42 = vmul.f32 %v3516_v49, %v3516_v49  ;;  %v703_v33 = vmul.f32 %v3519_v27, %v3519_v27  ;;  %2751 = vmatprep.subr.bf16.mxu1 %v2797_v40 }
 0x1a6   :  { %2752 = vmatpush3.bf16.msra.mxu1 %v2797_v40 }
 0x1a7   :  { %v3531_v43 = vsub.f32 %v3346_v50, %v641_v55  ;;  %v3534_v48 = vsub.f32 %v3348_v53, %v642_v41  ;;  %v780_v51 = vsel %vm520_vm1, %v704_v42, 0.0  ;;  %v777_v26 = vsel %vm520_vm1, %v703_v33, 0.0 }
 0x1a8   :  { %v601_v56 = vpop.xlane.xlu0 %600  ;;  %v598_v60 = vpop.xlane.xlu1 %597  ;;  %781 = vadd.xlane.f32.xlu0 %v780_v51  ;;  %778 = vadd.xlane.f32.xlu1 %v777_v26 }
 0x1a9   :  { %v644_v57 = vmul.f32 0.03125, %v601_v56  ;;  %v643_v0 = vmul.f32 0.03125, %v598_v60  ;;  %v706_v61 = vmul.f32 %v3534_v48, %v3534_v48  ;;  %v705_v50 = vmul.f32 %v3531_v43, %v3531_v43 }
 0x1ab   :  { %v3543_v53 = vsub.f32 %v3356_v2, %v644_v57  ;;  %v3546_v3 = vsub.f32 %v3358_v5, %v643_v0  ;;  %v786_v1 = vsel %vm520_vm1, %v706_v61, 0.0  ;;  %v783_v31 = vsel %vm520_vm1, %v705_v50, 0.0 }
 0x1ac   :  { %v604_v4 = vpop.xlane.xlu1 %603  ;;  %787 = vadd.xlane.f32.xlu0 %v786_v1  ;;  %v607_v14 = vpop.xlane.xlu0 %606  ;;  %784 = vadd.xlane.f32.xlu1 %v783_v31 }
 0x1ad   :  { %v645_v11 = vmul.f32 0.03125, %v604_v4  ;;  %v646_v13 = vmul.f32 0.03125, %v607_v14  ;;  %v708_v15 = vmul.f32 %v3543_v53, %v3543_v53  ;;  %v707_v2 = vmul.f32 %v3546_v3, %v3546_v3 }
 0x1af   :  { %v3555_v18 = vsub.f32 %v3360_v8, %v645_v11  ;;  %v3558_v5 = vsub.f32 %v3368_v21, %v646_v13  ;;  %v792_v22 = vsel %vm520_vm1, %v708_v15, 0.0  ;;  %v789_v44 = vsel %vm520_vm1, %v707_v2, 0.0 }
 0x1b0   :  { %793 = vadd.xlane.f32.xlu0 %v792_v22  ;;  %v613_v24 = vpop.xlane.xlu0 %612  ;;  %790 = vadd.xlane.f32.xlu1 %v789_v44  ;;  %v610_v25 = vpop.xlane.xlu1 %609 }
 0x1b1   :  { %v648_v30 = vmul.f32 0.03125, %v613_v24  ;;  %v647_v34 = vmul.f32 0.03125, %v610_v25  ;;  %v710_v35 = vmul.f32 %v3558_v5, %v3558_v5  ;;  %v709_v8 = vmul.f32 %v3555_v18, %v3555_v18 }
 0x1b3   :  { %v3567_v17 = vsub.f32 %v3376_v28, %v648_v30  ;;  %v3570_v21 = vsub.f32 %v3378_v32, %v647_v34  ;;  %v798_v38 = vsel %vm520_vm1, %v710_v35, 0.0  ;;  %v795_v55 = vsel %vm520_vm1, %v709_v8, 0.0 }
 0x1b4   :  { %799 = vadd.xlane.f32.xlu0 %v798_v38  ;;  %796 = vadd.xlane.f32.xlu1 %v795_v55  ;;  %v616_v41 = vpop.xlane.xlu1 %615 }
 0x1b5   :  { %v649_v42 = vmul.f32 0.03125, %v616_v41  ;;  %v712_v33 = vmul.f32 %v3567_v17, %v3567_v17  ;;  %v711_v40 = vmul.f32 %v3570_v21, %v3570_v21 }
 0x1b7   :  { %v3579_v28 = vsub.f32 %v3384_v36, %v649_v42  ;;  %v804_v32 = vsel %vm520_vm1, %v712_v33, 0.0  ;;  %v801_v51 = vsel %vm520_vm1, %v711_v40, 0.0  ;;  %v3589_v33 = vld [vmem:[%s4674_s4] ss:$0 sm:$0xff] }
 0x1b8   :  { %805 = vadd.xlane.f32.xlu0 %v804_v32  ;;  %802 = vadd.xlane.f32.xlu1 %v801_v51 }
 0x1b9   :  { %v713_v26 = vmul.f32 %v3579_v28, %v3579_v28 }
 0x1bb   :  { %v807_v56 = vsel %vm520_vm1, %v713_v26, 0.0 }
 0x1bc   :  { %808 = vadd.xlane.f32.xlu1 %v807_v56 }
 0x205   :  { %v716_v60 = vpop.xlane.xlu0 %715 }
 0x206   :  { %v810_v57 = vmul.f32 0.03125, %v716_v60  ;;  %v3595_v60 = vld [vmem:[%s4675_s5] ss:$0 sm:$0xff] }
 0x208   :  { %v842_v0 = vadd.f32 1e-05, %v810_v57 }
 0x209   :  { %v722_v61 = vpop.xlane.xlu0 %721  ;;  %v719_v50 = vpop.xlane.xlu1 %718 }
 0x20a   :  { %2798 = vrsqrt.f32 %v842_v0  ;;  %v812_v36 = vmul.f32 0.03125, %v722_v61  ;;  %v811_v1 = vmul.f32 0.03125, %v719_v50 }
 0x20c   :  { %v844_v31 = vadd.f32 1e-05, %v812_v36  ;;  %v843_v4 = vadd.f32 1e-05, %v811_v1 }
 0x20d   :  { %v728_v14 = vpop.xlane.xlu0 %727  ;;  %v725_v11 = vpop.xlane.xlu1 %724 }
 0x20e   :  { %2800 = vrsqrt.f32 %v844_v31  ;;  %v814_v13 = vmul.f32 0.03125, %v728_v14  ;;  %v813_v15 = vmul.f32 0.03125, %v725_v11 }
 0x20f   :  { %2802 = vrsqrt.f32 %v843_v4 }
 0x210   :  { %v846_v2 = vadd.f32 1e-05, %v814_v13  ;;  %v845_v22 = vadd.f32 1e-05, %v813_v15 }
 0x211   :  { %v734_v44 = vpop.xlane.xlu0 %733  ;;  %v731_v24 = vpop.xlane.xlu1 %730 }
 0x212   :  { %2804 = vrsqrt.f32 %v846_v2  ;;  %v816_v25 = vmul.f32 0.03125, %v734_v44  ;;  %v815_v30 = vmul.f32 0.03125, %v731_v24 }
 0x213   :  { %2806 = vrsqrt.f32 %v845_v22 }
 0x214   :  { %v848_v34 = vadd.f32 1e-05, %v816_v25  ;;  %v847_v35 = vadd.f32 1e-05, %v815_v30 }
 0x215   :  { %v740_v8 = vpop.xlane.xlu0 %739  ;;  %v737_v38 = vpop.xlane.xlu1 %736 }
 0x216   :  { %2808 = vrsqrt.f32 %v848_v34  ;;  %v818_v55 = vmul.f32 0.03125, %v740_v8  ;;  %v817_v41 = vmul.f32 0.03125, %v737_v38 }
 0x217   :  { %v2799_v42 = vpop.eup %2798  ;;  %2810 = vrsqrt.f32 %v847_v35 }
 0x218   :  { %v850_v40 = vadd.f32 1e-05, %v818_v55  ;;  %v849_v32 = vadd.f32 1e-05, %v817_v41  ;;  %v906_v51 = vmul.f32 %v2799_v42, %v3392_v46 }
 0x219   :  { %v746_v26 = vpop.xlane.xlu0 %745  ;;  %v743_v56 = vpop.xlane.xlu1 %742 }
 0x21a   :  { %2812 = vrsqrt.f32 %v850_v40  ;;  %v820_v57 = vmul.f32 0.03125, %v746_v26  ;;  %v819_v0 = vmul.f32 0.03125, %v743_v56  ;;  %v944_v61 = vmul.f32 %v3589_v33, %v906_v51 }
 0x21b   :  { %v2801_v50 = vpop.eup %2800  ;;  %2814 = vrsqrt.f32 %v849_v32 }
 0x21c   :  { %v2803_v36 = vpop.eup %2802  ;;  %v852_v1 = vadd.f32 1e-05, %v820_v57  ;;  %v851_v31 = vadd.f32 1e-05, %v819_v0  ;;  %v982_v4 = vadd.f32 %v3595_v60, %v944_v61  ;;  %v908_v46 = vmul.f32 %v2801_v50, %v3389_v45 }
 0x21d   :  { %v752_v14 = vpop.xlane.xlu0 %751  ;;  %v749_v11 = vpop.xlane.xlu1 %748  ;;  %v907_v13 = vmul.f32 %v2803_v36, %v3400_v62 }
 0x21e   :  { %2816 = vrsqrt.f32 %v852_v1  ;;  %v822_v15 = vmul.f32 0.03125, %v752_v14  ;;  %v821_v2 = vmul.f32 0.03125, %v749_v11  ;;  %v1014_v22 = vmax.f32 %v982_v4, 0.0 }
 0x21f   :  { %v2805_v44 = vpop.eup %2804  ;;  %2818 = vrsqrt.f32 %v851_v31  ;;  %v945_v24 = vmul.f32 %v3589_v33, %v907_v13  ;;  %v946_v25 = vmul.f32 %v3589_v33, %v908_v46 }
 0x220   :  { %v2807_v30 = vpop.eup %2806  ;;  %v854_v34 = vadd.f32 1e-05, %v822_v15  ;;  %v853_v35 = vadd.f32 1e-05, %v821_v2  ;;  %v2648_v8 = vpack.c.bf16 %v1014_v22, %v1014_v22  ;;  %v910_v45 = vmul.f32 %v2805_v44, %v3408_v6 }
 0x221   :  { %v758_v38 = vpop.xlane.xlu0 %757  ;;  %v755_v55 = vpop.xlane.xlu1 %754  ;;  %v983_v62 = vadd.f32 %v3595_v60, %v945_v24  ;;  %v909_v41 = vmul.f32 %v2807_v30, %v3397_v59  ;;  %v984_v42 = vadd.f32 %v3595_v60, %v946_v25 }
 0x222   :  { %2820 = vrsqrt.f32 %v854_v34  ;;  %v824_v40 = vmul.f32 0.03125, %v758_v38  ;;  %v823_v32 = vmul.f32 0.03125, %v755_v55  ;;  %1175 = vst.msk [vmem:[#allocation7] sm:$0xf] %vm1174_vm2, %v2648_v8  ;;  %v948_v51 = vmul.f32 %v3589_v33, %v910_v45 }
 0x223   :  { %v2809_v26 = vpop.eup %2808  ;;  %2822 = vrsqrt.f32 %v853_v35  ;;  %v1015_v56 = vmax.f32 %v983_v62, 0.0  ;;  %v947_v6 = vmul.f32 %v3589_v33, %v909_v41  ;;  %v1016_v57 = vmax.f32 %v984_v42, 0.0 }
 0x224   :  { %v2811_v0 = vpop.eup %2810  ;;  %v856_v61 = vadd.f32 1e-05, %v824_v40  ;;  %v855_v50 = vadd.f32 1e-05, %v823_v32  ;;  %v986_v59 = vadd.f32 %v3595_v60, %v948_v51  ;;  %v912_v36 = vmul.f32 %v2809_v26, %v3417_v20 }
 0x225   :  { %v764_v1 = vpop.xlane.xlu0 %763  ;;  %v761_v31 = vpop.xlane.xlu1 %760  ;;  %v1046_v4 = vpack.c.bf16 %v1015_v56, %v1014_v22  ;;  %v2649_v46 = vpack.c.bf16 %v1015_v56, %v1015_v56  ;;  %v985_v14 = vadd.f32 %v3595_v60, %v947_v6  ;;  %v2650_v11 = vpack.c.bf16 %v1016_v57, %v1016_v57 }
 0x226   :  { %2824 = vrsqrt.f32 %v856_v61  ;;  %v826_v13 = vmul.f32 0.03125, %v764_v1  ;;  %v825_v15 = vmul.f32 0.03125, %v761_v31  ;;  %v911_v2 = vmul.f32 %v2811_v0, %v3420_v12 }
 0x227   :  { %v2813_v44 = vpop.eup %2812  ;;  %2826 = vrsqrt.f32 %v855_v50  ;;  %1176 = vst.msk [vmem:[#allocation7 + $0x4] sm:$0xf] %vm1174_vm2, %v2649_v46  ;;  %2753 = vmatprep.mubr.msk.bf16.mxu1 %vm520_vm1, %v1046_v4  ;;  %v1017_v24 = vmax.f32 %v985_v14, 0.0  ;;  %1177 = vst.msk [vmem:[#allocation7 + $0x8] sm:$0xf] %vm1174_vm2, %v2650_v11  ;;  %v1018_v20 = vmax.f32 %v986_v59, 0.0  ;;  %v950_v22 = vmul.f32 %v3589_v33, %v912_v36 }
 0x228   :  { %v2815_v25 = vpop.eup %2814  ;;  %v858_v30 = vadd.f32 1e-05, %v826_v13  ;;  %v857_v34 = vadd.f32 1e-05, %v825_v15  ;;  %v949_v35 = vmul.f32 %v3589_v33, %v911_v2  ;;  %v914_v8 = vmul.f32 %v2813_v44, %v3432_v19 }
 0x229   :  { %v770_v12 = vpop.xlane.xlu0 %769  ;;  %v767_v45 = vpop.xlane.xlu1 %766  ;;  %v1047_v38 = vpack.c.bf16 %v1017_v24, %v1016_v57  ;;  %v2651_v55 = vpack.c.bf16 %v1017_v24, %v1017_v24  ;;  %v2652_v62 = vpack.c.bf16 %v1018_v20, %v1018_v20  ;;  %v913_v41 = vmul.f32 %v2815_v25, %v3429_v54 }
 0x22a   :  { %2828 = vrsqrt.f32 %v858_v30  ;;  %v828_v42 = vmul.f32 0.03125, %v770_v12  ;;  %v827_v40 = vmul.f32 0.03125, %v767_v45  ;;  %v987_v32 = vadd.f32 %v3595_v60, %v949_v35 }
 0x22b   :  { %v2817_v51 = vpop.eup %2816  ;;  %2830 = vrsqrt.f32 %v857_v34  ;;  %1178 = vst.msk [vmem:[#allocation7 + $0xc] sm:$0xf] %vm1174_vm2, %v2651_v55  ;;  %2754 = vmatmul.mubr.msk.bf16.vlgmr.msra.gmra.mxu1 %vm520_vm1, %v1047_v38  ;;  %1179 = vst.msk [vmem:[#allocation7 + $0x10] sm:$0xf] %vm1174_vm2, %v2652_v62  ;;  %v951_v19 = vmul.f32 %v3589_v33, %v913_v41  ;;  %v988_v26 = vadd.f32 %v3595_v60, %v950_v22 }
 0x22c   :  { %v952_v56 = vmul.f32 %v3589_v33, %v914_v8  ;;  %v2819_v54 = vpop.eup %2818  ;;  %v860_v6 = vadd.f32 1e-05, %v828_v42  ;;  %v859_v57 = vadd.f32 1e-05, %v827_v40  ;;  %v1019_v0 = vmax.f32 %v987_v32, 0.0 }
 0x22d   :  { %v916_v61 = vmul.f32 %v2817_v51, %v3441_v52  ;;  %v776_v50 = vpop.xlane.xlu0 %775  ;;  %v773_v59 = vpop.xlane.xlu1 %772  ;;  %v989_v36 = vadd.f32 %v3595_v60, %v951_v19  ;;  %v1020_v1 = vmax.f32 %v988_v26, 0.0  ;;  %v915_v31 = vmul.f32 %v2819_v54, %v3444_v29 }
 0x22e   :  { %v990_v4 = vadd.f32 %v3595_v60, %v952_v56  ;;  %2832 = vrsqrt.f32 %v860_v6  ;;  %v830_v46 = vmul.f32 0.03125, %v776_v50  ;;  %v829_v14 = vmul.f32 0.03125, %v773_v59 }
 0x22f   :  { %v1048_v11 = vpack.c.bf16 %v1019_v0, %v1018_v20  ;;  %v2821_v13 = vpop.eup %2820  ;;  %2834 = vrsqrt.f32 %v859_v57  ;;  %v2653_v15 = vpack.c.bf16 %v1019_v0, %v1019_v0  ;;  %v1021_v2 = vmax.f32 %v989_v36, 0.0 }
 0x230   :  { %v2654_v44 = vpack.c.bf16 %v1020_v1, %v1020_v1  ;;  %v2823_v24 = vpop.eup %2822  ;;  %v862_v52 = vadd.f32 1e-05, %v830_v46  ;;  %v861_v22 = vadd.f32 1e-05, %v829_v14  ;;  %v953_v25 = vmul.f32 %v3589_v33, %v915_v31 }
 0x231   :  { %2757 = vmatprep.mubr.msk.bf16.mxu1 %vm520_vm1, %v1048_v11  ;;  %v1022_v30 = vmax.f32 %v990_v4, 0.0  ;;  %1180 = vst.msk [vmem:[#allocation7 + $0x14] sm:$0xf] %vm1174_vm2, %v2653_v15  ;;  %v782_v29 = vpop.xlane.xlu0 %781  ;;  %v779_v34 = vpop.xlane.xlu1 %778  ;;  %v1049_v35 = vpack.c.bf16 %v1021_v2, %v1020_v1  ;;  %v2655_v8 = vpack.c.bf16 %v1021_v2, %v1021_v2  ;;  %v917_v20 = vmul.f32 %v2823_v24, %v3453_v9 }
 0x232   :  { %1181 = vst.msk [vmem:[#allocation7 + $0x18] sm:$0xf] %vm1174_vm2, %v2654_v44  ;;  %v954_v12 = vmul.f32 %v3589_v33, %v916_v61  ;;  %2836 = vrsqrt.f32 %v862_v52  ;;  %v832_v45 = vmul.f32 0.03125, %v782_v29  ;;  %v831_v38 = vmul.f32 0.03125, %v779_v34 }
 0x233   :  { %v991_v55 = vadd.f32 %v3595_v60, %v953_v25  ;;  %v2825_v62 = vpop.eup %2824  ;;  %2838 = vrsqrt.f32 %v861_v22  ;;  %1182 = vst.msk [vmem:[#allocation7 + $0x1c] sm:$0xf] %vm1174_vm2, %v2655_v8  ;;  %2758 = vmatmul.mubr.msk.bf16.gmra.mxu1 %vm520_vm1, %v1049_v35  ;;  %v2656_v41 = vpack.c.bf16 %v1022_v30, %v1022_v30  ;;  %v955_v42 = vmul.f32 %v3589_v33, %v917_v20 }
 0x234   :  { %v992_v40 = vadd.f32 %v3595_v60, %v954_v12  ;;  %v2827_v32 = vpop.eup %2826  ;;  %v864_v9 = vadd.f32 1e-05, %v832_v45  ;;  %v863_v51 = vadd.f32 1e-05, %v831_v38  ;;  %v918_v26 = vmul.f32 %v2821_v13, %v3456_v37 }
 0x235   :  { %v1023_v19 = vmax.f32 %v991_v55, 0.0  ;;  %v788_v56 = vpop.xlane.xlu0 %787  ;;  %v785_v54 = vpop.xlane.xlu1 %784  ;;  %1183 = vst.msk [vmem:[#allocation7 + $0x20] sm:$0xf] %vm1174_vm2, %v2656_v41  ;;  %v993_v6 = vadd.f32 %v3595_v60, %v955_v42  ;;  %v919_v0 = vmul.f32 %v2827_v32, %v3468_v47  ;;  %v920_v61 = vmul.f32 %v2825_v62, %v3465_v23 }
 0x236   :  { %v1024_v57 = vmax.f32 %v992_v40, 0.0  ;;  %2840 = vrsqrt.f32 %v864_v9  ;;  %v834_v50 = vmul.f32 0.03125, %v788_v56  ;;  %v833_v59 = vmul.f32 0.03125, %v785_v54 }
 0x237   :  { %v1050_v36 = vpack.c.bf16 %v1023_v19, %v1022_v30  ;;  %v2829_v1 = vpop.eup %2828  ;;  %2842 = vrsqrt.f32 %v863_v51  ;;  %v2657_v31 = vpack.c.bf16 %v1023_v19, %v1023_v19  ;;  %v1025_v4 = vmax.f32 %v993_v6, 0.0 }
 0x238   :  { %v2658_v37 = vpack.c.bf16 %v1024_v57, %v1024_v57  ;;  %v2831_v46 = vpop.eup %2830  ;;  %v866_v14 = vadd.f32 1e-05, %v834_v50  ;;  %v865_v11 = vadd.f32 1e-05, %v833_v59  ;;  %v956_v13 = vmul.f32 %v3589_v33, %v918_v26 }
 0x239   :  { %2761 = vmatprep.mubr.msk.bf16.mxu1 %vm520_vm1, %v1050_v36  ;;  %v957_v47 = vmul.f32 %v3589_v33, %v919_v0  ;;  %1184 = vst.msk [vmem:[#allocation7 + $0x24] sm:$0xf] %vm1174_vm2, %v2657_v31  ;;  %v794_v23 = vpop.xlane.xlu0 %793  ;;  %v791_v15 = vpop.xlane.xlu1 %790  ;;  %v1051_v2 = vpack.c.bf16 %v1025_v4, %v1024_v57  ;;  %v2659_v44 = vpack.c.bf16 %v1025_v4, %v1025_v4 }
 0x23a   :  { %1185 = vst.msk [vmem:[#allocation7 + $0x28] sm:$0xf] %vm1174_vm2, %v2658_v37  ;;  %v921_v24 = vmul.f32 %v2831_v46, %v3477_v39  ;;  %v958_v52 = vmul.f32 %v3589_v33, %v920_v61  ;;  %2844 = vrsqrt.f32 %v866_v14  ;;  %v836_v22 = vmul.f32 0.03125, %v794_v23 }
 0x23b   :  { %v835_v25 = vmul.f32 0.03125, %v791_v15  ;;  %v994_v30 = vadd.f32 %v3595_v60, %v956_v13  ;;  %v2833_v29 = vpop.eup %2832  ;;  %2846 = vrsqrt.f32 %v865_v11  ;;  %1186 = vst.msk [vmem:[#allocation7 + $0x2c] sm:$0xf] %vm1174_vm2, %v2659_v44  ;;  %2762 = vmatmul.mubr.msk.bf16.gmra.mxu1 %vm520_vm1, %v1051_v2  ;;  %v995_v34 = vadd.f32 %v3595_v60, %v957_v47 }
 0x23c   :  { %v959_v35 = vmul.f32 %v3589_v33, %v921_v24  ;;  %v996_v8 = vadd.f32 %v3595_v60, %v958_v52  ;;  %v2835_v39 = vpop.eup %2834  ;;  %v868_v20 = vadd.f32 1e-05, %v836_v22  ;;  %v922_v38 = vmul.f32 %v2829_v1, %v3480_v58 }
 0x23d   :  { %v867_v12 = vadd.f32 1e-05, %v835_v25  ;;  %v1026_v45 = vmax.f32 %v994_v30, 0.0  ;;  %v800_v55 = vpop.xlane.xlu0 %799  ;;  %v797_v62 = vpop.xlane.xlu1 %796  ;;  %v1027_v41 = vmax.f32 %v995_v34, 0.0  ;;  %v923_v32 = vmul.f32 %v2835_v39, %v3492_v7 }
 0x23e   :  { %v997_v42 = vadd.f32 %v3595_v60, %v959_v35  ;;  %v1028_v40 = vmax.f32 %v996_v8, 0.0  ;;  %2848 = vrsqrt.f32 %v868_v20  ;;  %v838_v9 = vmul.f32 0.03125, %v800_v55 }
 0x23f   :  { %v837_v51 = vmul.f32 0.03125, %v797_v62  ;;  %v2660_v19 = vpack.c.bf16 %v1026_v45, %v1026_v45  ;;  %v2837_v26 = vpop.eup %2836  ;;  %2850 = vrsqrt.f32 %v867_v12  ;;  %v1052_v56 = vpack.c.bf16 %v1027_v41, %v1026_v45 }
 0x240   :  { %v2661_v54 = vpack.c.bf16 %v1027_v41, %v1027_v41  ;;  %v1029_v6 = vmax.f32 %v997_v42, 0.0  ;;  %v2839_v57 = vpop.eup %2838  ;;  %v870_v0 = vadd.f32 1e-05, %v838_v9  ;;  %v2662_v61 = vpack.c.bf16 %v1028_v40, %v1028_v40 }
 0x241   :  { %v869_v58 = vadd.f32 1e-05, %v837_v51  ;;  %1187 = vst.msk [vmem:[#allocation7 + $0x30] sm:$0xf] %vm1174_vm2, %v2660_v19  ;;  %v960_v50 = vmul.f32 %v3589_v33, %v922_v38  ;;  %2765 = vmatprep.mubr.msk.bf16.mxu1 %vm520_vm1, %v1052_v56  ;;  %v806_v7 = vpop.xlane.xlu0 %805  ;;  %v803_v59 = vpop.xlane.xlu1 %802  ;;  %v961_v31 = vmul.f32 %v3589_v33, %v923_v32  ;;  %v924_v4 = vmul.f32 %v2833_v29, %v3489_v63 }
 0x242   :  { %1188 = vst.msk [vmem:[#allocation7 + $0x34] sm:$0xf] %vm1174_vm2, %v2661_v54  ;;  %v1053_v36 = vpack.c.bf16 %v1029_v6, %v1028_v40  ;;  %v2663_v1 = vpack.c.bf16 %v1029_v6, %v1029_v6  ;;  %2852 = vrsqrt.f32 %v870_v0  ;;  %v840_v37 = vmul.f32 0.03125, %v806_v7  ;;  %1189 = vst.msk [vmem:[#allocation7 + $0x38] sm:$0xf] %vm1174_vm2, %v2662_v61 }
 0x243   :  { %v839_v46 = vmul.f32 0.03125, %v803_v59  ;;  %v998_v14 = vadd.f32 %v3595_v60, %v960_v50  ;;  %v2841_v11 = vpop.eup %2840  ;;  %2854 = vrsqrt.f32 %v869_v58  ;;  %v999_v13 = vadd.f32 %v3595_v60, %v961_v31 }
 0x244   :  { %1190 = vst.msk [vmem:[#allocation7 + $0x3c] sm:$0xf] %vm1174_vm2, %v2663_v1  ;;  %2766 = vmatmul.mubr.msk.bf16.gmra.mxu1 %vm520_vm1, %v1053_v36  ;;  %v925_v47 = vmul.f32 %v2839_v57, %v3501_v10  ;;  %v962_v23 = vmul.f32 %v3589_v33, %v924_v4  ;;  %v2843_v63 = vpop.eup %2842  ;;  %v872_v15 = vadd.f32 1e-05, %v840_v37  ;;  %v926_v24 = vmul.f32 %v2837_v26, %v3504_v16 }
 0x245   :  { %v871_v2 = vadd.f32 1e-05, %v839_v46  ;;  %v1030_v44 = vmax.f32 %v998_v14, 0.0  ;;  %v809_v52 = vpop.xlane.xlu1 %808  ;;  %v1031_v22 = vmax.f32 %v999_v13, 0.0  ;;  %v927_v29 = vmul.f32 %v2843_v63, %v3519_v27 }
 0x246   :  { %v963_v25 = vmul.f32 %v3589_v33, %v925_v47  ;;  %v1000_v30 = vadd.f32 %v3595_v60, %v962_v23  ;;  %2856 = vrsqrt.f32 %v872_v15  ;;  %v841_v34 = vmul.f32 0.03125, %v809_v52 }
 0x247   :  { %v2664_v35 = vpack.c.bf16 %v1030_v44, %v1030_v44  ;;  %v964_v10 = vmul.f32 %v3589_v33, %v926_v24  ;;  %v2845_v8 = vpop.eup %2844  ;;  %2858 = vrsqrt.f32 %v871_v2  ;;  %v1054_v39 = vpack.c.bf16 %v1031_v22, %v1030_v44 }
 0x248   :  { %v2665_v20 = vpack.c.bf16 %v1031_v22, %v1031_v22  ;;  %v1001_v12 = vadd.f32 %v3595_v60, %v963_v25  ;;  %v2847_v16 = vpop.eup %2846  ;;  %v873_v45 = vadd.f32 1e-05, %v841_v34  ;;  %v1032_v38 = vmax.f32 %v1000_v30, 0.0 }
 0x249   :  { %1191 = vst.msk [vmem:[#allocation7 + $0x40] sm:$0xf] %vm1174_vm2, %v2664_v35  ;;  %v965_v55 = vmul.f32 %v3589_v33, %v927_v29  ;;  %v1002_v27 = vadd.f32 %v3595_v60, %v964_v10  ;;  %2769 = vmatprep.mubr.msk.bf16.mxu1 %vm520_vm1, %v1054_v39  ;;  %v928_v41 = vmul.f32 %v2841_v11, %v3516_v49 }
 0x24a   :  { %1192 = vst.msk [vmem:[#allocation7 + $0x44] sm:$0xf] %vm1174_vm2, %v2665_v20  ;;  %v1033_v62 = vmax.f32 %v1001_v12, 0.0  ;;  %v929_v42 = vmul.f32 %v2847_v16, %v3531_v43  ;;  %v930_v40 = vmul.f32 %v2845_v8, %v3534_v48  ;;  %2860 = vrsqrt.f32 %v873_v45 }
 0x24b   :  { %v2666_v32 = vpack.c.bf16 %v1032_v38, %v1032_v38  ;;  %v1003_v9 = vadd.f32 %v3595_v60, %v965_v55  ;;  %v1034_v51 = vmax.f32 %v1002_v27, 0.0  ;;  %v2849_v19 = vpop.eup %2848  ;;  %v966_v54 = vmul.f32 %v3589_v33, %v928_v41 }
 0x24c   :  { %v1055_v26 = vpack.c.bf16 %v1033_v62, %v1032_v38  ;;  %v2667_v56 = vpack.c.bf16 %v1033_v62, %v1033_v62  ;;  %v967_v6 = vmul.f32 %v3589_v33, %v929_v42  ;;  %v2851_v57 = vpop.eup %2850  ;;  %v968_v43 = vmul.f32 %v3589_v33, %v930_v40 }
 0x24d   :  { %1193 = vst.msk [vmem:[#allocation7 + $0x48] sm:$0xf] %vm1174_vm2, %v2666_v32  ;;  %v1035_v49 = vmax.f32 %v1003_v9, 0.0  ;;  %v2668_v0 = vpack.c.bf16 %v1034_v51, %v1034_v51  ;;  %v932_v48 = vmul.f32 %v2849_v19, %v3543_v53  ;;  %v1004_v58 = vadd.f32 %v3595_v60, %v966_v54 }
 0x24e   :  { %1194 = vst.msk [vmem:[#allocation7 + $0x4c] sm:$0xf] %vm1174_vm2, %v2667_v56  ;;  %2770 = vmatmul.mubr.msk.bf16.gmra.mxu1 %vm520_vm1, %v1055_v26  ;;  %v1005_v61 = vadd.f32 %v3595_v60, %v967_v6  ;;  %v931_v50 = vmul.f32 %v2851_v57, %v3546_v3  ;;  %v1006_v36 = vadd.f32 %v3595_v60, %v968_v43 }
 0x24f   :  { %v1056_v7 = vpack.c.bf16 %v1035_v49, %v1034_v51  ;;  %v2669_v59 = vpack.c.bf16 %v1035_v49, %v1035_v49  ;;  %1195 = vst.msk [vmem:[#allocation7 + $0x50] sm:$0xf] %vm1174_vm2, %v2668_v0  ;;  %v970_v1 = vmul.f32 %v3589_v33, %v932_v48  ;;  %v2853_v31 = vpop.eup %2852  ;;  %v1036_v53 = vmax.f32 %v1004_v58, 0.0 }
 0x250   :  { %v1037_v4 = vmax.f32 %v1005_v61, 0.0  ;;  %v969_v37 = vmul.f32 %v3589_v33, %v931_v50  ;;  %v2855_v46 = vpop.eup %2854  ;;  %v1038_v14 = vmax.f32 %v1006_v36, 0.0  ;;  %v934_v11 = vmul.f32 %v2853_v31, %v3558_v5 }
 0x251   :  { %1196 = vst.msk [vmem:[#allocation7 + $0x54] sm:$0xf] %vm1174_vm2, %v2669_v59  ;;  %2773 = vmatprep.mubr.msk.bf16.mxu1 %vm520_vm1, %v1056_v7  ;;  %v1008_v3 = vadd.f32 %v3595_v60, %v970_v1  ;;  %v2670_v47 = vpack.c.bf16 %v1036_v53, %v1036_v53  ;;  %v933_v2 = vmul.f32 %v2855_v46, %v3555_v18 }
 0x252   :  { %v1057_v13 = vpack.c.bf16 %v1037_v4, %v1036_v53  ;;  %v2671_v23 = vpack.c.bf16 %v1037_v4, %v1037_v4  ;;  %v1007_v63 = vadd.f32 %v3595_v60, %v969_v37  ;;  %v2672_v15 = vpack.c.bf16 %v1038_v14, %v1038_v14 }
 0x253   :  { %v1040_v44 = vmax.f32 %v1008_v3, 0.0  ;;  %v972_v24 = vmul.f32 %v3589_v33, %v934_v11  ;;  %v2857_v52 = vpop.eup %2856  ;;  %1197 = vst.msk [vmem:[#allocation7 + $0x58] sm:$0xf] %vm1174_vm2, %v2670_v47  ;;  %v971_v5 = vmul.f32 %v3589_v33, %v933_v2 }
 0x254   :  { %1198 = vst.msk [vmem:[#allocation7 + $0x5c] sm:$0xf] %vm1174_vm2, %v2671_v23  ;;  %v1039_v22 = vmax.f32 %v1007_v63, 0.0  ;;  %v2859_v25 = vpop.eup %2858  ;;  %1199 = vst.msk [vmem:[#allocation7 + $0x60] sm:$0xf] %vm1174_vm2, %v2672_v15  ;;  %v936_v34 = vmul.f32 %v2857_v52, %v3567_v17 }
 0x255   :  { %v2674_v30 = vpack.c.bf16 %v1040_v44, %v1040_v44  ;;  %v1010_v29 = vadd.f32 %v3595_v60, %v972_v24  ;;  %v935_v10 = vmul.f32 %v2859_v25, %v3570_v21  ;;  %v1009_v8 = vadd.f32 %v3595_v60, %v971_v5 }
 0x256   :  { %2774 = vmatmul.mubr.msk.bf16.gmra.mxu1 %vm520_vm1, %v1057_v13  ;;  %v1058_v18 = vpack.c.bf16 %v1039_v22, %v1038_v14  ;;  %v2673_v35 = vpack.c.bf16 %v1039_v22, %v1039_v22  ;;  %v974_v20 = vmul.f32 %v3589_v33, %v936_v34 }
 0x257   :  { %1201 = vst.msk [vmem:[#allocation7 + $0x68] sm:$0xf] %vm1174_vm2, %v2674_v30  ;;  %v1042_v39 = vmax.f32 %v1010_v29, 0.0  ;;  %v2861_v12 = vpop.eup %2860  ;;  %v973_v17 = vmul.f32 %v3589_v33, %v935_v10  ;;  %v1041_v16 = vmax.f32 %v1009_v8, 0.0 }
 0x258   :  { %1200 = vst.msk [vmem:[#allocation7 + $0x64] sm:$0xf] %vm1174_vm2, %v2673_v35  ;;  %2777 = vmatprep.mubr.msk.bf16.mxu1 %vm520_vm1, %v1058_v18  ;;  %v937_v38 = vmul.f32 %v2861_v12, %v3579_v28  ;;  %v1012_v21 = vadd.f32 %v3595_v60, %v974_v20 }
 0x259   :  { %v2676_v45 = vpack.c.bf16 %v1042_v39, %v1042_v39  ;;  %v1011_v55 = vadd.f32 %v3595_v60, %v973_v17  ;;  %v1059_v27 = vpack.c.bf16 %v1041_v16, %v1040_v44  ;;  %v2675_v62 = vpack.c.bf16 %v1041_v16, %v1041_v16 }
 0x25a   :  { %v975_v41 = vmul.f32 %v3589_v33, %v937_v38  ;;  %v1044_v42 = vmax.f32 %v1012_v21, 0.0 }
 0x25b   :  { %1203 = vst.msk [vmem:[#allocation7 + $0x70] sm:$0xf] %vm1174_vm2, %v2676_v45  ;;  %v1043_v40 = vmax.f32 %v1011_v55, 0.0  ;;  %1202 = vst.msk [vmem:[#allocation7 + $0x6c] sm:$0xf] %vm1174_vm2, %v2675_v62 }
 0x25c   :  { %v1013_v32 = vadd.f32 %v3595_v60, %v975_v41  ;;  %v2678_v9 = vpack.c.bf16 %v1044_v42, %v1044_v42  ;;  %v3743_v60 = vld [vmem:[%s4677_s7] ss:$0 sm:$0xff] }
 0x25d   :  { %v1060_v28 = vpack.c.bf16 %v1043_v40, %v1042_v39  ;;  %v2677_v51 = vpack.c.bf16 %v1043_v40, %v1043_v40 }
 0x25e   :  { %2778 = vmatmul.mubr.msk.bf16.gmra.mxu1 %vm520_vm1, %v1059_v27  ;;  %v1045_v19 = vmax.f32 %v1013_v32, 0.0  ;;  %1205 = vst.msk [vmem:[#allocation7 + $0x78] sm:$0xf] %vm1174_vm2, %v2678_v9 }
 0x25f   :  { %1204 = vst.msk [vmem:[#allocation7 + $0x74] sm:$0xf] %vm1174_vm2, %v2677_v51  ;;  %2781 = vmatprep.mubr.msk.bf16.mxu1 %vm520_vm1, %v1060_v28 }
 0x260   :  { %v2679_v26 = vpack.c.bf16 %v1045_v19, %v1045_v19  ;;  %v1061_v33 = vpack.c.bf16 %v1045_v19, %v1044_v42 }
 0x262   :  { %1206 = vst.msk [vmem:[#allocation7 + $0x7c] sm:$0xf] %vm1174_vm2, %v2679_v26 }
 0x266   :  { %2782 = vmatmul.mubr.msk.bf16.gmra.mxu1 %vm520_vm1, %v1061_v33 }
 0x2eb   :  { %v2755_v56 = vpop.f32.mrf.mxu1 }
 0x2ec   :  { %v3746_v54 = vadd.f32 %v2755_v56, %v3743_v60 }
 0x2ed   :  { %v1312_v6 = vpop.f32.mrf.mxu1 }
 0x2ee   :  { %v3749_v57 = vadd.f32 %v3743_v60, %v1312_v6  ;;  %v1447_v49 = vsel %vm130_vm0, %v3746_v54, 0.0 }
 0x2ef   :  { %1448 = vadd.xlane.f32.xlu0 %v1447_v49  ;;  %v2756_v0 = vpop.f32.mrf.mxu1 }
 0x2f0   :  { %v3754_v43 = vadd.f32 %v2756_v0, %v3743_v60  ;;  %v1441_v50 = vsel %vm130_vm0, %v3749_v57, 0.0 }
 0x2f1   :  { %v1315_v48 = vpop.f32.mrf.mxu1 }
 0x2f2   :  { %v3757_v58 = vadd.f32 %v3743_v60, %v1315_v48  ;;  %v1450_v61 = vsel %vm130_vm0, %v3754_v43, 0.0 }
 0x2f3   :  { %1451 = vadd.xlane.f32.xlu1 %v1450_v61  ;;  %1442 = vadd.xlane.f32.xlu0 %v1441_v50  ;;  %v2759_v7 = vpop.f32.mrf.mxu1 }
 0x2f4   :  { %v3764_v59 = vadd.f32 %v2759_v7, %v3743_v60  ;;  %v1444_v31 = vsel %vm130_vm0, %v3757_v58, 0.0 }
 0x2f5   :  { %v1328_v36 = vpop.f32.mrf.mxu1 }
 0x2f6   :  { %v3767_v1 = vadd.f32 %v3743_v60, %v1328_v36  ;;  %v1459_v53 = vsel %vm130_vm0, %v3764_v59, 0.0 }
 0x2f7   :  { %1445 = vadd.xlane.f32.xlu1 %v1444_v31  ;;  %1460 = vadd.xlane.f32.xlu0 %v1459_v53  ;;  %v2760_v4 = vpop.f32.mrf.mxu1 }
 0x2f8   :  { %v3774_v37 = vadd.f32 %v2760_v4, %v3743_v60  ;;  %v1453_v11 = vsel %vm130_vm0, %v3767_v1, 0.0 }
 0x2f9   :  { %v1331_v46 = vpop.f32.mrf.mxu1 }
 0x2fa   :  { %v3777_v14 = vadd.f32 %v3743_v60, %v1331_v46  ;;  %v1462_v3 = vsel %vm130_vm0, %v3774_v37, 0.0 }
 0x2fb   :  { %1463 = vadd.xlane.f32.xlu1 %v1462_v3  ;;  %1454 = vadd.xlane.f32.xlu0 %v1453_v11  ;;  %v2763_v13 = vpop.f32.mrf.mxu1 }
 0x2fc   :  { %v3784_v47 = vadd.f32 %v2763_v13, %v3743_v60  ;;  %v1456_v15 = vsel %vm130_vm0, %v3777_v14, 0.0 }
 0x2fd   :  { %v1344_v23 = vpop.f32.mrf.mxu1 }
 0x2fe   :  { %v3787_v63 = vadd.f32 %v3743_v60, %v1344_v23  ;;  %v1471_v2 = vsel %vm130_vm0, %v3784_v47, 0.0 }
 0x2ff   :  { %1457 = vadd.xlane.f32.xlu1 %v1456_v15  ;;  %1472 = vadd.xlane.f32.xlu0 %v1471_v2  ;;  %v2764_v44 = vpop.f32.mrf.mxu1 }
 0x300   :  { %v3794_v24 = vadd.f32 %v2764_v44, %v3743_v60  ;;  %v1465_v5 = vsel %vm130_vm0, %v3787_v63, 0.0 }
 0x301   :  { %v1347_v52 = vpop.f32.mrf.mxu1 }
 0x302   :  { %v3797_v22 = vadd.f32 %v3743_v60, %v1347_v52  ;;  %v1474_v25 = vsel %vm130_vm0, %v3794_v24, 0.0 }
 0x303   :  { %1475 = vadd.xlane.f32.xlu1 %v1474_v25  ;;  %1466 = vadd.xlane.f32.xlu0 %v1465_v5 }
 0x304   :  { %v2767_v30 = vpop.f32.mrf.mxu1  ;;  %v1468_v35 = vsel %vm130_vm0, %v3797_v22, 0.0 }
 0x305   :  { %v3804_v29 = vadd.f32 %v2767_v30, %v3743_v60 }
 0x306   :  { %v1360_v34 = vpop.f32.mrf.mxu1 }
 0x307   :  { %v3807_v18 = vadd.f32 %v3743_v60, %v1360_v34  ;;  %v1483_v10 = vsel %vm130_vm0, %v3804_v29, 0.0  ;;  %1469 = vadd.xlane.f32.xlu1 %v1468_v35 }
 0x308   :  { %1484 = vadd.xlane.f32.xlu0 %v1483_v10  ;;  %v2768_v8 = vpop.f32.mrf.mxu1 }
 0x309   :  { %v3814_v39 = vadd.f32 %v2768_v8, %v3743_v60  ;;  %v1477_v16 = vsel %vm130_vm0, %v3807_v18, 0.0 }
 0x30a   :  { %v1363_v20 = vpop.f32.mrf.mxu1 }
 0x30b   :  { %v3817_v12 = vadd.f32 %v3743_v60, %v1363_v20  ;;  %v1486_v17 = vsel %vm130_vm0, %v3814_v39, 0.0 }
 0x30c   :  { %1487 = vadd.xlane.f32.xlu1 %v1486_v17  ;;  %1478 = vadd.xlane.f32.xlu0 %v1477_v16 }
 0x30d   :  { %v1480_v21 = vsel %vm130_vm0, %v3817_v12, 0.0 }
 0x30e   :  { %v2771_v45 = vpop.f32.mrf.mxu1 }
 0x30f   :  { %v3824_v38 = vadd.f32 %v2771_v45, %v3743_v60 }
 0x310   :  { %v1376_v55 = vpop.f32.mrf.mxu1  ;;  %1481 = vadd.xlane.f32.xlu1 %v1480_v21 }
 0x311   :  { %v3829_v27 = vadd.f32 %v3743_v60, %v1376_v55  ;;  %v1495_v62 = vsel %vm130_vm0, %v3824_v38, 0.0 }
 0x312   :  { %1496 = vadd.xlane.f32.xlu0 %v1495_v62  ;;  %v2772_v41 = vpop.f32.mrf.mxu1 }
 0x313   :  { %v3834_v42 = vadd.f32 %v2772_v41, %v3743_v60  ;;  %v1489_v28 = vsel %vm130_vm0, %v3829_v27, 0.0 }
 0x314   :  { %v1379_v40 = vpop.f32.mrf.mxu1 }
 0x315   :  { %v3837_v32 = vadd.f32 %v3743_v60, %v1379_v40  ;;  %v1498_v9 = vsel %vm130_vm0, %v3834_v42, 0.0 }
 0x316   :  { %1499 = vadd.xlane.f32.xlu1 %v1498_v9  ;;  %1490 = vadd.xlane.f32.xlu0 %v1489_v28  ;;  %v2775_v51 = vpop.f32.mrf.mxu1 }
 0x317   :  { %v3844_v19 = vadd.f32 %v2775_v51, %v3743_v60  ;;  %v1492_v56 = vsel %vm130_vm0, %v3837_v32, 0.0 }
 0x318   :  { %v1392_v26 = vpop.f32.mrf.mxu1 }
 0x319   :  { %v3847_v33 = vadd.f32 %v3743_v60, %v1392_v26  ;;  %v1507_v6 = vsel %vm130_vm0, %v3844_v19, 0.0 }
 0x31a   :  { %1493 = vadd.xlane.f32.xlu1 %v1492_v56  ;;  %1508 = vadd.xlane.f32.xlu0 %v1507_v6  ;;  %v2776_v49 = vpop.f32.mrf.mxu1 }
 0x31b   :  { %v3854_v0 = vadd.f32 %v2776_v49, %v3743_v60  ;;  %v1501_v7 = vsel %vm130_vm0, %v3847_v33, 0.0 }
 0x31c   :  { %v1395_v48 = vpop.f32.mrf.mxu1 }
 0x31d   :  { %v3857_v61 = vadd.f32 %v3743_v60, %v1395_v48  ;;  %v1510_v50 = vsel %vm130_vm0, %v3854_v0, 0.0 }
 0x31e   :  { %1511 = vadd.xlane.f32.xlu1 %v1510_v50  ;;  %1502 = vadd.xlane.f32.xlu0 %v1501_v7  ;;  %v2779_v36 = vpop.f32.mrf.mxu1 }
 0x31f   :  { %v3864_v31 = vadd.f32 %v2779_v36, %v3743_v60  ;;  %v1504_v46 = vsel %vm130_vm0, %v3857_v61, 0.0 }
 0x320   :  { %v1408_v53 = vpop.f32.mrf.mxu1 }
 0x321   :  { %v3867_v4 = vadd.f32 %v3743_v60, %v1408_v53  ;;  %v1519_v3 = vsel %vm130_vm0, %v3864_v31, 0.0 }
 0x322   :  { %1505 = vadd.xlane.f32.xlu1 %v1504_v46  ;;  %1520 = vadd.xlane.f32.xlu0 %v1519_v3  ;;  %v2780_v11 = vpop.f32.mrf.mxu1 }
 0x323   :  { %v3874_v13 = vadd.f32 %v2780_v11, %v3743_v60  ;;  %v1513_v44 = vsel %vm130_vm0, %v3867_v4, 0.0 }
 0x324   :  { %v1411_v23 = vpop.f32.mrf.mxu1 }
 0x325   :  { %v3877_v15 = vadd.f32 %v3743_v60, %v1411_v23  ;;  %v1522_v2 = vsel %vm130_vm0, %v3874_v13, 0.0 }
 0x326   :  { %1523 = vadd.xlane.f32.xlu1 %v1522_v2  ;;  %1514 = vadd.xlane.f32.xlu0 %v1513_v44  ;;  %v2783_v52 = vpop.f32.mrf.mxu1 }
 0x327   :  { %v1516_v30 = vsel %vm130_vm0, %v3877_v15, 0.0  ;;  %v3889_v35 = vadd.f32 %v2783_v52, %v3743_v60 }
 0x328   :  { %v1424_v25 = vpop.f32.mrf.mxu1 }
 0x329   :  { %v3884_v5 = vadd.f32 %v3743_v60, %v1424_v25  ;;  %v1531_v45 = vsel %vm130_vm0, %v3889_v35, 0.0 }
 0x32a   :  { %1517 = vadd.xlane.f32.xlu1 %v1516_v30  ;;  %v2784_v34 = vpop.f32.mrf.mxu1 }
 0x32b   :  { %v1525_v10 = vsel %vm130_vm0, %v3884_v5, 0.0  ;;  %v3897_v17 = vadd.f32 %v2784_v34, %v3743_v60 }
 0x32c   :  { %v1427_v8 = vpop.f32.mrf.mxu1  ;;  %1526 = vadd.xlane.f32.xlu0 %v1525_v10 }
 0x32d   :  { %v3894_v20 = vadd.f32 %v3743_v60, %v1427_v8  ;;  %v1534_v21 = vsel %vm130_vm0, %v3897_v17, 0.0 }
 0x32f   :  { %v1528_v16 = vsel %vm130_vm0, %v3894_v20, 0.0 }
 0x330   :  { %1529 = vadd.xlane.f32.xlu1 %v1528_v16  ;;  %1532 = vadd.xlane.f32.xlu0 %v1531_v45 }
 0x334   :  { %1535 = vadd.xlane.f32.xlu1 %v1534_v21 }
 0x378   :  { %v1449_v55 = vpop.xlane.xlu0 %1448 }
 0x379   :  { %v1540_v62 = vmul.f32 0.0625, %v1449_v55 }
 0x37b   :  { %v3906_v41 = vsub.f32 %v3746_v54, %v1540_v62 }
 0x37c   :  { %v1443_v40 = vpop.xlane.xlu0 %1442  ;;  %v1452_v60 = vpop.xlane.xlu1 %1451 }
 0x37d   :  { %v1538_v9 = vmul.f32 0.0625, %v1443_v40  ;;  %v1541_v28 = vmul.f32 0.0625, %v1452_v60  ;;  %v1604_v51 = vmul.f32 %v3906_v41, %v3906_v41 }
 0x37f   :  { %v3911_v26 = vsub.f32 %v3749_v57, %v1538_v9  ;;  %v3914_v56 = vsub.f32 %v3754_v43, %v1541_v28  ;;  %v1640_v6 = vsel %vm130_vm0, %v1604_v51, 0.0 }
 0x380   :  { %v1461_v49 = vpop.xlane.xlu0 %1460  ;;  %1641 = vadd.xlane.f32.xlu0 %v1640_v6  ;;  %v1446_v48 = vpop.xlane.xlu1 %1445 }
 0x381   :  { %v1544_v54 = vmul.f32 0.0625, %v1461_v49  ;;  %v1539_v50 = vmul.f32 0.0625, %v1446_v48  ;;  %v1602_v7 = vmul.f32 %v3911_v26, %v3911_v26  ;;  %v1605_v36 = vmul.f32 %v3914_v56, %v3914_v56 }
 0x383   :  { %v3922_v53 = vsub.f32 %v3764_v59, %v1544_v54  ;;  %v3925_v57 = vsub.f32 %v3757_v58, %v1539_v50  ;;  %v1634_v43 = vsel %vm130_vm0, %v1602_v7, 0.0  ;;  %v1643_v46 = vsel %vm130_vm0, %v1605_v36, 0.0 }
 0x384   :  { %v1455_v3 = vpop.xlane.xlu0 %1454  ;;  %1635 = vadd.xlane.f32.xlu0 %v1634_v43  ;;  %1644 = vadd.xlane.f32.xlu1 %v1643_v46  ;;  %v1464_v11 = vpop.xlane.xlu1 %1463 }
 0x385   :  { %v1542_v23 = vmul.f32 0.0625, %v1455_v3  ;;  %v1545_v2 = vmul.f32 0.0625, %v1464_v11  ;;  %v1608_v44 = vmul.f32 %v3922_v53, %v3922_v53  ;;  %v1603_v59 = vmul.f32 %v3925_v57, %v3925_v57 }
 0x387   :  { %v3934_v52 = vsub.f32 %v3767_v1, %v1542_v23  ;;  %v3937_v58 = vsub.f32 %v3774_v37, %v1545_v2  ;;  %v1652_v25 = vsel %vm130_vm0, %v1608_v44, 0.0  ;;  %v1637_v30 = vsel %vm130_vm0, %v1603_v59, 0.0 }
 0x388   :  { %v1473_v34 = vpop.xlane.xlu0 %1472  ;;  %1653 = vadd.xlane.f32.xlu0 %v1652_v25  ;;  %1638 = vadd.xlane.f32.xlu1 %v1637_v30  ;;  %v1458_v10 = vpop.xlane.xlu1 %1457 }
 0x389   :  { %v1548_v8 = vmul.f32 0.0625, %v1473_v34  ;;  %v1543_v16 = vmul.f32 0.0625, %v1458_v10  ;;  %v1606_v45 = vmul.f32 %v3934_v52, %v3934_v52  ;;  %v1609_v1 = vmul.f32 %v3937_v58, %v3937_v58 }
 0x38b   :  { %v3946_v21 = vsub.f32 %v3784_v47, %v1548_v8  ;;  %v3949_v37 = vsub.f32 %v3777_v14, %v1543_v16  ;;  %v1646_v55 = vsel %vm130_vm0, %v1606_v45, 0.0  ;;  %v1655_v62 = vsel %vm130_vm0, %v1609_v1, 0.0 }
 0x38c   :  { %v1467_v40 = vpop.xlane.xlu0 %1466  ;;  %1647 = vadd.xlane.f32.xlu0 %v1646_v55  ;;  %1656 = vadd.xlane.f32.xlu1 %v1655_v62  ;;  %v1476_v60 = vpop.xlane.xlu1 %1475 }
 0x38d   :  { %v1546_v9 = vmul.f32 0.0625, %v1467_v40  ;;  %v1549_v28 = vmul.f32 0.0625, %v1476_v60  ;;  %v1612_v51 = vmul.f32 %v3946_v21, %v3946_v21  ;;  %v1607_v47 = vmul.f32 %v3949_v37, %v3949_v37 }
 0x38f   :  { %v3958_v6 = vsub.f32 %v3787_v63, %v1546_v9  ;;  %v3961_v14 = vsub.f32 %v3794_v24, %v1549_v28  ;;  %v1664_v49 = vsel %vm130_vm0, %v1612_v51, 0.0  ;;  %v1649_v48 = vsel %vm130_vm0, %v1607_v47, 0.0 }
 0x390   :  { %1665 = vadd.xlane.f32.xlu0 %v1664_v49  ;;  %1650 = vadd.xlane.f32.xlu1 %v1649_v48  ;;  %v1470_v50 = vpop.xlane.xlu1 %1469 }
 0x391   :  { %v1485_v54 = vpop.xlane.xlu0 %1484  ;;  %v1547_v36 = vmul.f32 0.0625, %v1470_v50  ;;  %v1610_v43 = vmul.f32 %v3958_v6, %v3958_v6  ;;  %v1613_v63 = vmul.f32 %v3961_v14, %v3961_v14 }
 0x392   :  { %v1552_v7 = vmul.f32 0.0625, %v1485_v54 }
 0x393   :  { %v3973_v24 = vsub.f32 %v3797_v22, %v1547_v36  ;;  %v1658_v3 = vsel %vm130_vm0, %v1610_v43, 0.0  ;;  %v1667_v11 = vsel %vm130_vm0, %v1613_v63, 0.0 }
 0x394   :  { %v3970_v46 = vsub.f32 %v3804_v29, %v1552_v7  ;;  %1659 = vadd.xlane.f32.xlu0 %v1658_v3  ;;  %1668 = vadd.xlane.f32.xlu1 %v1667_v11 }
 0x395   :  { %v1479_v23 = vpop.xlane.xlu0 %1478  ;;  %v1488_v2 = vpop.xlane.xlu1 %1487  ;;  %v1611_v29 = vmul.f32 %v3973_v24, %v3973_v24 }
 0x396   :  { %v1550_v44 = vmul.f32 0.0625, %v1479_v23  ;;  %v1553_v59 = vmul.f32 0.0625, %v1488_v2  ;;  %v1616_v25 = vmul.f32 %v3970_v46, %v3970_v46 }
 0x397   :  { %v1661_v10 = vsel %vm130_vm0, %v1611_v29, 0.0 }
 0x398   :  { %v3982_v30 = vsub.f32 %v3807_v18, %v1550_v44  ;;  %v3985_v22 = vsub.f32 %v3814_v39, %v1553_v59  ;;  %v1676_v34 = vsel %vm130_vm0, %v1616_v25, 0.0  ;;  %1662 = vadd.xlane.f32.xlu1 %v1661_v10 }
 0x399   :  { %1677 = vadd.xlane.f32.xlu0 %v1676_v34  ;;  %v1482_v8 = vpop.xlane.xlu1 %1481 }
 0x39a   :  { %v1551_v16 = vmul.f32 0.0625, %v1482_v8  ;;  %v1614_v45 = vmul.f32 %v3982_v30, %v3982_v30  ;;  %v1617_v1 = vmul.f32 %v3985_v22, %v3985_v22 }
 0x39b   :  { %v1497_v55 = vpop.xlane.xlu0 %1496 }
 0x39c   :  { %v1556_v18 = vmul.f32 0.0625, %v1497_v55  ;;  %v3994_v62 = vsub.f32 %v3817_v12, %v1551_v16  ;;  %v1670_v39 = vsel %vm130_vm0, %v1614_v45, 0.0  ;;  %v1679_v40 = vsel %vm130_vm0, %v1617_v1, 0.0 }
 0x39d   :  { %1671 = vadd.xlane.f32.xlu0 %v1670_v39  ;;  %1680 = vadd.xlane.f32.xlu1 %v1679_v40 }
 0x39e   :  { %v3999_v60 = vsub.f32 %v3824_v38, %v1556_v18  ;;  %v1615_v9 = vmul.f32 %v3994_v62, %v3994_v62 }
 0x39f   :  { %v1491_v28 = vpop.xlane.xlu0 %1490  ;;  %v1500_v51 = vpop.xlane.xlu1 %1499 }
 0x3a0   :  { %v1554_v47 = vmul.f32 0.0625, %v1491_v28  ;;  %v1557_v49 = vmul.f32 0.0625, %v1500_v51  ;;  %v1620_v12 = vmul.f32 %v3999_v60, %v3999_v60  ;;  %v1673_v48 = vsel %vm130_vm0, %v1615_v9, 0.0 }
 0x3a1   :  { %1674 = vadd.xlane.f32.xlu1 %v1673_v48 }
 0x3a2   :  { %v4007_v54 = vsub.f32 %v3829_v27, %v1554_v47  ;;  %v4010_v50 = vsub.f32 %v3834_v42, %v1557_v49  ;;  %v1688_v38 = vsel %vm130_vm0, %v1620_v12, 0.0 }
 0x3a3   :  { %v1509_v7 = vpop.xlane.xlu0 %1508  ;;  %1689 = vadd.xlane.f32.xlu0 %v1688_v38  ;;  %v1494_v36 = vpop.xlane.xlu1 %1493 }
 0x3a4   :  { %v1560_v43 = vmul.f32 0.0625, %v1509_v7  ;;  %v1555_v63 = vmul.f32 0.0625, %v1494_v36  ;;  %v1618_v3 = vmul.f32 %v4007_v54, %v4007_v54  ;;  %v1621_v11 = vmul.f32 %v4010_v50, %v4010_v50 }
 0x3a6   :  { %v4018_v23 = vsub.f32 %v3844_v19, %v1560_v43  ;;  %v4021_v27 = vsub.f32 %v3837_v32, %v1555_v63  ;;  %v1682_v42 = vsel %vm130_vm0, %v1618_v3, 0.0  ;;  %v1691_v2 = vsel %vm130_vm0, %v1621_v11, 0.0 }
 0x3a7   :  { %v1503_v44 = vpop.xlane.xlu0 %1502  ;;  %1683 = vadd.xlane.f32.xlu0 %v1682_v42  ;;  %1692 = vadd.xlane.f32.xlu1 %v1691_v2  ;;  %v1512_v59 = vpop.xlane.xlu1 %1511 }
 0x3a8   :  { %v1558_v25 = vmul.f32 0.0625, %v1503_v44  ;;  %v1561_v29 = vmul.f32 0.0625, %v1512_v59  ;;  %v1624_v34 = vmul.f32 %v4018_v23, %v4018_v23  ;;  %v1619_v19 = vmul.f32 %v4021_v27, %v4021_v27 }
 0x3aa   :  { %v4030_v10 = vsub.f32 %v3847_v33, %v1558_v25  ;;  %v4033_v32 = vsub.f32 %v3854_v0, %v1561_v29  ;;  %v1700_v8 = vsel %vm130_vm0, %v1624_v34, 0.0  ;;  %v1685_v16 = vsel %vm130_vm0, %v1619_v19, 0.0 }
 0x3ab   :  { %v1521_v45 = vpop.xlane.xlu0 %1520  ;;  %1701 = vadd.xlane.f32.xlu0 %v1700_v8  ;;  %1686 = vadd.xlane.f32.xlu1 %v1685_v16  ;;  %v1506_v1 = vpop.xlane.xlu1 %1505 }
 0x3ac   :  { %v1564_v55 = vmul.f32 0.0625, %v1521_v45  ;;  %v1559_v18 = vmul.f32 0.0625, %v1506_v1  ;;  %v1622_v39 = vmul.f32 %v4030_v10, %v4030_v10  ;;  %v1625_v33 = vmul.f32 %v4033_v32, %v4033_v32 }
 0x3ae   :  { %v4042_v40 = vsub.f32 %v3864_v31, %v1564_v55  ;;  %v4045_v0 = vsub.f32 %v3857_v61, %v1559_v18  ;;  %v1694_v9 = vsel %vm130_vm0, %v1622_v39, 0.0  ;;  %v1703_v28 = vsel %vm130_vm0, %v1625_v33, 0.0 }
 0x3af   :  { %v1515_v51 = vpop.xlane.xlu0 %1514  ;;  %1695 = vadd.xlane.f32.xlu0 %v1694_v9  ;;  %1704 = vadd.xlane.f32.xlu1 %v1703_v28  ;;  %v1524_v47 = vpop.xlane.xlu1 %1523 }
 0x3b0   :  { %v1562_v49 = vmul.f32 0.0625, %v1515_v51  ;;  %v1565_v12 = vmul.f32 0.0625, %v1524_v47  ;;  %v1628_v48 = vmul.f32 %v4042_v40, %v4042_v40  ;;  %v1623_v31 = vmul.f32 %v4045_v0, %v4045_v0 }
 0x3b2   :  { %v4054_v38 = vsub.f32 %v3867_v4, %v1562_v49  ;;  %v4057_v61 = vsub.f32 %v3874_v13, %v1565_v12  ;;  %v1712_v7 = vsel %vm130_vm0, %v1628_v48, 0.0  ;;  %v1697_v36 = vsel %vm130_vm0, %v1623_v31, 0.0 }
 0x3b3   :  { %1713 = vadd.xlane.f32.xlu0 %v1712_v7  ;;  %1698 = vadd.xlane.f32.xlu1 %v1697_v36  ;;  %v1518_v43 = vpop.xlane.xlu1 %1517 }
 0x3b4   :  { %v1563_v63 = vmul.f32 0.0625, %v1518_v43  ;;  %v1626_v3 = vmul.f32 %v4054_v38, %v4054_v38  ;;  %v1629_v11 = vmul.f32 %v4057_v61, %v4057_v61 }
 0x3b5   :  { %v1527_v42 = vpop.xlane.xlu0 %1526 }
 0x3b6   :  { %v4066_v4 = vsub.f32 %v3877_v15, %v1563_v63  ;;  %v1566_v13 = vmul.f32 0.0625, %v1527_v42  ;;  %v1706_v2 = vsel %vm130_vm0, %v1626_v3, 0.0  ;;  %v1715_v44 = vsel %vm130_vm0, %v1629_v11, 0.0 }
 0x3b7   :  { %1707 = vadd.xlane.f32.xlu0 %v1706_v2  ;;  %1716 = vadd.xlane.f32.xlu1 %v1715_v44 }
 0x3b8   :  { %v4071_v59 = vsub.f32 %v3884_v5, %v1566_v13  ;;  %v1627_v25 = vmul.f32 %v4066_v4, %v4066_v4 }
 0x3b9   :  { %v1533_v29 = vpop.xlane.xlu0 %1532  ;;  %v1530_v34 = vpop.xlane.xlu1 %1529 }
 0x3ba   :  { %v1568_v19 = vmul.f32 0.0625, %v1533_v29  ;;  %v1567_v8 = vmul.f32 0.0625, %v1530_v34  ;;  %v1709_v15 = vsel %vm130_vm0, %v1627_v25, 0.0  ;;  %v1630_v16 = vmul.f32 %v4071_v59, %v4071_v59 }
 0x3bb   :  { %1710 = vadd.xlane.f32.xlu1 %v1709_v15 }
 0x3bc   :  { %v4079_v45 = vsub.f32 %v3889_v35, %v1568_v19  ;;  %v4082_v1 = vsub.f32 %v3894_v20, %v1567_v8  ;;  %v1718_v5 = vsel %vm130_vm0, %v1630_v16, 0.0 }
 0x3bd   :  { %1719 = vadd.xlane.f32.xlu0 %v1718_v5  ;;  %v1536_v55 = vpop.xlane.xlu1 %1535 }
 0x3be   :  { %v1569_v18 = vmul.f32 0.0625, %v1536_v55  ;;  %v1632_v39 = vmul.f32 %v4079_v45, %v4079_v45  ;;  %v1631_v33 = vmul.f32 %v4082_v1, %v4082_v1 }
 0x3c0   :  { %v4090_v9 = vsub.f32 %v3897_v17, %v1569_v18  ;;  %v1724_v35 = vsel %vm130_vm0, %v1632_v39, 0.0  ;;  %v1721_v28 = vsel %vm130_vm0, %v1631_v33, 0.0  ;;  %v4100_v39 = vld [vmem:[%s4678_s8] ss:$0 sm:$0xff]  ;;  %s3116_s8 = smov [#allocation7]  }
 0x3c1   :  { %1725 = vadd.xlane.f32.xlu0 %v1724_v35  ;;  %1722 = vadd.xlane.f32.xlu1 %v1721_v28 }
 0x3c2   :  { %v1633_v20 = vmul.f32 %v4090_v9, %v4090_v9 }
 0x3c4   :  { %v1727_v51 = vsel %vm130_vm0, %v1633_v20, 0.0 }
 0x3c5   :  { %1728 = vadd.xlane.f32.xlu1 %v1727_v51 }
 0x409   :  { %v1642_v47 = vpop.xlane.xlu0 %1641 }
 0x40a   :  { %v1732_v49 = vmul.f32 0.0625, %v1642_v47  ;;  %v4106_v47 = vld [vmem:[%s4679_s9] ss:$0 sm:$0xff]  ;;  %s2529_s9 = sshll.u32 %s3116_s8, 4  ;;  %s2530_s9 = int_to_ptr.vmem [resolvable:$true] %s2529_s9 }
 0x40b   :  { %s3062_s19 = scalar_lea.vmem %s2530_s9, 2048  ;;  %p3067_p11 = scmp.lt.s32.totalorder %s2530_s9, %s2530_s9 }
 0x40c   :  { %v1764_v12 = vadd.f32 1e-05, %v1732_v49  ;;  %p3063_p10 = scmp.ne.s32.totalorder %s2530_s9, %s3062_s19  ;;  %p3068_p12 = scmp.lt.s32.totalorder %s3062_s19, %s3062_s19 }
 0x40d   :  { %v1636_v48 = vpop.xlane.xlu0 %1635  ;;  %v1645_v31 = vpop.xlane.xlu1 %1644 }
 0x40e   :  { %2862 = vrsqrt.f32 %v1764_v12  ;;  %v1730_v17 = vmul.f32 0.0625, %v1636_v48  ;;  %v1733_v7 = vmul.f32 0.0625, %v1645_v31  ;;  %p3069_p13 = por %p3068_p12, %p3067_p11 }
 0x410   :  { %v1762_v36 = vadd.f32 1e-05, %v1730_v17  ;;  %v1765_v43 = vadd.f32 1e-05, %v1733_v7  ;;  %p3070_p0 = pnand %p3069_p13, %p3063_p10 }
 0x411   :  { %v1654_v63 = vpop.xlane.xlu0 %1653  ;;  %v1639_v3 = vpop.xlane.xlu1 %1638 }
 0x412   :  { %2864 = vrsqrt.f32 %v1762_v36  ;;  %v1736_v11 = vmul.f32 0.0625, %v1654_v63  ;;  %v1731_v42 = vmul.f32 0.0625, %v1639_v3 }
 0x413   :  { %2866 = vrsqrt.f32 %v1765_v43 }
 0x414   :  { %v1768_v13 = vadd.f32 1e-05, %v1736_v11  ;;  %v1763_v2 = vadd.f32 1e-05, %v1731_v42 }
 0x415   :  { %v1648_v44 = vpop.xlane.xlu0 %1647  ;;  %v1657_v25 = vpop.xlane.xlu1 %1656 }
 0x416   :  { %2868 = vrsqrt.f32 %v1768_v13  ;;  %v1734_v29 = vmul.f32 0.0625, %v1648_v44  ;;  %v1737_v34 = vmul.f32 0.0625, %v1657_v25 }
 0x417   :  { %2870 = vrsqrt.f32 %v1763_v2 }
 0x418   :  { %v1766_v19 = vadd.f32 1e-05, %v1734_v29  ;;  %v1769_v8 = vadd.f32 1e-05, %v1737_v34 }
 0x419   :  { %v1666_v15 = vpop.xlane.xlu0 %1665  ;;  %v1651_v16 = vpop.xlane.xlu1 %1650 }
 0x41a   :  { %2872 = vrsqrt.f32 %v1766_v19  ;;  %v1740_v5 = vmul.f32 0.0625, %v1666_v15  ;;  %v1735_v55 = vmul.f32 0.0625, %v1651_v16  ;;  %v2990_v15 = vld [vmem:[#allocation2 + $0x10] sm:$0xff] }
 0x41b   :  { %v2863_v18 = vpop.eup %2862  ;;  %2874 = vrsqrt.f32 %v1769_v8 }
 0x41c   :  { %v1772_v33 = vadd.f32 1e-05, %v1740_v5  ;;  %v1767_v35 = vadd.f32 1e-05, %v1735_v55  ;;  %v1828_v28 = vmul.f32 %v2863_v18, %v3906_v41 }
 0x41d   :  { %v1660_v20 = vpop.xlane.xlu0 %1659  ;;  %v1669_v51 = vpop.xlane.xlu1 %1668 }
 0x41e   :  { %2876 = vrsqrt.f32 %v1772_v33  ;;  %v1738_v49 = vmul.f32 0.0625, %v1660_v20  ;;  %v1741_v12 = vmul.f32 0.0625, %v1669_v51  ;;  %v1866_v48 = vmul.f32 %v4100_v39, %v1828_v28 }
 0x41f   :  { %v2865_v31 = vpop.eup %2864  ;;  %2878 = vrsqrt.f32 %v1767_v35 }
 0x420   :  { %v2867_v17 = vpop.eup %2866  ;;  %v1770_v7 = vadd.f32 1e-05, %v1738_v49  ;;  %v1773_v36 = vadd.f32 1e-05, %v1741_v12  ;;  %v1904_v43 = vadd.f32 %v4106_v47, %v1866_v48  ;;  %v1826_v41 = vmul.f32 %v2865_v31, %v3911_v26 }
 0x421   :  { %v1663_v3 = vpop.xlane.xlu1 %1662  ;;  %v1829_v11 = vmul.f32 %v2867_v17, %v3914_v56 }
 0x422   :  { %v1678_v63 = vpop.xlane.xlu0 %1677  ;;  %2880 = vrsqrt.f32 %v1770_v7  ;;  %v1739_v13 = vmul.f32 0.0625, %v1663_v3  ;;  %v1936_v2 = vmax.f32 %v1904_v43, 0.0  ;;  %v1864_v25 = vmul.f32 %v4100_v39, %v1826_v41  ;;  %v2991_v43 = vld [vmem:[#allocation2] sm:$0xff] }
 0x423   :  { %v1744_v42 = vmul.f32 0.0625, %v1678_v63  ;;  %v2869_v44 = vpop.eup %2868  ;;  %2882 = vrsqrt.f32 %v1773_v36  ;;  %v1867_v29 = vmul.f32 %v4100_v39, %v1829_v11  ;;  %v2992_v63 = vld [vmem:[#allocation2 + $0x18] sm:$0xff] }
 0x424   :  { %v2871_v34 = vpop.eup %2870  ;;  %v1771_v8 = vadd.f32 1e-05, %v1739_v13  ;;  %v4114_v16 = vadd.f32 %v2990_v15, %v1936_v2  ;;  %v1832_v26 = vmul.f32 %v2869_v44, %v3922_v53  ;;  %v1902_v55 = vadd.f32 %v4106_v47, %v1864_v25 }
 0x425   :  { %v1776_v19 = vadd.f32 1e-05, %v1744_v42  ;;  %v1905_v18 = vadd.f32 %v4106_v47, %v1867_v29  ;;  %v1827_v33 = vmul.f32 %v2871_v34, %v3925_v57 }
 0x426   :  { %v1672_v5 = vpop.xlane.xlu0 %1671  ;;  %v1681_v56 = vpop.xlane.xlu1 %1680  ;;  %v2006_v20 = vsel %vm130_vm0, %v4114_v16, 0.0  ;;  %v1934_v49 = vmax.f32 %v1902_v55, 0.0  ;;  %v1870_v53 = vmul.f32 %v4100_v39, %v1832_v26 }
 0x427   :  { %2884 = vrsqrt.f32 %v1776_v19  ;;  %v1742_v35 = vmul.f32 0.0625, %v1672_v5  ;;  %v1745_v28 = vmul.f32 0.0625, %v1681_v56  ;;  %v2873_v51 = vpop.eup %2872  ;;  %2007 = vadd.xlane.f32.xlu0 %v2006_v20  ;;  %v1937_v12 = vmax.f32 %v1905_v18, 0.0  ;;  %v2993_v56 = vld [vmem:[#allocation2 + $0x30] sm:$0xff]  ;;  %v2994_v20 = vld [vmem:[#allocation2 + $0x8] sm:$0xff] }
 0x428   :  { %2886 = vrsqrt.f32 %v1771_v8  ;;  %v2875_v48 = vpop.eup %2874  ;;  %v1865_v7 = vmul.f32 %v4100_v39, %v1827_v33  ;;  %v1830_v57 = vmul.f32 %v2873_v51, %v3934_v52  ;;  %v4125_v41 = vadd.f32 %v2991_v43, %v1934_v49 }
 0x429   :  { %v1774_v31 = vadd.f32 1e-05, %v1742_v35  ;;  %v1777_v17 = vadd.f32 1e-05, %v1745_v28  ;;  %v4127_v3 = vadd.f32 %v2992_v63, %v1937_v12  ;;  %v1908_v11 = vadd.f32 %v4106_v47, %v1870_v53  ;;  %v2995_v63 = vld [vmem:[#allocation2 + $0x20] sm:$0xff] }
 0x42a   :  { %v1675_v36 = vpop.xlane.xlu1 %1674  ;;  %v1833_v42 = vmul.f32 %v2875_v48, %v3937_v58  ;;  %v1903_v2 = vadd.f32 %v4106_v47, %v1865_v7  ;;  %v1868_v44 = vmul.f32 %v4100_v39, %v1830_v57  ;;  %v2000_v29 = vsel %vm130_vm0, %v4125_v41, 0.0 }
 0x42b   :  { %2888 = vrsqrt.f32 %v1774_v31  ;;  %v1743_v13 = vmul.f32 0.0625, %v1675_v36  ;;  %v2877_v25 = vpop.eup %2876  ;;  %v2009_v34 = vsel %vm130_vm0, %v4127_v3, 0.0  ;;  %v1940_v19 = vmax.f32 %v1908_v11, 0.0  ;;  %2001 = vadd.xlane.f32.xlu0 %v2000_v29 }
 0x42c   :  { %2890 = vrsqrt.f32 %v1777_v17  ;;  %v1690_v52 = vpop.xlane.xlu0 %1689  ;;  %v2879_v8 = vpop.eup %2878  ;;  %2010 = vadd.xlane.f32.xlu1 %v2009_v34  ;;  %v1935_v58 = vmax.f32 %v1903_v2, 0.0  ;;  %v1906_v5 = vadd.f32 %v4106_v47, %v1868_v44  ;;  %v1871_v18 = vmul.f32 %v4100_v39, %v1833_v42 }
 0x42d   :  { %v1748_v15 = vmul.f32 0.0625, %v1690_v52  ;;  %v1775_v26 = vadd.f32 1e-05, %v1743_v13  ;;  %v4138_v55 = vadd.f32 %v2993_v56, %v1940_v19  ;;  %v1836_v33 = vmul.f32 %v2877_v25, %v3946_v21 }
 0x42e   :  { %v1831_v35 = vmul.f32 %v2879_v8, %v3949_v37  ;;  %v4143_v51 = vadd.f32 %v2994_v20, %v1935_v58  ;;  %v1938_v49 = vmax.f32 %v1906_v5, 0.0  ;;  %v1909_v17 = vadd.f32 %v4106_v47, %v1871_v18 }
 0x42f   :  { %v1780_v28 = vadd.f32 1e-05, %v1748_v15  ;;  %2892 = vrsqrt.f32 %v1775_v26  ;;  %v2881_v12 = vpop.eup %2880  ;;  %v2018_v31 = vsel %vm130_vm0, %v4138_v55, 0.0  ;;  %v1874_v7 = vmul.f32 %v4100_v39, %v1836_v33  ;;  %v2996_v26 = vld [vmem:[#allocation2 + $0x38] sm:$0xff] }
 0x430   :  { %v1684_v53 = vpop.xlane.xlu0 %1683  ;;  %v1693_v48 = vpop.xlane.xlu1 %1692  ;;  %v1869_v21 = vmul.f32 %v4100_v39, %v1831_v35  ;;  %2019 = vadd.xlane.f32.xlu0 %v2018_v31  ;;  %v2003_v43 = vsel %vm130_vm0, %v4143_v51, 0.0  ;;  %v4152_v11 = vadd.f32 %v2995_v63, %v1938_v49  ;;  %v1941_v42 = vmax.f32 %v1909_v17, 0.0  ;;  %v2998_v49 = vld [vmem:[#allocation2 + $0x28] sm:$0xff] }
 0x431   :  { %v2883_v57 = vpop.eup %2882  ;;  %2894 = vrsqrt.f32 %v1780_v28  ;;  %v1746_v37 = vmul.f32 0.0625, %v1684_v53  ;;  %v1749_v36 = vmul.f32 0.0625, %v1693_v48  ;;  %2004 = vadd.xlane.f32.xlu1 %v2003_v43  ;;  %v1912_v13 = vadd.f32 %v4106_v47, %v1874_v7  ;;  %v2997_v28 = vld [vmem:[#allocation2 + $0x50] sm:$0xff] }
 0x432   :  { %v1907_v2 = vadd.f32 %v4106_v47, %v1869_v21  ;;  %v1834_v52 = vmul.f32 %v2881_v12, %v3958_v6  ;;  %v1837_v29 = vmul.f32 %v2883_v57, %v3961_v14  ;;  %v2012_v15 = vsel %vm130_vm0, %v4152_v11, 0.0 }
 0x433   :  { %v1778_v44 = vadd.f32 1e-05, %v1746_v37  ;;  %v1781_v25 = vadd.f32 1e-05, %v1749_v36  ;;  %v4160_v58 = vadd.f32 %v2996_v26, %v1941_v42  ;;  %v1944_v5 = vmax.f32 %v1912_v13, 0.0 }
 0x434   :  { %v2885_v34 = vpop.eup %2884  ;;  %v1702_v19 = vpop.xlane.xlu0 %1701  ;;  %v1939_v56 = vmax.f32 %v1907_v2, 0.0  ;;  %2013 = vadd.xlane.f32.xlu0 %v2012_v15  ;;  %v1872_v6 = vmul.f32 %v4100_v39, %v1834_v52  ;;  %v1875_v17 = vmul.f32 %v4100_v39, %v1837_v29  ;;  %v2999_v15 = vld [vmem:[#allocation2 + $0x40] sm:$0xff] }
 0x435   :  { %v1687_v8 = vpop.xlane.xlu1 %1686  ;;  %v2887_v18 = vpop.eup %2886  ;;  %2896 = vrsqrt.f32 %v1778_v44  ;;  %v1752_v33 = vmul.f32 0.0625, %v1702_v19  ;;  %v2021_v14 = vsel %vm130_vm0, %v4160_v58, 0.0  ;;  %v4165_v20 = vadd.f32 %v2997_v28, %v1944_v5 }
 0x436   :  { %v1747_v35 = vmul.f32 0.0625, %v1687_v8  ;;  %2898 = vrsqrt.f32 %v1781_v25  ;;  %v4167_v12 = vadd.f32 %v2998_v49, %v1939_v56  ;;  %2022 = vadd.xlane.f32.xlu1 %v2021_v14  ;;  %v1910_v31 = vadd.f32 %v4106_v47, %v1872_v6 }
 0x437   :  { %v1784_v53 = vadd.f32 1e-05, %v1752_v33  ;;  %v2030_v37 = vsel %vm130_vm0, %v4165_v20, 0.0  ;;  %v1840_v43 = vmul.f32 %v2885_v34, %v3970_v46  ;;  %v1835_v63 = vmul.f32 %v2887_v18, %v3973_v24 }
 0x438   :  { %v1779_v48 = vadd.f32 1e-05, %v1747_v35  ;;  %v2889_v7 = vpop.eup %2888  ;;  %v1696_v21 = vpop.xlane.xlu0 %1695  ;;  %v2015_v36 = vsel %vm130_vm0, %v4167_v12, 0.0  ;;  %2031 = vadd.xlane.f32.xlu0 %v2030_v37  ;;  %v1942_v44 = vmax.f32 %v1910_v31, 0.0  ;;  %v1913_v25 = vadd.f32 %v4106_v47, %v1875_v17 }
 0x439   :  { %v1705_v57 = vpop.xlane.xlu1 %1704  ;;  %v2891_v42 = vpop.eup %2890  ;;  %2900 = vrsqrt.f32 %v1784_v53  ;;  %v1750_v13 = vmul.f32 0.0625, %v1696_v21  ;;  %v1878_v52 = vmul.f32 %v4100_v39, %v1840_v43  ;;  %v1873_v29 = vmul.f32 %v4100_v39, %v1835_v63  ;;  %v3001_v43 = vld [vmem:[#allocation2 + $0x70] sm:$0xff] }
 0x43a   :  { %v1753_v2 = vmul.f32 0.0625, %v1705_v57  ;;  %2902 = vrsqrt.f32 %v1779_v48  ;;  %2016 = vadd.xlane.f32.xlu1 %v2015_v36  ;;  %v4180_v46 = vadd.f32 %v2999_v15, %v1942_v44  ;;  %v1838_v24 = vmul.f32 %v2889_v7, %v3982_v30  ;;  %v3000_v30 = vld [vmem:[#allocation2 + $0x58] sm:$0xff] }
 0x43b   :  { %v1782_v19 = vadd.f32 1e-05, %v1750_v13  ;;  %v1945_v56 = vmax.f32 %v1913_v25, 0.0  ;;  %v1916_v18 = vadd.f32 %v4106_v47, %v1878_v52  ;;  %v1911_v33 = vadd.f32 %v4106_v47, %v1873_v29 }
 0x43c   :  { %v1785_v8 = vadd.f32 1e-05, %v1753_v2  ;;  %v2893_v34 = vpop.eup %2892  ;;  %v1714_v26 = vpop.xlane.xlu0 %1713  ;;  %v1841_v35 = vmul.f32 %v2891_v42, %v3985_v22  ;;  %v2024_v28 = vsel %vm130_vm0, %v4180_v46, 0.0  ;;  %v1876_v21 = vmul.f32 %v4100_v39, %v1838_v24  ;;  %v3002_v42 = vld [vmem:[#allocation2 + $0x48] sm:$0xff] }
 0x43d   :  { %v1699_v5 = vpop.xlane.xlu1 %1698  ;;  %2904 = vrsqrt.f32 %v1782_v19  ;;  %v1756_v6 = vmul.f32 0.0625, %v1714_v26  ;;  %2025 = vadd.xlane.f32.xlu0 %v2024_v28  ;;  %v4188_v53 = vadd.f32 %v3000_v30, %v1945_v56  ;;  %v1948_v48 = vmax.f32 %v1916_v18, 0.0 }
 0x43e   :  { %v1751_v14 = vmul.f32 0.0625, %v1699_v5  ;;  %v2895_v49 = vpop.eup %2894  ;;  %2906 = vrsqrt.f32 %v1785_v8  ;;  %v1943_v31 = vmax.f32 %v1911_v33, 0.0  ;;  %v1879_v22 = vmul.f32 %v4100_v39, %v1841_v35 }
 0x43f   :  { %v1788_v17 = vadd.f32 1e-05, %v1756_v6  ;;  %v2033_v57 = vsel %vm130_vm0, %v4188_v53, 0.0  ;;  %v4194_v63 = vadd.f32 %v3001_v43, %v1948_v48  ;;  %v1844_v2 = vmul.f32 %v2895_v49, %v3999_v60  ;;  %v3003_v49 = vld [vmem:[#allocation2 + $0x60] sm:$0xff] }
 0x440   :  { %v1783_v7 = vadd.f32 1e-05, %v1751_v14  ;;  %v1708_v37 = vpop.xlane.xlu0 %1707  ;;  %v4196_v13 = vadd.f32 %v3002_v42, %v1943_v31  ;;  %2034 = vadd.xlane.f32.xlu1 %v2033_v57  ;;  %v1914_v52 = vadd.f32 %v4106_v47, %v1876_v21  ;;  %v1917_v15 = vadd.f32 %v4106_v47, %v1879_v22 }
 0x441   :  { %v1717_v36 = vpop.xlane.xlu1 %1716  ;;  %2908 = vrsqrt.f32 %v1788_v17  ;;  %v1754_v44 = vmul.f32 0.0625, %v1708_v37  ;;  %v2042_v19 = vsel %vm130_vm0, %v4194_v63, 0.0  ;;  %v1882_v56 = vmul.f32 %v4100_v39, %v1844_v2 }
 0x442   :  { %v1757_v25 = vmul.f32 0.0625, %v1717_v36  ;;  %v2897_v29 = vpop.eup %2896  ;;  %2910 = vrsqrt.f32 %v1783_v7  ;;  %v2027_v8 = vsel %vm130_vm0, %v4196_v13, 0.0  ;;  %2043 = vadd.xlane.f32.xlu0 %v2042_v19  ;;  %v1946_v60 = vmax.f32 %v1914_v52, 0.0  ;;  %v3004_v7 = vld [vmem:[#allocation2 + $0x78] sm:$0xff] }
 0x443   :  { %v2899_v24 = vpop.eup %2898  ;;  %v1786_v26 = vadd.f32 1e-05, %v1754_v44  ;;  %v1949_v33 = vmax.f32 %v1917_v15, 0.0  ;;  %v1839_v35 = vmul.f32 %v2893_v34, %v3994_v62  ;;  %v1842_v6 = vmul.f32 %v2897_v29, %v4007_v54 }
 0x444   :  { %v1789_v5 = vadd.f32 1e-05, %v1757_v25  ;;  %v1845_v14 = vmul.f32 %v2899_v24, %v4010_v50  ;;  %2028 = vadd.xlane.f32.xlu1 %v2027_v8  ;;  %v4209_v30 = vadd.f32 %v3003_v49, %v1946_v60  ;;  %v1920_v48 = vadd.f32 %v4106_v47, %v1882_v56  ;;  %v3005_v25 = vld [vmem:[#allocation2 + $0x90] sm:$0xff] }
 0x445   :  { %v1711_v18 = vpop.xlane.xlu1 %1710  ;;  %2912 = vrsqrt.f32 %v1786_v26  ;;  %v4212_v21 = vadd.f32 %v3004_v7, %v1949_v33  ;;  %v1877_v62 = vmul.f32 %v4100_v39, %v1839_v35  ;;  %v1880_v54 = vmul.f32 %v4100_v39, %v1842_v6  ;;  %v3006_v6 = vld [vmem:[#allocation2 + $0x68] sm:$0xff] }
 0x446   :  { %v1755_v28 = vmul.f32 0.0625, %v1711_v18  ;;  %v2901_v31 = vpop.eup %2900  ;;  %2914 = vrsqrt.f32 %v1789_v5  ;;  %v1720_v17 = vpop.xlane.xlu0 %1719  ;;  %v2036_v22 = vsel %vm130_vm0, %v4209_v30, 0.0  ;;  %v1952_v37 = vmax.f32 %v1920_v48, 0.0 }
 0x447   :  { %v2903_v34 = vpop.eup %2902  ;;  %v1758_v57 = vmul.f32 0.0625, %v1720_v17  ;;  %2037 = vadd.xlane.f32.xlu0 %v2036_v22  ;;  %v2045_v36 = vsel %vm130_vm0, %v4212_v21, 0.0  ;;  %v1915_v43 = vadd.f32 %v4106_v47, %v1877_v62  ;;  %v1918_v42 = vadd.f32 %v4106_v47, %v1880_v54 }
 0x448   :  { %v1787_v50 = vadd.f32 1e-05, %v1755_v28  ;;  %v1883_v2 = vmul.f32 %v4100_v39, %v1845_v14  ;;  %2046 = vadd.xlane.f32.xlu1 %v2045_v36  ;;  %v4223_v52 = vadd.f32 %v3005_v25, %v1952_v37  ;;  %v1848_v29 = vmul.f32 %v2901_v31, %v4018_v23  ;;  %v3007_v23 = vld [vmem:[#allocation2 + $0x80] sm:$0xff] }
 0x449   :  { %v1790_v44 = vadd.f32 1e-05, %v1758_v57  ;;  %v1947_v15 = vmax.f32 %v1915_v43, 0.0  ;;  %v1950_v26 = vmax.f32 %v1918_v42, 0.0  ;;  %v1843_v60 = vmul.f32 %v2903_v34, %v4021_v27 }
 0x44a   :  { %2916 = vrsqrt.f32 %v1787_v50  ;;  %v2905_v19 = vpop.eup %2904  ;;  %v1726_v8 = vpop.xlane.xlu0 %1725  ;;  %v1921_v5 = vadd.f32 %v4106_v47, %v1883_v2  ;;  %v2054_v18 = vsel %vm130_vm0, %v4223_v52, 0.0  ;;  %v1886_v48 = vmul.f32 %v4100_v39, %v1848_v29  ;;  %v3008_v50 = vld [vmem:[#allocation2 + $0x98] sm:$0xff] }
 0x44b   :  { %v1723_v24 = vpop.xlane.xlu1 %1722  ;;  %v2907_v56 = vpop.eup %2906  ;;  %2918 = vrsqrt.f32 %v1790_v44  ;;  %v1760_v33 = vmul.f32 0.0625, %v1726_v8  ;;  %2055 = vadd.xlane.f32.xlu0 %v2054_v18  ;;  %v4230_v14 = vadd.f32 %v3006_v6, %v1947_v15  ;;  %v4232_v28 = vadd.f32 %v3007_v23, %v1950_v26  ;;  %v3009_v26 = vld [vmem:[#allocation2 + $0xb0] sm:$0xff] }
 0x44c   :  { %v1759_v35 = vmul.f32 0.0625, %v1723_v24  ;;  %v1953_v49 = vmax.f32 %v1921_v5, 0.0  ;;  %v1881_v27 = vmul.f32 %v4100_v39, %v1843_v60  ;;  %v1846_v7 = vmul.f32 %v2905_v19, %v4030_v10 }
 0x44d   :  { %v1792_v31 = vadd.f32 1e-05, %v1760_v33  ;;  %v2039_v54 = vsel %vm130_vm0, %v4230_v14, 0.0  ;;  %v2048_v34 = vsel %vm130_vm0, %v4232_v28, 0.0  ;;  %v1924_v37 = vadd.f32 %v4106_v47, %v1886_v48 }
 0x44e   :  { %v1791_v17 = vadd.f32 1e-05, %v1759_v35  ;;  %v2909_v62 = vpop.eup %2908  ;;  %v4241_v22 = vadd.f32 %v3008_v50, %v1953_v49  ;;  %2040 = vadd.xlane.f32.xlu1 %v2039_v54  ;;  %v1919_v42 = vadd.f32 %v4106_v47, %v1881_v27  ;;  %v1884_v10 = vmul.f32 %v4100_v39, %v1846_v7  ;;  %v3010_v35 = vld [vmem:[#allocation2 + $0x88] sm:$0xff] }
 0x44f   :  { %v1729_v57 = vpop.xlane.xlu1 %1728  ;;  %v2911_v36 = vpop.eup %2910  ;;  %2920 = vrsqrt.f32 %v1792_v31  ;;  %2049 = vadd.xlane.f32.xlu0 %v2048_v34  ;;  %v1956_v44 = vmax.f32 %v1924_v37, 0.0  ;;  %v1849_v25 = vmul.f32 %v2907_v56, %v4033_v32  ;;  %v1852_v15 = vmul.f32 %v2909_v62, %v4042_v40  ;;  %v3011_v31 = vld [vmem:[#allocation2 + $0xa0] sm:$0xff] }
 0x450   :  { %v1761_v43 = vmul.f32 0.0625, %v1729_v57  ;;  %2922 = vrsqrt.f32 %v1791_v17  ;;  %v2057_v2 = vsel %vm130_vm0, %v4241_v22, 0.0  ;;  %v1951_v19 = vmax.f32 %v1919_v42, 0.0  ;;  %v3012_v42 = vld [vmem:[#allocation2 + $0xb8] sm:$0xff] }
 0x451   :  { %v1922_v8 = vadd.f32 %v4106_v47, %v1884_v10  ;;  %v4251_v5 = vadd.f32 %v3009_v26, %v1956_v44  ;;  %v1887_v60 = vmul.f32 %v4100_v39, %v1849_v25  ;;  %v1847_v18 = vmul.f32 %v2911_v36, %v4045_v0  ;;  %v3013_v44 = vld [vmem:[#allocation2 + $0xd0] sm:$0xff] }
 0x452   :  { %v1793_v29 = vadd.f32 1e-05, %v1761_v43  ;;  %v2913_v24 = vpop.eup %2912  ;;  %2058 = vadd.xlane.f32.xlu1 %v2057_v2  ;;  %v4255_v6 = vadd.f32 %v3010_v35, %v1951_v19  ;;  %v1890_v56 = vmul.f32 %v4100_v39, %v1852_v15  ;;  %v3014_v15 = vld [vmem:[#allocation2 + $0xa8] sm:$0xff] }
 0x453   :  { %v2915_v33 = vpop.eup %2914  ;;  %v1954_v32 = vmax.f32 %v1922_v8, 0.0  ;;  %v2066_v40 = vsel %vm130_vm0, %v4251_v5, 0.0  ;;  %v1925_v23 = vadd.f32 %v4106_v47, %v1887_v60  ;;  %v1885_v49 = vmul.f32 %v4100_v39, %v1847_v18 }
 0x454   :  { %2924 = vrsqrt.f32 %v1793_v29  ;;  %v1850_v48 = vmul.f32 %v2913_v24, %v4054_v38  ;;  %2067 = vadd.xlane.f32.xlu0 %v2066_v40  ;;  %v2051_v0 = vsel %vm130_vm0, %v4255_v6, 0.0  ;;  %v1928_v27 = vadd.f32 %v4106_v47, %v1890_v56  ;;  %v3015_v56 = vld [vmem:[#allocation2 + $0xc0] sm:$0xff] }
 0x455   :  { %v4265_v17 = vadd.f32 %v3011_v31, %v1954_v32  ;;  %v1853_v7 = vmul.f32 %v2915_v33, %v4057_v61  ;;  %v1957_v54 = vmax.f32 %v1925_v23, 0.0  ;;  %v1923_v34 = vadd.f32 %v4106_v47, %v1885_v49  ;;  %v3016_v49 = vld [vmem:[#allocation2 + $0xd8] sm:$0xff] }
 0x456   :  { %v1888_v50 = vmul.f32 %v4100_v39, %v1850_v48  ;;  %2052 = vadd.xlane.f32.xlu1 %v2051_v0  ;;  %v1960_v57 = vmax.f32 %v1928_v27, 0.0 }
 0x457   :  { %v2917_v62 = vpop.eup %2916  ;;  %v2060_v38 = vsel %vm130_vm0, %v4265_v17, 0.0  ;;  %v1891_v37 = vmul.f32 %v4100_v39, %v1853_v7  ;;  %v4275_v10 = vadd.f32 %v3012_v42, %v1957_v54  ;;  %v1955_v61 = vmax.f32 %v1923_v34, 0.0 }
 0x458   :  { %v1851_v36 = vmul.f32 %v2917_v62, %v4066_v4  ;;  %v2919_v43 = vpop.eup %2918  ;;  %v1926_v2 = vadd.f32 %v4106_v47, %v1888_v50  ;;  %2061 = vadd.xlane.f32.xlu0 %v2060_v38  ;;  %v4278_v25 = vadd.f32 %v3013_v44, %v1960_v57  ;;  %v3017_v57 = vld [vmem:[#allocation2 + $0xc8] sm:$0xff] }
 0x459   :  { %v1929_v29 = vadd.f32 %v4106_v47, %v1891_v37  ;;  %v1854_v8 = vmul.f32 %v2919_v43, %v4071_v59  ;;  %v2069_v4 = vsel %vm130_vm0, %v4275_v10, 0.0  ;;  %v4285_v24 = vadd.f32 %v3014_v15, %v1955_v61 }
 0x45a   :  { %v1889_v19 = vmul.f32 %v4100_v39, %v1851_v36  ;;  %v1958_v26 = vmax.f32 %v1926_v2, 0.0  ;;  %2070 = vadd.xlane.f32.xlu1 %v2069_v4  ;;  %v2078_v60 = vsel %vm130_vm0, %v4278_v25, 0.0  ;;  %v3019_v4 = vld [vmem:[#allocation2 + $0xf0] sm:$0xff] }
 0x45b   :  { %v1961_v18 = vmax.f32 %v1929_v29, 0.0  ;;  %v1892_v35 = vmul.f32 %v4100_v39, %v1854_v8  ;;  %v2063_v59 = vsel %vm130_vm0, %v4285_v24, 0.0 }
 0x45c   :  { %v1927_v33 = vadd.f32 %v4106_v47, %v1889_v19  ;;  %v2921_v32 = vpop.eup %2920  ;;  %v4293_v40 = vadd.f32 %v3015_v56, %v1958_v26  ;;  %2079 = vadd.xlane.f32.xlu0 %v2078_v60 }
 0x45d   :  { %v2923_v23 = vpop.eup %2922  ;;  %v4295_v48 = vadd.f32 %v3016_v49, %v1961_v18  ;;  %v1930_v31 = vadd.f32 %v4106_v47, %v1892_v35  ;;  %v1856_v27 = vmul.f32 %v2921_v32, %v4079_v45  ;;  %v3018_v45 = vld [vmem:[#allocation2 + $0xe0] sm:$0xff]  ;;  %v3021_v35 = vld [vmem:[#allocation2 + $0xf8] sm:$0xff] }
 0x45e   :  { %v1959_v0 = vmax.f32 %v1927_v33, 0.0  ;;  %v2072_v7 = vsel %vm130_vm0, %v4293_v40, 0.0  ;;  %v1855_v62 = vmul.f32 %v2923_v23, %v4082_v1  ;;  %2064 = vadd.xlane.f32.xlu1 %v2063_v59 }
 0x45f   :  { %v1962_v54 = vmax.f32 %v1930_v31, 0.0  ;;  %v1894_v34 = vmul.f32 %v4100_v39, %v1856_v27  ;;  %v2081_v38 = vsel %vm130_vm0, %v4295_v48, 0.0 }
 0x460   :  { %v4305_v37 = vadd.f32 %v3017_v57, %v1959_v0  ;;  %v1893_v36 = vmul.f32 %v4100_v39, %v1855_v62  ;;  %2073 = vadd.xlane.f32.xlu0 %v2072_v7 }
 0x461   :  { %v2925_v50 = vpop.eup %2924  ;;  %v4308_v43 = vadd.f32 %v3018_v45, %v1962_v54  ;;  %v1932_v42 = vadd.f32 %v4106_v47, %v1894_v34 }
 0x462   :  { %v1857_v1 = vmul.f32 %v2925_v50, %v4090_v9  ;;  %v1931_v61 = vadd.f32 %v4106_v47, %v1893_v36  ;;  %2082 = vadd.xlane.f32.xlu1 %v2081_v38  ;;  %v2075_v19 = vsel %vm130_vm0, %v4305_v37, 0.0  ;;  %v3020_v9 = vld [vmem:[#allocation2 + $0xe8] sm:$0xff] }
 0x463   :  { %v2084_v2 = vsel %vm130_vm0, %v4308_v43, 0.0  ;;  %v1964_v44 = vmax.f32 %v1932_v42, 0.0 }
 0x464   :  { %v1895_v29 = vmul.f32 %v4100_v39, %v1857_v1  ;;  %v1963_v8 = vmax.f32 %v1931_v61, 0.0  ;;  %2085 = vadd.xlane.f32.xlu0 %v2084_v2 }
 0x465   :  { %v4318_v15 = vadd.f32 %v3019_v4, %v1964_v44 }
 0x466   :  { %v1933_v26 = vadd.f32 %v4106_v47, %v1895_v29  ;;  %v4321_v60 = vadd.f32 %v3020_v9, %v1963_v8  ;;  %2076 = vadd.xlane.f32.xlu1 %v2075_v19 }
 0x467   :  { %v2090_v18 = vsel %vm130_vm0, %v4318_v15, 0.0 }
 0x468   :  { %v1965_v33 = vmax.f32 %v1933_v26, 0.0  ;;  %v2087_v39 = vsel %vm130_vm0, %v4321_v60, 0.0  ;;  %2091 = vadd.xlane.f32.xlu0 %v2090_v18 }
 0x46a   :  { %v4327_v32 = vadd.f32 %v3021_v35, %v1965_v33  ;;  %2088 = vadd.xlane.f32.xlu1 %v2087_v39 }
 0x46c   :  { %v2093_v59 = vsel %vm130_vm0, %v4327_v32, 0.0 }
 0x46e   :  { %2094 = vadd.xlane.f32.xlu1 %v2093_v59 }
 0x4b0   :  { %v2008_v47 = vpop.xlane.xlu0 %2007 }
 0x4b1   :  { %v2098_v56 = vmul.f32 0.0625, %v2008_v47 }
 0x4b3   :  { %v4332_v23 = vsub.f32 %v4114_v16, %v2098_v56 }
 0x4b4   :  { %v2002_v49 = vpop.xlane.xlu0 %2001 }
 0x4b5   :  { %v2011_v0 = vpop.xlane.xlu1 %2010  ;;  %v2162_v31 = vmul.f32 %v4332_v23, %v4332_v23  ;;  %v2096_v27 = vmul.f32 0.0625, %v2002_v49 }
 0x4b6   :  { %v2099_v7 = vmul.f32 0.0625, %v2011_v0 }
 0x4b7   :  { %v2198_v62 = vsel %vm130_vm0, %v2162_v31, 0.0  ;;  %v4338_v54 = vsub.f32 %v4125_v41, %v2096_v27 }
 0x4b8   :  { %v4341_v34 = vsub.f32 %v4127_v3, %v2099_v7  ;;  %2199 = vadd.xlane.f32.xlu0 %v2198_v62 }
 0x4b9   :  { %v2020_v50 = vpop.xlane.xlu0 %2019  ;;  %v2160_v57 = vmul.f32 %v4338_v54, %v4338_v54 }
 0x4ba   :  { %v2102_v38 = vmul.f32 0.0625, %v2020_v50  ;;  %v2005_v16 = vpop.xlane.xlu1 %2004  ;;  %v2163_v36 = vmul.f32 %v4341_v34, %v4341_v34 }
 0x4bb   :  { %v2097_v45 = vmul.f32 0.0625, %v2005_v16  ;;  %v2192_v41 = vsel %vm130_vm0, %v2160_v57, 0.0 }
 0x4bc   :  { %v4348_v42 = vsub.f32 %v4138_v55, %v2102_v38  ;;  %v2201_v1 = vsel %vm130_vm0, %v2163_v36, 0.0  ;;  %2193 = vadd.xlane.f32.xlu0 %v2192_v41 }
 0x4bd   :  { %v4353_v3 = vsub.f32 %v4143_v51, %v2097_v45  ;;  %v2014_v61 = vpop.xlane.xlu0 %2013  ;;  %2202 = vadd.xlane.f32.xlu1 %v2201_v1 }
 0x4be   :  { %v2100_v2 = vmul.f32 0.0625, %v2014_v61  ;;  %v2166_v44 = vmul.f32 %v4348_v42, %v4348_v42 }
 0x4bf   :  { %v2023_v29 = vpop.xlane.xlu1 %2022  ;;  %v2161_v19 = vmul.f32 %v4353_v3, %v4353_v3 }
 0x4c0   :  { %v4360_v55 = vsub.f32 %v4152_v11, %v2100_v2  ;;  %v2103_v8 = vmul.f32 0.0625, %v2023_v29  ;;  %v2210_v4 = vsel %vm130_vm0, %v2166_v44, 0.0 }
 0x4c1   :  { %2211 = vadd.xlane.f32.xlu0 %v2210_v4  ;;  %v2032_v51 = vpop.xlane.xlu0 %2031  ;;  %v2195_v26 = vsel %vm130_vm0, %v2161_v19, 0.0 }
 0x4c2   :  { %v4365_v9 = vsub.f32 %v4160_v58, %v2103_v8  ;;  %v2106_v18 = vmul.f32 0.0625, %v2032_v51  ;;  %2196 = vadd.xlane.f32.xlu1 %v2195_v26  ;;  %v2164_v33 = vmul.f32 %v4360_v55, %v4360_v55 }
 0x4c3   :  { %v2017_v39 = vpop.xlane.xlu1 %2016 }
 0x4c4   :  { %v4370_v35 = vsub.f32 %v4165_v20, %v2106_v18  ;;  %v2101_v11 = vmul.f32 0.0625, %v2017_v39  ;;  %v2204_v59 = vsel %vm130_vm0, %v2164_v33, 0.0  ;;  %v2167_v47 = vmul.f32 %v4365_v9, %v4365_v9 }
 0x4c5   :  { %2205 = vadd.xlane.f32.xlu0 %v2204_v59 }
 0x4c6   :  { %v4376_v56 = vsub.f32 %v4167_v12, %v2101_v11  ;;  %v2026_v58 = vpop.xlane.xlu0 %2025  ;;  %v2213_v49 = vsel %vm130_vm0, %v2167_v47, 0.0  ;;  %v2170_v0 = vmul.f32 %v4370_v35, %v4370_v35 }
 0x4c7   :  { %v2104_v31 = vmul.f32 0.0625, %v2026_v58  ;;  %2214 = vadd.xlane.f32.xlu1 %v2213_v49 }
 0x4c8   :  { %v2222_v20 = vsel %vm130_vm0, %v2170_v0, 0.0  ;;  %v2165_v27 = vmul.f32 %v4376_v56, %v4376_v56 }
 0x4c9   :  { %v4385_v7 = vsub.f32 %v4180_v46, %v2104_v31  ;;  %v2035_v62 = vpop.xlane.xlu1 %2034  ;;  %2223 = vadd.xlane.f32.xlu0 %v2222_v20 }
 0x4ca   :  { %v2107_v12 = vmul.f32 0.0625, %v2035_v62  ;;  %v2207_v50 = vsel %vm130_vm0, %v2165_v27, 0.0 }
 0x4cb   :  { %v2044_v38 = vpop.xlane.xlu0 %2043  ;;  %2208 = vadd.xlane.f32.xlu1 %v2207_v50  ;;  %v2168_v16 = vmul.f32 %v4385_v7, %v4385_v7 }
 0x4cc   :  { %v4391_v57 = vsub.f32 %v4188_v53, %v2107_v12  ;;  %v2110_v36 = vmul.f32 0.0625, %v2044_v38 }
 0x4cd   :  { %v2029_v45 = vpop.xlane.xlu1 %2028  ;;  %v2216_v41 = vsel %vm130_vm0, %v2168_v16, 0.0 }
 0x4ce   :  { %v4395_v46 = vsub.f32 %v4194_v63, %v2110_v36  ;;  %v2105_v1 = vmul.f32 0.0625, %v2029_v45  ;;  %2217 = vadd.xlane.f32.xlu0 %v2216_v41  ;;  %v2171_v61 = vmul.f32 %v4391_v57, %v4391_v57 }
 0x4d0   :  { %v4400_v2 = vsub.f32 %v4196_v13, %v2105_v1  ;;  %v2038_v44 = vpop.xlane.xlu0 %2037  ;;  %v2225_v29 = vsel %vm130_vm0, %v2171_v61, 0.0  ;;  %v2174_v53 = vmul.f32 %v4395_v46, %v4395_v46 }
 0x4d1   :  { %v2108_v19 = vmul.f32 0.0625, %v2038_v44  ;;  %2226 = vadd.xlane.f32.xlu1 %v2225_v29  ;;  %v2047_v8 = vpop.xlane.xlu1 %2046 }
 0x4d2   :  { %v2111_v4 = vmul.f32 0.0625, %v2047_v8  ;;  %v2234_v63 = vsel %vm130_vm0, %v2174_v53, 0.0  ;;  %v2169_v51 = vmul.f32 %v4400_v2, %v4400_v2 }
 0x4d3   :  { %v4409_v26 = vsub.f32 %v4209_v30, %v2108_v19  ;;  %2235 = vadd.xlane.f32.xlu0 %v2234_v63 }
 0x4d4   :  { %v4412_v13 = vsub.f32 %v4212_v21, %v2111_v4  ;;  %v2056_v18 = vpop.xlane.xlu0 %2055  ;;  %v2219_v33 = vsel %vm130_vm0, %v2169_v51, 0.0 }
 0x4d5   :  { %v2114_v39 = vmul.f32 0.0625, %v2056_v18  ;;  %2220 = vadd.xlane.f32.xlu1 %v2219_v33  ;;  %v2172_v11 = vmul.f32 %v4409_v26, %v4409_v26 }
 0x4d6   :  { %v2175_v59 = vmul.f32 %v4412_v13, %v4412_v13 }
 0x4d7   :  { %v4420_v47 = vsub.f32 %v4223_v52, %v2114_v39  ;;  %v2041_v30 = vpop.xlane.xlu1 %2040  ;;  %v2228_v58 = vsel %vm130_vm0, %v2172_v11, 0.0 }
 0x4d8   :  { %v2109_v49 = vmul.f32 0.0625, %v2041_v30  ;;  %2229 = vadd.xlane.f32.xlu0 %v2228_v58  ;;  %v2050_v21 = vpop.xlane.xlu0 %2049  ;;  %v2237_v0 = vsel %vm130_vm0, %v2175_v59, 0.0 }
 0x4d9   :  { %v2112_v31 = vmul.f32 0.0625, %v2050_v21  ;;  %2238 = vadd.xlane.f32.xlu1 %v2237_v0  ;;  %v2178_v20 = vmul.f32 %v4420_v47, %v4420_v47 }
 0x4da   :  { %v4427_v27 = vsub.f32 %v4230_v14, %v2109_v49 }
 0x4db   :  { %v4430_v62 = vsub.f32 %v4232_v28, %v2112_v31  ;;  %v2059_v52 = vpop.xlane.xlu1 %2058  ;;  %v2246_v12 = vsel %vm130_vm0, %v2178_v20, 0.0 }
 0x4dc   :  { %v2115_v50 = vmul.f32 0.0625, %v2059_v52  ;;  %2247 = vadd.xlane.f32.xlu0 %v2246_v12  ;;  %v2173_v38 = vmul.f32 %v4427_v27, %v4427_v27 }
 0x4dd   :  { %v2068_v16 = vpop.xlane.xlu0 %2067  ;;  %v2176_v36 = vmul.f32 %v4430_v62, %v4430_v62 }
 0x4de   :  { %v4438_v45 = vsub.f32 %v4241_v22, %v2115_v50  ;;  %v2118_v14 = vmul.f32 0.0625, %v2068_v16  ;;  %v2231_v41 = vsel %vm130_vm0, %v2173_v38, 0.0 }
 0x4df   :  { %2232 = vadd.xlane.f32.xlu1 %v2231_v41  ;;  %v2053_v28 = vpop.xlane.xlu1 %2052  ;;  %v2240_v1 = vsel %vm130_vm0, %v2176_v36, 0.0 }
 0x4e0   :  { %v4443_v61 = vsub.f32 %v4251_v5, %v2118_v14  ;;  %v2113_v44 = vmul.f32 0.0625, %v2053_v28  ;;  %2241 = vadd.xlane.f32.xlu0 %v2240_v1  ;;  %v2179_v29 = vmul.f32 %v4438_v45, %v4438_v45 }
 0x4e1   :  { %v2062_v53 = vpop.xlane.xlu0 %2061 }
 0x4e2   :  { %v4448_v19 = vsub.f32 %v4255_v6, %v2113_v44  ;;  %v2116_v22 = vmul.f32 0.0625, %v2062_v53  ;;  %v2249_v8 = vsel %vm130_vm0, %v2179_v29, 0.0  ;;  %v2182_v4 = vmul.f32 %v4443_v61, %v4443_v61 }
 0x4e3   :  { %2250 = vadd.xlane.f32.xlu1 %v2249_v8  ;;  %v2071_v63 = vpop.xlane.xlu1 %2070 }
 0x4e4   :  { %v4454_v5 = vsub.f32 %v4265_v17, %v2116_v22  ;;  %v2119_v51 = vmul.f32 0.0625, %v2071_v63  ;;  %v2258_v18 = vsel %vm130_vm0, %v2182_v4, 0.0  ;;  %v2177_v33 = vmul.f32 %v4448_v19, %v4448_v19 }
 0x4e5   :  { %2259 = vadd.xlane.f32.xlu0 %v2258_v18  ;;  %v2080_v6 = vpop.xlane.xlu0 %2079 }
 0x4e6   :  { %v4460_v39 = vsub.f32 %v4275_v10, %v2119_v51  ;;  %v2122_v11 = vmul.f32 0.0625, %v2080_v6  ;;  %v2243_v59 = vsel %vm130_vm0, %v2177_v33, 0.0  ;;  %v2180_v30 = vmul.f32 %v4454_v5, %v4454_v5 }
 0x4e7   :  { %2244 = vadd.xlane.f32.xlu1 %v2243_v59  ;;  %v2065_v17 = vpop.xlane.xlu1 %2064 }
 0x4e8   :  { %v4466_v58 = vsub.f32 %v4278_v25, %v2122_v11  ;;  %v2117_v49 = vmul.f32 0.0625, %v2065_v17  ;;  %v2252_v21 = vsel %vm130_vm0, %v2180_v30, 0.0  ;;  %v2183_v0 = vmul.f32 %v4460_v39, %v4460_v39 }
 0x4e9   :  { %2253 = vadd.xlane.f32.xlu0 %v2252_v21  ;;  %v2074_v10 = vpop.xlane.xlu0 %2073 }
 0x4ea   :  { %v4472_v31 = vsub.f32 %v4285_v24, %v2117_v49  ;;  %v2120_v20 = vmul.f32 0.0625, %v2074_v10  ;;  %v2261_v52 = vsel %vm130_vm0, %v2183_v0, 0.0  ;;  %v2186_v12 = vmul.f32 %v4466_v58, %v4466_v58 }
 0x4eb   :  { %2262 = vadd.xlane.f32.xlu1 %v2261_v52  ;;  %v2083_v25 = vpop.xlane.xlu1 %2082 }
 0x4ec   :  { %v4478_v50 = vsub.f32 %v4293_v40, %v2120_v20  ;;  %v2123_v38 = vmul.f32 0.0625, %v2083_v25  ;;  %v2270_v16 = vsel %vm130_vm0, %v2186_v12, 0.0  ;;  %v2181_v36 = vmul.f32 %v4472_v31, %v4472_v31 }
 0x4ed   :  { %2271 = vadd.xlane.f32.xlu0 %v2270_v16  ;;  %v2086_v24 = vpop.xlane.xlu0 %2085 }
 0x4ee   :  { %v4484_v14 = vsub.f32 %v4295_v48, %v2123_v38  ;;  %v2255_v41 = vsel %vm130_vm0, %v2181_v36, 0.0  ;;  %v2124_v28 = vmul.f32 0.0625, %v2086_v24  ;;  %v2184_v1 = vmul.f32 %v4478_v50, %v4478_v50 }
 0x4ef   :  { %2256 = vadd.xlane.f32.xlu1 %v2255_v41  ;;  %v2077_v40 = vpop.xlane.xlu1 %2076 }
 0x4f0   :  { %v2121_v44 = vmul.f32 0.0625, %v2077_v40  ;;  %v4490_v29 = vsub.f32 %v4308_v43, %v2124_v28  ;;  %v2264_v53 = vsel %vm130_vm0, %v2184_v1, 0.0  ;;  %v2187_v22 = vmul.f32 %v4484_v14, %v4484_v14 }
 0x4f1   :  { %2265 = vadd.xlane.f32.xlu0 %v2264_v53  ;;  %v2092_v48 = vpop.xlane.xlu0 %2091 }
 0x4f2   :  { %v4496_v8 = vsub.f32 %v4305_v37, %v2121_v44  ;;  %v2273_v4 = vsel %vm130_vm0, %v2187_v22, 0.0  ;;  %v2126_v63 = vmul.f32 0.0625, %v2092_v48  ;;  %v2188_v51 = vmul.f32 %v4490_v29, %v4490_v29 }
 0x4f3   :  { %2274 = vadd.xlane.f32.xlu1 %v2273_v4  ;;  %v2089_v18 = vpop.xlane.xlu1 %2088 }
 0x4f4   :  { %v4502_v43 = vsub.f32 %v4318_v15, %v2126_v63  ;;  %v2125_v33 = vmul.f32 0.0625, %v2089_v18  ;;  %v2185_v6 = vmul.f32 %v4496_v8, %v4496_v8  ;;  %v2276_v11 = vsel %vm130_vm0, %v2188_v51, 0.0 }
 0x4f5   :  { %2277 = vadd.xlane.f32.xlu0 %v2276_v11 }
 0x4f6   :  { %v4508_v37 = vsub.f32 %v4321_v60, %v2125_v33  ;;  %v2267_v59 = vsel %vm130_vm0, %v2185_v6, 0.0  ;;  %v2190_v30 = vmul.f32 %v4502_v43, %v4502_v43 }
 0x4f7   :  { %2268 = vadd.xlane.f32.xlu1 %v2267_v59  ;;  %v2095_v17 = vpop.xlane.xlu1 %2094 }
 0x4f8   :  { %v2127_v49 = vmul.f32 0.0625, %v2095_v17  ;;  %v2282_v15 = vsel %vm130_vm0, %v2190_v30, 0.0  ;;  %v2189_v21 = vmul.f32 %v4508_v37, %v4508_v37 }
 0x4f9   :  { %2283 = vadd.xlane.f32.xlu0 %v2282_v15 }
 0x4fa   :  { %v4517_v0 = vsub.f32 %v4327_v32, %v2127_v49  ;;  %v2279_v60 = vsel %vm130_vm0, %v2189_v21, 0.0 }
 0x4fb   :  { %2280 = vadd.xlane.f32.xlu1 %v2279_v60 }
 0x4fc   :  { %v2191_v10 = vmul.f32 %v4517_v0, %v4517_v0 }
 0x4fe   :  { %v2285_v20 = vsel %vm130_vm0, %v2191_v10, 0.0 }
 0x4ff   :  { %2286 = vadd.xlane.f32.xlu1 %v2285_v20 }
 0x500   :  { %3073 = shalt.err (!%p3070_p0)
}
 0x501   :  { %s3117_s20 = smov 64   ;;  %s3118_s21 = smov 4   ;;  %v4529_v11 = vld [vmem:[%s4680_s10] ss:$0 sm:$0xff] }
 0x502   :  { %2535 = dma.vmem_to_hbm [thread:$0]  %s2530_s9, 2048, %s4682_s12, [#allocation4], %s3117_s20, %s3117_s20, %s3118_s21  }
 0x503   :  { %v4535_v15 = vld [vmem:[%s4681_s11] ss:$0 sm:$0xff]  ;;  %s3119_s10 = smov [#allocation8]  }
 0x504   :  { %s2541_s11 = sshll.u32 %s3119_s10, 4  ;;  %s2542_s11 = int_to_ptr.vmem [resolvable:$true] %s2541_s11 }
 0x505   :  { %s3082_s24 = scalar_lea.vmem %s2542_s11, 4096  ;;  %p3087_p2 = scmp.lt.s32.totalorder %s2542_s11, %s2542_s11 }
 0x506   :  { %p3083_p1 = scmp.ne.s32.totalorder %s2542_s11, %s3082_s24  ;;  %p3088_p3 = scmp.lt.s32.totalorder %s3082_s24, %s3082_s24 }
 0x508   :  { %p3089_p4 = por %p3088_p3, %p3087_p2 }
 0x50a   :  { %p3090_p5 = pnand %p3089_p4, %p3083_p1 }
 0x541   :  { %v2200_v32 = vpop.xlane.xlu0 %2199 }
 0x542   :  { %v2290_v52 = vmul.f32 0.0625, %v2200_v32 }
 0x544   :  { %v2322_v12 = vadd.f32 1e-05, %v2290_v52 }
 0x545   :  { %v2194_v25 = vpop.xlane.xlu0 %2193 }
 0x546   :  { %2926 = vrsqrt.f32 %v2322_v12  ;;  %v2203_v38 = vpop.xlane.xlu1 %2202  ;;  %v2288_v16 = vmul.f32 0.0625, %v2194_v25 }
 0x547   :  { %v2291_v36 = vmul.f32 0.0625, %v2203_v38 }
 0x548   :  { %v2320_v24 = vadd.f32 1e-05, %v2288_v16 }
 0x549   :  { %v2323_v41 = vadd.f32 1e-05, %v2291_v36 }
 0x54a   :  { %v2212_v28 = vpop.xlane.xlu0 %2211  ;;  %2928 = vrsqrt.f32 %v2320_v24 }
 0x54b   :  { %v2294_v1 = vmul.f32 0.0625, %v2212_v28  ;;  %v2197_v40 = vpop.xlane.xlu1 %2196  ;;  %2930 = vrsqrt.f32 %v2323_v41 }
 0x54c   :  { %v2289_v44 = vmul.f32 0.0625, %v2197_v40 }
 0x54d   :  { %v2326_v53 = vadd.f32 1e-05, %v2294_v1 }
 0x54e   :  { %v2321_v22 = vadd.f32 1e-05, %v2289_v44  ;;  %v2206_v48 = vpop.xlane.xlu0 %2205 }
 0x54f   :  { %2932 = vrsqrt.f32 %v2326_v53  ;;  %v2292_v4 = vmul.f32 0.0625, %v2206_v48 }
 0x550   :  { %2934 = vrsqrt.f32 %v2321_v22  ;;  %v2215_v63 = vpop.xlane.xlu1 %2214 }
 0x551   :  { %v2324_v51 = vadd.f32 1e-05, %v2292_v4  ;;  %v2295_v18 = vmul.f32 0.0625, %v2215_v63 }
 0x552   :  { %v2224_v33 = vpop.xlane.xlu0 %2223 }
 0x553   :  { %v2927_v6 = vpop.eup %2926  ;;  %2936 = vrsqrt.f32 %v2324_v51  ;;  %v2327_v59 = vadd.f32 1e-05, %v2295_v18  ;;  %v2298_v30 = vmul.f32 0.0625, %v2224_v33 }
 0x554   :  { %v2386_v17 = vmul.f32 %v2927_v6, %v4332_v23  ;;  %v2209_v49 = vpop.xlane.xlu1 %2208 }
 0x555   :  { %2938 = vrsqrt.f32 %v2327_v59  ;;  %v2330_v21 = vadd.f32 1e-05, %v2298_v30  ;;  %v2293_v60 = vmul.f32 0.0625, %v2209_v49 }
 0x556   :  { %v2424_v10 = vmul.f32 %v4529_v11, %v2386_v17 }
 0x557   :  { %2940 = vrsqrt.f32 %v2330_v21  ;;  %v2325_v20 = vadd.f32 1e-05, %v2293_v60  ;;  %v2218_v32 = vpop.xlane.xlu0 %2217  ;;  %v2929_v52 = vpop.eup %2928 }
 0x558   :  { %v2462_v12 = vadd.f32 %v4535_v15, %v2424_v10  ;;  %v2296_v25 = vmul.f32 0.0625, %v2218_v32  ;;  %v2931_v38 = vpop.eup %2930  ;;  %v2384_v23 = vmul.f32 %v2929_v52, %v4338_v54 }
 0x559   :  { %2942 = vrsqrt.f32 %v2325_v20  ;;  %v2387_v16 = vmul.f32 %v2931_v38, %v4341_v34 }
 0x55a   :  { %2494 = vst.msk [vmem:[#allocation8 + $0x10] sm:$0xff] %vm130_vm0, %v2462_v12  ;;  %v2328_v36 = vadd.f32 1e-05, %v2296_v25  ;;  %v2227_v24 = vpop.xlane.xlu1 %2226  ;;  %v2422_v41 = vmul.f32 %v4529_v11, %v2384_v23 }
 0x55b   :  { %v2299_v28 = vmul.f32 0.0625, %v2227_v24  ;;  %v2425_v40 = vmul.f32 %v4529_v11, %v2387_v16 }
 0x55c   :  { %v2933_v1 = vpop.eup %2932  ;;  %2944 = vrsqrt.f32 %v2328_v36  ;;  %v2236_v44 = vpop.xlane.xlu0 %2235  ;;  %v2460_v22 = vadd.f32 %v4535_v15, %v2422_v41 }
 0x55d   :  { %v2935_v53 = vpop.eup %2934  ;;  %v2390_v54 = vmul.f32 %v2933_v1, %v4348_v42  ;;  %v2331_v48 = vadd.f32 1e-05, %v2299_v28  ;;  %v2302_v4 = vmul.f32 0.0625, %v2236_v44  ;;  %v2463_v63 = vadd.f32 %v4535_v15, %v2425_v40 }
 0x55e   :  { %v2385_v34 = vmul.f32 %v2935_v53, %v4353_v3  ;;  %v2221_v51 = vpop.xlane.xlu1 %2220  ;;  %2492 = vst.msk [vmem:[#allocation8] sm:$0xff] %vm130_vm0, %v2460_v22 }
 0x55f   :  { %v2428_v18 = vmul.f32 %v4529_v11, %v2390_v54  ;;  %2946 = vrsqrt.f32 %v2331_v48  ;;  %v2334_v33 = vadd.f32 1e-05, %v2302_v4  ;;  %v2297_v6 = vmul.f32 0.0625, %v2221_v51  ;;  %2495 = vst.msk [vmem:[#allocation8 + $0x18] sm:$0xff] %vm130_vm0, %v2463_v63 }
 0x560   :  { %v2937_v59 = vpop.eup %2936  ;;  %v2423_v30 = vmul.f32 %v4529_v11, %v2385_v34 }
 0x561   :  { %v2466_v42 = vadd.f32 %v4535_v15, %v2428_v18  ;;  %v2388_v17 = vmul.f32 %v2937_v59, %v4360_v55  ;;  %2948 = vrsqrt.f32 %v2334_v33  ;;  %v2329_v49 = vadd.f32 1e-05, %v2297_v6  ;;  %v2230_v3 = vpop.xlane.xlu0 %2229 }
 0x562   :  { %v2939_v21 = vpop.eup %2938  ;;  %v2461_v60 = vadd.f32 %v4535_v15, %v2423_v30  ;;  %v2300_v10 = vmul.f32 0.0625, %v2230_v3  ;;  %v2239_v20 = vpop.xlane.xlu1 %2238 }
 0x563   :  { %2498 = vst.msk [vmem:[#allocation8 + $0x30] sm:$0xff] %vm130_vm0, %v2466_v42  ;;  %v2426_v32 = vmul.f32 %v4529_v11, %v2388_v17  ;;  %v2391_v52 = vmul.f32 %v2939_v21, %v4365_v9  ;;  %2950 = vrsqrt.f32 %v2329_v49  ;;  %v2303_v12 = vmul.f32 0.0625, %v2239_v20 }
 0x564   :  { %v2941_v25 = vpop.eup %2940  ;;  %2493 = vst.msk [vmem:[#allocation8 + $0x8] sm:$0xff] %vm130_vm0, %v2461_v60  ;;  %v2332_v55 = vadd.f32 1e-05, %v2300_v10 }
 0x565   :  { %v2464_v38 = vadd.f32 %v4535_v15, %v2426_v32  ;;  %v2429_v23 = vmul.f32 %v4529_v11, %v2391_v52  ;;  %v2394_v16 = vmul.f32 %v2941_v25, %v4370_v35  ;;  %v2335_v36 = vadd.f32 1e-05, %v2303_v12  ;;  %v2248_v24 = vpop.xlane.xlu0 %2247 }
 0x566   :  { %v2943_v41 = vpop.eup %2942  ;;  %2952 = vrsqrt.f32 %v2332_v55  ;;  %v2306_v28 = vmul.f32 0.0625, %v2248_v24 }
 0x567   :  { %2496 = vst.msk [vmem:[#allocation8 + $0x20] sm:$0xff] %vm130_vm0, %v2464_v38  ;;  %v2467_v9 = vadd.f32 %v4535_v15, %v2429_v23  ;;  %v2432_v1 = vmul.f32 %v4529_v11, %v2394_v16  ;;  %v2389_v40 = vmul.f32 %v2943_v41, %v4376_v56  ;;  %2954 = vrsqrt.f32 %v2335_v36 }
 0x568   :  { %v2338_v44 = vadd.f32 1e-05, %v2306_v28  ;;  %v2233_v53 = vpop.xlane.xlu1 %2232 }
 0x569   :  { %v2945_v22 = vpop.eup %2944  ;;  %2499 = vst.msk [vmem:[#allocation8 + $0x38] sm:$0xff] %vm130_vm0, %v2467_v9  ;;  %v2470_v35 = vadd.f32 %v4535_v15, %v2432_v1  ;;  %v2427_v54 = vmul.f32 %v4529_v11, %v2389_v40  ;;  %v2301_v48 = vmul.f32 0.0625, %v2233_v53  ;;  %v2242_v4 = vpop.xlane.xlu0 %2241 }
 0x56a   :  { %v2392_v63 = vmul.f32 %v2945_v22, %v4385_v7  ;;  %2956 = vrsqrt.f32 %v2338_v44  ;;  %v2304_v34 = vmul.f32 0.0625, %v2242_v4 }
 0x56b   :  { %2502 = vst.msk [vmem:[#allocation8 + $0x50] sm:$0xff] %vm130_vm0, %v2470_v35  ;;  %v2465_v56 = vadd.f32 %v4535_v15, %v2427_v54  ;;  %v2333_v51 = vadd.f32 1e-05, %v2301_v48 }
 0x56c   :  { %v2947_v18 = vpop.eup %2946  ;;  %v2430_v33 = vmul.f32 %v4529_v11, %v2392_v63  ;;  %v2336_v6 = vadd.f32 1e-05, %v2304_v34  ;;  %v2251_v59 = vpop.xlane.xlu1 %2250 }
 0x56d   :  { %2497 = vst.msk [vmem:[#allocation8 + $0x28] sm:$0xff] %vm130_vm0, %v2465_v56  ;;  %v2395_v30 = vmul.f32 %v2947_v18, %v4391_v57  ;;  %2958 = vrsqrt.f32 %v2333_v51  ;;  %v2307_v42 = vmul.f32 0.0625, %v2251_v59 }
 0x56e   :  { %v2949_v17 = vpop.eup %2948  ;;  %v2468_v7 = vadd.f32 %v4535_v15, %v2430_v33  ;;  %2960 = vrsqrt.f32 %v2336_v6  ;;  %v2260_v49 = vpop.xlane.xlu0 %2259 }
 0x56f   :  { %v2433_v3 = vmul.f32 %v4529_v11, %v2395_v30  ;;  %v2398_v21 = vmul.f32 %v2949_v17, %v4395_v46  ;;  %v2339_v60 = vadd.f32 1e-05, %v2307_v42  ;;  %v2310_v10 = vmul.f32 0.0625, %v2260_v49 }
 0x570   :  { %v2951_v20 = vpop.eup %2950  ;;  %2500 = vst.msk [vmem:[#allocation8 + $0x40] sm:$0xff] %vm130_vm0, %v2468_v7  ;;  %v2245_v32 = vpop.xlane.xlu1 %2244 }
 0x571   :  { %v2471_v52 = vadd.f32 %v4535_v15, %v2433_v3  ;;  %v2436_v57 = vmul.f32 %v4529_v11, %v2398_v21  ;;  %v2393_v12 = vmul.f32 %v2951_v20, %v4400_v2  ;;  %2962 = vrsqrt.f32 %v2339_v60 }
 0x572   :  { %v2342_v25 = vadd.f32 1e-05, %v2310_v10  ;;  %v2305_v55 = vmul.f32 0.0625, %v2245_v32  ;;  %v2254_v38 = vpop.xlane.xlu0 %2253 }
 0x573   :  { %v2953_v23 = vpop.eup %2952  ;;  %2503 = vst.msk [vmem:[#allocation8 + $0x58] sm:$0xff] %vm130_vm0, %v2471_v52  ;;  %v2474_v46 = vadd.f32 %v4535_v15, %v2436_v57  ;;  %v2431_v16 = vmul.f32 %v4529_v11, %v2393_v12  ;;  %v2308_v36 = vmul.f32 0.0625, %v2254_v38 }
 0x574   :  { %v2955_v24 = vpop.eup %2954  ;;  %v2396_v41 = vmul.f32 %v2953_v23, %v4409_v26  ;;  %2964 = vrsqrt.f32 %v2342_v25  ;;  %v2337_v28 = vadd.f32 1e-05, %v2305_v55  ;;  %v2263_v9 = vpop.xlane.xlu1 %2262 }
 0x575   :  { %2506 = vst.msk [vmem:[#allocation8 + $0x70] sm:$0xff] %vm130_vm0, %v2474_v46  ;;  %v2469_v2 = vadd.f32 %v4535_v15, %v2431_v16  ;;  %v2399_v1 = vmul.f32 %v2955_v24, %v4412_v13  ;;  %v2340_v40 = vadd.f32 1e-05, %v2308_v36  ;;  %v2311_v44 = vmul.f32 0.0625, %v2263_v9 }
 0x576   :  { %v2434_v53 = vmul.f32 %v4529_v11, %v2396_v41  ;;  %2966 = vrsqrt.f32 %v2337_v28  ;;  %v2272_v22 = vpop.xlane.xlu0 %2271 }
 0x577   :  { %v2957_v35 = vpop.eup %2956  ;;  %2501 = vst.msk [vmem:[#allocation8 + $0x48] sm:$0xff] %vm130_vm0, %v2469_v2  ;;  %v2437_v26 = vmul.f32 %v4529_v11, %v2399_v1  ;;  %2968 = vrsqrt.f32 %v2340_v40  ;;  %v2343_v54 = vadd.f32 1e-05, %v2311_v44  ;;  %v2314_v48 = vmul.f32 0.0625, %v2272_v22 }
 0x578   :  { %v2472_v4 = vadd.f32 %v4535_v15, %v2434_v53  ;;  %v2402_v63 = vmul.f32 %v2957_v35, %v4420_v47  ;;  %v2257_v34 = vpop.xlane.xlu1 %2256 }
 0x579   :  { %v2475_v13 = vadd.f32 %v4535_v15, %v2437_v26  ;;  %2970 = vrsqrt.f32 %v2343_v54  ;;  %v2346_v56 = vadd.f32 1e-05, %v2314_v48  ;;  %v2309_v51 = vmul.f32 0.0625, %v2257_v34 }
 0x57a   :  { %v2959_v18 = vpop.eup %2958  ;;  %2504 = vst.msk [vmem:[#allocation8 + $0x60] sm:$0xff] %vm130_vm0, %v2472_v4  ;;  %v2440_v33 = vmul.f32 %v4529_v11, %v2402_v63  ;;  %v2266_v6 = vpop.xlane.xlu0 %2265 }
 0x57b   :  { %v2961_v59 = vpop.eup %2960  ;;  %2507 = vst.msk [vmem:[#allocation8 + $0x78] sm:$0xff] %vm130_vm0, %v2475_v13  ;;  %v2397_v30 = vmul.f32 %v2959_v18, %v4427_v27  ;;  %2972 = vrsqrt.f32 %v2346_v56  ;;  %v2341_v42 = vadd.f32 1e-05, %v2309_v51  ;;  %v2312_v47 = vmul.f32 0.0625, %v2266_v6 }
 0x57c   :  { %v2478_v17 = vadd.f32 %v4535_v15, %v2440_v33  ;;  %v2400_v7 = vmul.f32 %v2961_v59, %v4430_v62  ;;  %v2275_v49 = vpop.xlane.xlu1 %2274 }
 0x57d   :  { %v2435_v3 = vmul.f32 %v4529_v11, %v2397_v30  ;;  %2974 = vrsqrt.f32 %v2341_v42  ;;  %v2344_v21 = vadd.f32 1e-05, %v2312_v47  ;;  %v2315_v60 = vmul.f32 0.0625, %v2275_v49 }
 0x57e   :  { %v2963_v10 = vpop.eup %2962  ;;  %2510 = vst.msk [vmem:[#allocation8 + $0x90] sm:$0xff] %vm130_vm0, %v2478_v17  ;;  %v2438_v20 = vmul.f32 %v4529_v11, %v2400_v7  ;;  %v2278_v32 = vpop.xlane.xlu0 %2277 }
 0x57f   :  { %v2473_v27 = vadd.f32 %v4535_v15, %v2435_v3  ;;  %v2403_v52 = vmul.f32 %v2963_v10, %v4438_v45  ;;  %2976 = vrsqrt.f32 %v2344_v21  ;;  %v2347_v57 = vadd.f32 1e-05, %v2315_v60 }
 0x580   :  { %v2476_v62 = vadd.f32 %v4535_v15, %v2438_v20  ;;  %v2269_v12 = vpop.xlane.xlu1 %2268  ;;  %v2316_v25 = vmul.f32 0.0625, %v2278_v32 }
 0x581   :  { %v2965_v55 = vpop.eup %2964  ;;  %2505 = vst.msk [vmem:[#allocation8 + $0x68] sm:$0xff] %vm130_vm0, %v2473_v27  ;;  %v2441_v38 = vmul.f32 %v4529_v11, %v2403_v52  ;;  %2978 = vrsqrt.f32 %v2347_v57  ;;  %v2313_v23 = vmul.f32 0.0625, %v2269_v12 }
 0x582   :  { %2508 = vst.msk [vmem:[#allocation8 + $0x80] sm:$0xff] %vm130_vm0, %v2476_v62  ;;  %v2406_v46 = vmul.f32 %v2965_v55, %v4443_v61  ;;  %v2348_v16 = vadd.f32 1e-05, %v2316_v25  ;;  %v2284_v36 = vpop.xlane.xlu0 %2283 }
 0x583   :  { %v2967_v45 = vpop.eup %2966  ;;  %v2479_v24 = vadd.f32 %v4535_v15, %v2441_v38  ;;  %v2345_v41 = vadd.f32 1e-05, %v2313_v23  ;;  %v2318_v28 = vmul.f32 0.0625, %v2284_v36 }
 0x584   :  { %v2969_v9 = vpop.eup %2968  ;;  %v2444_v2 = vmul.f32 %v4529_v11, %v2406_v46  ;;  %v2401_v1 = vmul.f32 %v2967_v45, %v4448_v19  ;;  %2980 = vrsqrt.f32 %v2348_v16  ;;  %v2281_v40 = vpop.xlane.xlu1 %2280 }
 0x585   :  { %2511 = vst.msk [vmem:[#allocation8 + $0x98] sm:$0xff] %vm130_vm0, %v2479_v24  ;;  %v2404_v44 = vmul.f32 %v2969_v9, %v4454_v5  ;;  %2982 = vrsqrt.f32 %v2345_v41  ;;  %v2350_v61 = vadd.f32 1e-05, %v2318_v28  ;;  %v2317_v53 = vmul.f32 0.0625, %v2281_v40 }
 0x586   :  { %v2971_v22 = vpop.eup %2970  ;;  %v2482_v35 = vadd.f32 %v4535_v15, %v2444_v2  ;;  %v2439_v26 = vmul.f32 %v4529_v11, %v2401_v1 }
 0x587   :  { %v2442_v54 = vmul.f32 %v4529_v11, %v2404_v44  ;;  %v2407_v48 = vmul.f32 %v2971_v22, %v4460_v39  ;;  %2984 = vrsqrt.f32 %v2350_v61  ;;  %v2349_v19 = vadd.f32 1e-05, %v2317_v53 }
 0x588   :  { %v2973_v4 = vpop.eup %2972  ;;  %2514 = vst.msk [vmem:[#allocation8 + $0xb0] sm:$0xff] %vm130_vm0, %v2482_v35  ;;  %v2477_v63 = vadd.f32 %v4535_v15, %v2439_v26  ;;  %v2287_v5 = vpop.xlane.xlu1 %2286 }
 0x589   :  { %v2480_v34 = vadd.f32 %v4535_v15, %v2442_v54  ;;  %v2445_v13 = vmul.f32 %v4529_v11, %v2407_v48  ;;  %v2410_v56 = vmul.f32 %v2973_v4, %v4466_v58  ;;  %2986 = vrsqrt.f32 %v2349_v19 }
 0x58a   :  { %v2975_v51 = vpop.eup %2974  ;;  %2509 = vst.msk [vmem:[#allocation8 + $0x88] sm:$0xff] %vm130_vm0, %v2477_v63  ;;  %v2319_v18 = vmul.f32 0.0625, %v2287_v5 }
 0x58b   :  { %2512 = vst.msk [vmem:[#allocation8 + $0xa0] sm:$0xff] %vm130_vm0, %v2480_v34  ;;  %v2483_v39 = vadd.f32 %v4535_v15, %v2445_v13  ;;  %v2448_v33 = vmul.f32 %v4529_v11, %v2410_v56  ;;  %v2405_v6 = vmul.f32 %v2975_v51, %v4472_v31 }
 0x58c   :  { %v2977_v59 = vpop.eup %2976  ;;  %v2351_v30 = vadd.f32 1e-05, %v2319_v18 }
 0x58d   :  { %2515 = vst.msk [vmem:[#allocation8 + $0xb8] sm:$0xff] %vm130_vm0, %v2483_v39  ;;  %v2486_v42 = vadd.f32 %v4535_v15, %v2448_v33  ;;  %v2443_v58 = vmul.f32 %v4529_v11, %v2405_v6  ;;  %v2408_v47 = vmul.f32 %v2977_v59, %v4478_v50 }
 0x58e   :  { %v2979_v17 = vpop.eup %2978  ;;  %2988 = vrsqrt.f32 %v2351_v30 }
 0x58f   :  { %2518 = vst.msk [vmem:[#allocation8 + $0xd0] sm:$0xff] %vm130_vm0, %v2486_v42  ;;  %v2481_v7 = vadd.f32 %v4535_v15, %v2443_v58  ;;  %v2446_v49 = vmul.f32 %v4529_v11, %v2408_v47  ;;  %v2411_v31 = vmul.f32 %v2979_v17, %v4484_v14 }
 0x591   :  { %v2981_v3 = vpop.eup %2980  ;;  %2513 = vst.msk [vmem:[#allocation8 + $0xa8] sm:$0xff] %vm130_vm0, %v2481_v7  ;;  %v2484_v21 = vadd.f32 %v4535_v15, %v2446_v49  ;;  %v2449_v60 = vmul.f32 %v4529_v11, %v2411_v31 }
 0x592   :  { %v2983_v10 = vpop.eup %2982  ;;  %v2412_v50 = vmul.f32 %v2981_v3, %v4490_v29 }
 0x593   :  { %2516 = vst.msk [vmem:[#allocation8 + $0xc0] sm:$0xff] %vm130_vm0, %v2484_v21  ;;  %v2487_v20 = vadd.f32 %v4535_v15, %v2449_v60  ;;  %v2409_v32 = vmul.f32 %v2983_v10, %v4496_v8 }
 0x594   :  { %v2985_v27 = vpop.eup %2984  ;;  %v2450_v52 = vmul.f32 %v4529_v11, %v2412_v50 }
 0x595   :  { %2519 = vst.msk [vmem:[#allocation8 + $0xd8] sm:$0xff] %vm130_vm0, %v2487_v20  ;;  %v2447_v14 = vmul.f32 %v4529_v11, %v2409_v32  ;;  %v2414_v57 = vmul.f32 %v2985_v27, %v4502_v43 }
 0x596   :  { %v2987_v62 = vpop.eup %2986  ;;  %v2488_v12 = vadd.f32 %v4535_v15, %v2450_v52 }
 0x597   :  { %v2485_v29 = vadd.f32 %v4535_v15, %v2447_v14  ;;  %v2452_v25 = vmul.f32 %v4529_v11, %v2414_v57  ;;  %v2413_v55 = vmul.f32 %v2987_v62, %v4508_v37 }
 0x598   :  { %2520 = vst.msk [vmem:[#allocation8 + $0xe0] sm:$0xff] %vm130_vm0, %v2488_v12 }
 0x599   :  { %2517 = vst.msk [vmem:[#allocation8 + $0xc8] sm:$0xff] %vm130_vm0, %v2485_v29  ;;  %v2490_v8 = vadd.f32 %v4535_v15, %v2452_v25  ;;  %v2451_v38 = vmul.f32 %v4529_v11, %v2413_v55 }
 0x59b   :  { %v2989_v23 = vpop.eup %2988  ;;  %2522 = vst.msk [vmem:[#allocation8 + $0xf0] sm:$0xff] %vm130_vm0, %v2490_v8  ;;  %v2489_v43 = vadd.f32 %v4535_v15, %v2451_v38 }
 0x59c   :  { %v2415_v46 = vmul.f32 %v2989_v23, %v4517_v0 }
 0x59d   :  { %2521 = vst.msk [vmem:[#allocation8 + $0xe8] sm:$0xff] %vm130_vm0, %v2489_v43 }
 0x59e   :  { %v2453_v37 = vmul.f32 %v4529_v11, %v2415_v46 }
 0x5a0   :  { %v2491_v16 = vadd.f32 %v4535_v15, %v2453_v37 }
 0x5a2   :  { %2523 = vst.msk [vmem:[#allocation8 + $0xf8] sm:$0xff] %vm130_vm0, %v2491_v16 }
 0x5a3   :  { %3093 = shalt.err (!%p3090_p5)
}
 0x5a4   :  { %2547 = dma.vmem_to_hbm [thread:$0]  %s2542_s11, 4096, %s4683_s13, [#allocation9], %s3111_s28, %s3111_s28, %s3112_s29  }
 0x5a5   :  { %3106 = dma.done.wait [#allocation4], 2048  }
 0x5a6   :  { %3107 = vsyncadd [#allocation4], 4294965248 }
 0x5a7   :  { %3108 = dma.done.wait [#allocation9], 4096  }
 0x5a8   :  { %3109 = vsyncadd [#allocation9], 4294963200 }
 0x5a9   :  { %2554 = vsyncpa [#allocation3], 1 }
 0x5aa   :  { %2555 = vsyncpa [#allocation6], 1 }
 0x5ab   :  { %2556 = vsyncpa [#allocation4], 1 }
 0x5ac   :  { %2557 = vsyncpa [#allocation9], 1 }

</bundles_post_ra>
